<compile_context>
chip_gen: v7x
topology: tpu7x:2x2x1
jax: 0.10.0
libtpu: 0.0.40
codegen_flags: <defaults>
</compile_context>

<pallas_src>
import jax
import jax.numpy as jnp
from jax.experimental import pallas as pl
from jax.experimental.pallas import tpu as pltpu

# ---- logical (PyTorch) sizes -------------------------------------------------
FEAT_LOGICAL = 1000   # MOCO_pretrain_model output features
HIDDEN = 40           # nn.Linear(1000, 40)
NUM_CLASSES = 4       # nn.Linear(40, 4)

# ---- lane-aligned padded sizes ----------------------------------------------
FEAT = 1024           # 1000 -> 1024
HIDDEN_P = 128        # 40   -> 128
OUT_P = 128           # 4    -> 128 (lane-dense output slab, sliced back in the wrapper)

LANE = 128
SUBLANE_BF16 = 16     # bf16 minimum sublane tile

# Keep w0 fully resident in VMEM (no K streaming) below this bf16 footprint.  8 MiB
# single-buffered (16 MiB if the Buffered(1) request is unsupported and the runtime
# double-buffers) stays well inside the 32 MiB scoped-VMEM budget on v5e/v6e/v7x.
RESIDENT_W0_MAX_BYTES = 8 * 1024 * 1024

VMEM_LIMIT_BYTES = 32 * 1024 * 1024


def _round_up(x, m):
    return (x + m - 1) // m * m


def _pick_tiles(B):
    """Generation-aware tiles: TB=128 on v5e, 256 on v6e/v7x; TK=512."""
    try:
        kind = jax.devices()[0].device_kind.lower()
    except Exception:
        kind = ""
    tb_target = 128 if "v5" in kind else 256
    b16 = _round_up(B, SUBLANE_BF16)
    tb = min(tb_target, b16)
    # v7x has 2 TensorCores per chip: keep at least two batch tiles when the batch
    # allows so the "parallel" grid axis can shard across both cores.
    if "v7" in kind and tb == b16 and b16 >= 2 * SUBLANE_BF16:
        tb = _round_up((b16 + 1) // 2, SUBLANE_BF16)
    return tb, 512


def _prepare(x_nchw, params):
    """Flatten + zero-pad to lane-aligned shapes; cast the big streams to bf16.

    Returns padded operands plus tiling metadata.  Both the kernel wrapper and the
    pure-JAX reference use this so they see identical quantization."""
    w0, b0, w1, b1, w2, b2 = params
    B = x_nchw.shape[0]
    x_flat = x_nchw.reshape(B, -1)
    K = x_flat.shape[1]

    TB, TK = _pick_tiles(B)
    Bp = _round_up(B, TB)

    k_lane = _round_up(K, LANE)
    resident_w0 = (k_lane * FEAT * 2) <= RESIDENT_W0_MAX_BYTES
    Kp = k_lane if resident_w0 else _round_up(K, TK)

    x_p = jnp.pad(x_flat, ((0, Bp - B), (0, Kp - K))).astype(jnp.bfloat16)
    w0_p = jnp.pad(w0, ((0, Kp - K), (0, FEAT - w0.shape[1]))).astype(jnp.bfloat16)
    b0_p = jnp.pad(b0.reshape(1, -1), ((0, 0), (0, FEAT - b0.size))).astype(jnp.float32)
    w1_p = jnp.pad(w1, ((0, FEAT - w1.shape[0]),
                        (0, HIDDEN_P - w1.shape[1]))).astype(jnp.bfloat16)
    b1_p = jnp.pad(b1.reshape(1, -1), ((0, 0), (0, HIDDEN_P - b1.size))).astype(jnp.float32)
    w2_p = jnp.pad(w2, ((0, HIDDEN_P - w2.shape[0]),
                        (0, OUT_P - w2.shape[1]))).astype(jnp.bfloat16)
    b2_p = jnp.pad(b2.reshape(1, -1), ((0, 0), (0, OUT_P - b2.size))).astype(jnp.float32)

    meta = dict(B=B, Bp=Bp, Kp=Kp, TB=TB, TK=TK, resident_w0=resident_w0)
    return (x_p, w0_p, b0_p, w1_p, b1_p, w2_p, b2_p), meta


def _head(feat_f32, w1_ref, b1_ref, w2_ref, b2_ref, out_dtype):
    """classifies_layer: Linear(1000,40) -> ReLU -> Linear(40,4) on padded tiles."""
    h = jnp.dot(feat_f32.astype(jnp.bfloat16), w1_ref[...],
                preferred_element_type=jnp.float32) + b1_ref[...]
    h = jnp.maximum(h, 0.0)
    out = jnp.dot(h.astype(jnp.bfloat16), w2_ref[...],
                  preferred_element_type=jnp.float32) + b2_ref[...]
    return out.astype(out_dtype)


def _kernel_resident(x_ref, w0_ref, b0_ref, w1_ref, b1_ref, w2_ref, b2_ref, o_ref):
    """w0 fully resident in VMEM: one backbone matmul per batch tile + fused head."""
    feat = jnp.dot(x_ref[...], w0_ref[...],
                   preferred_element_type=jnp.float32) + b0_ref[...]
    o_ref[...] = _head(feat, w1_ref, b1_ref, w2_ref, b2_ref, o_ref.dtype)


def _kernel_streamed(x_ref, w0_ref, b0_ref, w1_ref, b1_ref, w2_ref, b2_ref,
                     o_ref, acc_ref):
    """K-tiled backbone matmul (f32 accumulator) + classifier head at the last K step."""
    k = pl.program_id(1)

    @pl.when(k == 0)
    def _init():
        acc_ref[...] = jnp.broadcast_to(b0_ref[...], acc_ref.shape)

    acc_ref[...] += jnp.dot(x_ref[...], w0_ref[...],
                            preferred_element_type=jnp.float32)

    @pl.when(k == pl.num_programs(1) - 1)
    def _finish():
        o_ref[...] = _head(acc_ref[...], w1_ref, b1_ref, w2_ref, b2_ref, o_ref.dtype)


def moco_classifies_forward(x_nchw, params):
    """x_nchw: [B, C, H, W] float32.  Returns logits [B, 4] float32."""
    operands, meta = _prepare(x_nchw, params)
    x_p, w0_p, b0_p, w1_p, b1_p, w2_p, b2_p = operands
    B, Bp, Kp = meta["B"], meta["Bp"], meta["Kp"]
    TB, TK, resident_w0 = meta["TB"], meta["TK"], meta["resident_w0"]
    nb = Bp // TB

    head_bytes = (4 * b0_p.size + 2 * w1_p.size + 4 * b1_p.size
                  + 2 * w2_p.size + 4 * b2_p.size)
    flops = 2 * Bp * Kp * FEAT + 2 * Bp * FEAT * HIDDEN_P + 2 * Bp * HIDDEN_P * OUT_P

    def build(use_buffered):
        def resident_spec(shape, index_map):
            if use_buffered:
                # Constant index map -> never re-fetched; single-buffer to save VMEM.
                return pl.BlockSpec(shape, index_map, pipeline_mode=pl.Buffered(1))
            return pl.BlockSpec(shape, index_map)

        if resident_w0:
            grid = (nb,)
            in_specs = [
                pl.BlockSpec((TB, Kp), lambda b: (b, 0)),                # x tile (bf16)
                resident_spec((Kp, FEAT), lambda b: (0, 0)),             # w0 resident (bf16)
                resident_spec((1, FEAT), lambda b: (0, 0)),              # b0
                resident_spec((FEAT, HIDDEN_P), lambda b: (0, 0)),       # w1 (bf16)
                resident_spec((1, HIDDEN_P), lambda b: (0, 0)),          # b1
                resident_spec((HIDDEN_P, OUT_P), lambda b: (0, 0)),      # w2 (bf16)
                resident_spec((1, OUT_P), lambda b: (0, 0)),             # b2
            ]
            out_specs = pl.BlockSpec((TB, OUT_P), lambda b: (b, 0))
            scratch_shapes = []
            dims = ("parallel",)
            kernel = _kernel_resident
            bytes_accessed = x_p.size * 2 + w0_p.size * 2 + head_bytes + 4 * Bp * OUT_P
        else:
            nk = Kp // TK
            grid = (nb, nk)
            in_specs = [
                pl.BlockSpec((TB, TK), lambda b, k: (b, k)),             # x tile (bf16)
                pl.BlockSpec((TK, FEAT), lambda b, k: (k, 0)),           # w0 tile (streamed)
                resident_spec((1, FEAT), lambda b, k: (0, 0)),           # b0
                resident_spec((FEAT, HIDDEN_P), lambda b, k: (0, 0)),    # w1 (bf16)
                resident_spec((1, HIDDEN_P), lambda b, k: (0, 0)),       # b1
                resident_spec((HIDDEN_P, OUT_P), lambda b, k: (0, 0)),   # w2 (bf16)
                resident_spec((1, OUT_P), lambda b, k: (0, 0)),          # b2
            ]
            out_specs = pl.BlockSpec((TB, OUT_P), lambda b, k: (b, 0))
            scratch_shapes = [pltpu.VMEM((TB, FEAT), jnp.float32)]
            # K must stay the innermost, "arbitrary" axis (accumulator reset depends on it).
            dims = ("parallel", "arbitrary")
            kernel = _kernel_streamed
            # w0 is re-streamed once per batch tile (its index_map ignores b).
            bytes_accessed = (x_p.size * 2 + w0_p.size * 2 * nb
                              + head_bytes + 4 * Bp * OUT_P)

        return pl.pallas_call(
            kernel,
            out_shape=jax.ShapeDtypeStruct((Bp, OUT_P), jnp.float32),
            grid_spec=pltpu.PrefetchScalarGridSpec(
                num_scalar_prefetch=0,
                grid=grid,
                in_specs=in_specs,
                out_specs=out_specs,
                scratch_shapes=scratch_shapes),
            compiler_params=pltpu.CompilerParams(
                dimension_semantics=dims,
                vmem_limit_bytes=VMEM_LIMIT_BYTES),
            cost_estimate=pl.CostEstimate(flops=flops, transcendentals=0,
                                          bytes_accessed=bytes_accessed),
        )

    try:
        out = jax.block_until_ready(build(use_buffered=True)(*operands))
    except Exception:
        # TODO(synk): pipeline_mode=pl.Buffered(1) not supported by this jax build on
        # pallas_call BlockSpecs; fall back to default double-buffering (same semantics,
        # ~1 MiB extra VMEM).
        out = jax.block_until_ready(build(use_buffered=False)(*operands))

    return out[:B, :NUM_CLASSES]


def init_params(key, in_features):
    """Deterministic synthetic parameters in logical (unpadded) PyTorch shapes."""
    k0, k1, k2, k3, k4, k5 = jax.random.split(key, 6)
    w0 = jax.random.normal(k0, (in_features, FEAT_LOGICAL), jnp.float32) * 0.02
    b0 = jax.random.normal(k1, (FEAT_LOGICAL,), jnp.float32) * 0.01
    w1 = jax.random.normal(k2, (FEAT_LOGICAL, HIDDEN), jnp.float32) * 0.05
    b1 = jax.random.normal(k3, (HIDDEN,), jnp.float32) * 0.01
    w2 = jax.random.normal(k4, (HIDDEN, NUM_CLASSES), jnp.float32) * 0.05
    b2 = jax.random.normal(k5, (NUM_CLASSES,), jnp.float32) * 0.01
    return (w0, b0, w1, b1, w2, b2)


def reference_forward(x_nchw, params):
    """Pure-JAX reference on the same padded / bf16-quantized operands (validation)."""
    operands, meta = _prepare(x_nchw, params)
    x_p, w0_p, b0_p, w1_p, b1_p, w2_p, b2_p = operands
    B = meta["B"]
    f32 = jnp.float32
    feat = jnp.dot(x_p.astype(f32), w0_p.astype(f32),
                   preferred_element_type=f32) + b0_p
    feat = feat.astype(jnp.bfloat16).astype(f32)
    h = jnp.dot(feat, w1_p.astype(f32), preferred_element_type=f32) + b1_p
    h = jnp.maximum(h, 0.0).astype(jnp.bfloat16).astype(f32)
    out = jnp.dot(h, w2_p.astype(f32), preferred_element_type=f32) + b2_p
    return out[:B, :NUM_CLASSES]


if __name__ == "__main__":
    key = jax.random.PRNGKey(0)
    k_x, k_p = jax.random.split(key)

    # small deterministic input: batch=2, channels=3, spatial=16x16 (NCHW)
    B, C, H, W = 2, 3, 16, 16
    x = jax.random.normal(k_x, (B, C, H, W), jnp.float32)

    params = init_params(k_p, C * H * W)

    out = moco_classifies_forward(x, params)
    out = jax.block_until_ready(out)

    ref = reference_forward(x, params)
    assert out.shape == (B, NUM_CLASSES), out.shape
    assert jnp.allclose(out, ref, atol=2e-3, rtol=2e-3), "mismatch vs reference"

    print("KERNEL_OK")
</pallas_src>

<mosaic_0001>
module attributes {stable_mosaic.version = 11 : i64} {
  func.func @_kernel_resident(%arg0: i32, %arg1: memref<16x768xbf16, #tpu.memory_space<vmem>>, %arg2: memref<768x1024xbf16, #tpu.memory_space<vmem>>, %arg3: memref<1x1024xf32, #tpu.memory_space<vmem>>, %arg4: memref<1024x128xbf16, #tpu.memory_space<vmem>>, %arg5: memref<1x128xf32, #tpu.memory_space<vmem>>, %arg6: memref<128x128xbf16, #tpu.memory_space<vmem>>, %arg7: memref<1x128xf32, #tpu.memory_space<vmem>>, %arg8: memref<16x128xf32, #tpu.memory_space<vmem>>) attributes {dimension_semantics = [#tpu.dimension_semantics<parallel>], iteration_bounds = array<i64: 1>, scalar_prefetch = 0 : i64, scratch_operands = 0 : i64, tpu.core_type = #tpu.core_type<tc>, window_params = [{transform_indices = @transform_0, window_bounds = array<i64: 16, 768>}, {pipeline_mode = #tpu.pipeline_mode<synchronous>, transform_indices = @transform_1, window_bounds = array<i64: 768, 1024>}, {pipeline_mode = #tpu.pipeline_mode<synchronous>, transform_indices = @transform_2, window_bounds = array<i64: 1, 1024>}, {pipeline_mode = #tpu.pipeline_mode<synchronous>, transform_indices = @transform_3, window_bounds = array<i64: 1024, 128>}, {pipeline_mode = #tpu.pipeline_mode<synchronous>, transform_indices = @transform_4, window_bounds = array<i64: 1, 128>}, {pipeline_mode = #tpu.pipeline_mode<synchronous>, transform_indices = @transform_5, window_bounds = array<i64: 128, 128>}, {pipeline_mode = #tpu.pipeline_mode<synchronous>, transform_indices = @transform_6, window_bounds = array<i64: 1, 128>}, {transform_indices = @transform_7, window_bounds = array<i64: 16, 128>}]} {
    %c0 = arith.constant 0 : index
    %c0_0 = arith.constant 0 : index
    %0 = vector.load %arg1[%c0, %c0_0] : memref<16x768xbf16, #tpu.memory_space<vmem>>, vector<16x768xbf16>
    %c0_1 = arith.constant 0 : index
    %c0_2 = arith.constant 0 : index
    %1 = vector.load %arg2[%c0_1, %c0_2] : memref<768x1024xbf16, #tpu.memory_space<vmem>>, vector<768x1024xbf16>
    %cst = arith.constant dense<0.000000e+00> : vector<16x1024xf32>
    %2 = tpu.matmul %0, %1, %cst {dimension_numbers = #tpu.dot_dimension_numbers<[1], [0], [0], [1], [0, 0, 1, 1], [], []>} : vector<16x768xbf16>, vector<768x1024xbf16>, vector<16x1024xf32> -> vector<16x1024xf32>
    %c0_3 = arith.constant 0 : index
    %c0_4 = arith.constant 0 : index
    %3 = vector.load %arg3[%c0_3, %c0_4] : memref<1x1024xf32, #tpu.memory_space<vmem>>, vector<1x1024xf32>
    %4 = vector.broadcast %3 : vector<1x1024xf32> to vector<16x1024xf32>
    %5 = arith.addf %2, %4 : vector<16x1024xf32>
    %6 = arith.truncf %5 : vector<16x1024xf32> to vector<16x1024xbf16>
    %c0_5 = arith.constant 0 : index
    %c0_6 = arith.constant 0 : index
    %7 = vector.load %arg4[%c0_5, %c0_6] : memref<1024x128xbf16, #tpu.memory_space<vmem>>, vector<1024x128xbf16>
    %cst_7 = arith.constant dense<0.000000e+00> : vector<16x128xf32>
    %8 = tpu.matmul %6, %7, %cst_7 {dimension_numbers = #tpu.dot_dimension_numbers<[1], [0], [0], [1], [0, 0, 1, 1], [], []>} : vector<16x1024xbf16>, vector<1024x128xbf16>, vector<16x128xf32> -> vector<16x128xf32>
    %c0_8 = arith.constant 0 : index
    %c0_9 = arith.constant 0 : index
    %9 = vector.load %arg5[%c0_8, %c0_9] : memref<1x128xf32, #tpu.memory_space<vmem>>, vector<1x128xf32>
    %10 = vector.broadcast %9 : vector<1x128xf32> to vector<16x128xf32>
    %11 = arith.addf %8, %10 : vector<16x128xf32>
    %cst_10 = arith.constant 0.000000e+00 : f32
    %12 = vector.broadcast %cst_10 : f32 to vector<16x128xf32>
    %13 = arith.maximumf %11, %12 : vector<16x128xf32>
    %14 = arith.truncf %13 : vector<16x128xf32> to vector<16x128xbf16>
    %c0_11 = arith.constant 0 : index
    %c0_12 = arith.constant 0 : index
    %15 = vector.load %arg6[%c0_11, %c0_12] : memref<128x128xbf16, #tpu.memory_space<vmem>>, vector<128x128xbf16>
    %cst_13 = arith.constant dense<0.000000e+00> : vector<16x128xf32>
    %16 = tpu.matmul %14, %15, %cst_13 {dimension_numbers = #tpu.dot_dimension_numbers<[1], [0], [0], [1], [0, 0, 1, 1], [], []>} : vector<16x128xbf16>, vector<128x128xbf16>, vector<16x128xf32> -> vector<16x128xf32>
    %c0_14 = arith.constant 0 : index
    %c0_15 = arith.constant 0 : index
    %17 = vector.load %arg7[%c0_14, %c0_15] : memref<1x128xf32, #tpu.memory_space<vmem>>, vector<1x128xf32>
    %18 = vector.broadcast %17 : vector<1x128xf32> to vector<16x128xf32>
    %19 = arith.addf %16, %18 : vector<16x128xf32>
    %c0_16 = arith.constant 0 : index
    %c0_17 = arith.constant 0 : index
    %20 = vector.load %arg8[%c0_16, %c0_17] : memref<16x128xf32, #tpu.memory_space<vmem>>, vector<16x128xf32>
    tpu.vector_store %arg8[%c0_16, %c0_17], %19 {strides = array<i32>} : memref<16x128xf32, #tpu.memory_space<vmem>>, vector<16x128xf32>,
    return
  }
  func.func @transform_0(%arg0: i32) -> (i32, i32) {
    %c0_i32 = arith.constant 0 : i32
    %c0_i32_0 = arith.constant 0 : i32
    return %arg0, %c0_i32 : i32, i32
  }
  func.func @transform_1(%arg0: i32) -> (i32, i32) {
    %c0_i32 = arith.constant 0 : i32
    %c0_i32_0 = arith.constant 0 : i32
    %c0_i32_1 = arith.constant 0 : i32
    return %c0_i32, %c0_i32_0 : i32, i32
  }
  func.func @transform_2(%arg0: i32) -> (i32, i32) {
    %c0_i32 = arith.constant 0 : i32
    %c0_i32_0 = arith.constant 0 : i32
    %c0_i32_1 = arith.constant 0 : i32
    return %c0_i32, %c0_i32_0 : i32, i32
  }
  func.func @transform_3(%arg0: i32) -> (i32, i32) {
    %c0_i32 = arith.constant 0 : i32
    %c0_i32_0 = arith.constant 0 : i32
    %c0_i32_1 = arith.constant 0 : i32
    return %c0_i32, %c0_i32_0 : i32, i32
  }
  func.func @transform_4(%arg0: i32) -> (i32, i32) {
    %c0_i32 = arith.constant 0 : i32
    %c0_i32_0 = arith.constant 0 : i32
    %c0_i32_1 = arith.constant 0 : i32
    return %c0_i32, %c0_i32_0 : i32, i32
  }
  func.func @transform_5(%arg0: i32) -> (i32, i32) {
    %c0_i32 = arith.constant 0 : i32
    %c0_i32_0 = arith.constant 0 : i32
    %c0_i32_1 = arith.constant 0 : i32
    return %c0_i32, %c0_i32_0 : i32, i32
  }
  func.func @transform_6(%arg0: i32) -> (i32, i32) {
    %c0_i32 = arith.constant 0 : i32
    %c0_i32_0 = arith.constant 0 : i32
    %c0_i32_1 = arith.constant 0 : i32
    return %c0_i32, %c0_i32_0 : i32, i32
  }
  func.func @transform_7(%arg0: i32) -> (i32, i32) {
    %c0_i32 = arith.constant 0 : i32
    %c0_i32_0 = arith.constant 0 : i32
    return %arg0, %c0_i32 : i32, i32
  }
}

module attributes {stable_mosaic.version = 11 : i64} {
  func.func @_kernel_resident(%arg0: i32, %arg1: memref<16x768xbf16, #tpu.memory_space<vmem>>, %arg2: memref<768x1024xbf16, #tpu.memory_space<vmem>>, %arg3: memref<1x1024xf32, #tpu.memory_space<vmem>>, %arg4: memref<1024x128xbf16, #tpu.memory_space<vmem>>, %arg5: memref<1x128xf32, #tpu.memory_space<vmem>>, %arg6: memref<128x128xbf16, #tpu.memory_space<vmem>>, %arg7: memref<1x128xf32, #tpu.memory_space<vmem>>, %arg8: memref<16x128xf32, #tpu.memory_space<vmem>>) attributes {dimension_semantics = [#tpu.dimension_semantics<parallel>], iteration_bounds = array<i64: 1>, scalar_prefetch = 0 : i64, scratch_operands = 0 : i64, tpu.core_type = #tpu.core_type<tc>, window_params = [{transform_indices = @transform_0, window_bounds = array<i64: 16, 768>}, {pipeline_mode = #tpu.pipeline_mode<synchronous>, transform_indices = @transform_1, window_bounds = array<i64: 768, 1024>}, {pipeline_mode = #tpu.pipeline_mode<synchronous>, transform_indices = @transform_2, window_bounds = array<i64: 1, 1024>}, {pipeline_mode = #tpu.pipeline_mode<synchronous>, transform_indices = @transform_3, window_bounds = array<i64: 1024, 128>}, {pipeline_mode = #tpu.pipeline_mode<synchronous>, transform_indices = @transform_4, window_bounds = array<i64: 1, 128>}, {pipeline_mode = #tpu.pipeline_mode<synchronous>, transform_indices = @transform_5, window_bounds = array<i64: 128, 128>}, {pipeline_mode = #tpu.pipeline_mode<synchronous>, transform_indices = @transform_6, window_bounds = array<i64: 1, 128>}, {transform_indices = @transform_7, window_bounds = array<i64: 16, 128>}]} {
    %c0 = arith.constant 0 : index
    %c0_0 = arith.constant 0 : index
    %0 = vector.load %arg1[%c0, %c0_0] : memref<16x768xbf16, #tpu.memory_space<vmem>>, vector<16x768xbf16>
    %c0_1 = arith.constant 0 : index
    %c0_2 = arith.constant 0 : index
    %1 = vector.load %arg2[%c0_1, %c0_2] : memref<768x1024xbf16, #tpu.memory_space<vmem>>, vector<768x1024xbf16>
    %cst = arith.constant dense<0.000000e+00> : vector<16x1024xf32>
    %2 = tpu.matmul %0, %1, %cst {dimension_numbers = #tpu.dot_dimension_numbers<[1], [0], [0], [1], [0, 0, 1, 1], [], []>} : vector<16x768xbf16>, vector<768x1024xbf16>, vector<16x1024xf32> -> vector<16x1024xf32>
    %c0_3 = arith.constant 0 : index
    %c0_4 = arith.constant 0 : index
    %3 = vector.load %arg3[%c0_3, %c0_4] : memref<1x1024xf32, #tpu.memory_space<vmem>>, vector<1x1024xf32>
    %4 = vector.broadcast %3 : vector<1x1024xf32> to vector<16x1024xf32>
    %5 = arith.addf %2, %4 : vector<16x1024xf32>
    %6 = arith.truncf %5 : vector<16x1024xf32> to vector<16x1024xbf16>
    %c0_5 = arith.constant 0 : index
    %c0_6 = arith.constant 0 : index
    %7 = vector.load %arg4[%c0_5, %c0_6] : memref<1024x128xbf16, #tpu.memory_space<vmem>>, vector<1024x128xbf16>
    %cst_7 = arith.constant dense<0.000000e+00> : vector<16x128xf32>
    %8 = tpu.matmul %6, %7, %cst_7 {dimension_numbers = #tpu.dot_dimension_numbers<[1], [0], [0], [1], [0, 0, 1, 1], [], []>} : vector<16x1024xbf16>, vector<1024x128xbf16>, vector<16x128xf32> -> vector<16x128xf32>
    %c0_8 = arith.constant 0 : index
    %c0_9 = arith.constant 0 : index
    %9 = vector.load %arg5[%c0_8, %c0_9] : memref<1x128xf32, #tpu.memory_space<vmem>>, vector<1x128xf32>
    %10 = vector.broadcast %9 : vector<1x128xf32> to vector<16x128xf32>
    %11 = arith.addf %8, %10 : vector<16x128xf32>
    %cst_10 = arith.constant 0.000000e+00 : f32
    %12 = vector.broadcast %cst_10 : f32 to vector<16x128xf32>
    %13 = arith.maximumf %11, %12 : vector<16x128xf32>
    %14 = arith.truncf %13 : vector<16x128xf32> to vector<16x128xbf16>
    %c0_11 = arith.constant 0 : index
    %c0_12 = arith.constant 0 : index
    %15 = vector.load %arg6[%c0_11, %c0_12] : memref<128x128xbf16, #tpu.memory_space<vmem>>, vector<128x128xbf16>
    %cst_13 = arith.constant dense<0.000000e+00> : vector<16x128xf32>
    %16 = tpu.matmul %14, %15, %cst_13 {dimension_numbers = #tpu.dot_dimension_numbers<[1], [0], [0], [1], [0, 0, 1, 1], [], []>} : vector<16x128xbf16>, vector<128x128xbf16>, vector<16x128xf32> -> vector<16x128xf32>
    %c0_14 = arith.constant 0 : index
    %c0_15 = arith.constant 0 : index
    %17 = vector.load %arg7[%c0_14, %c0_15] : memref<1x128xf32, #tpu.memory_space<vmem>>, vector<1x128xf32>
    %18 = vector.broadcast %17 : vector<1x128xf32> to vector<16x128xf32>
    %19 = arith.addf %16, %18 : vector<16x128xf32>
    %c0_16 = arith.constant 0 : index
    %c0_17 = arith.constant 0 : index
    %20 = vector.load %arg8[%c0_16, %c0_17] : memref<16x128xf32, #tpu.memory_space<vmem>>, vector<16x128xf32>
    tpu.vector_store %arg8[%c0_16, %c0_17], %19 {strides = array<i32>} : memref<16x128xf32, #tpu.memory_space<vmem>>, vector<16x128xf32>,
    return
  }
  func.func @transform_0(%arg0: i32) -> (i32, i32) {
    %c0_i32 = arith.constant 0 : i32
    %c0_i32_0 = arith.constant 0 : i32
    return %arg0, %c0_i32 : i32, i32
  }
  func.func @transform_1(%arg0: i32) -> (i32, i32) {
    %c0_i32 = arith.constant 0 : i32
    %c0_i32_0 = arith.constant 0 : i32
    %c0_i32_1 = arith.constant 0 : i32
    return %c0_i32, %c0_i32_0 : i32, i32
  }
  func.func @transform_2(%arg0: i32) -> (i32, i32) {
    %c0_i32 = arith.constant 0 : i32
    %c0_i32_0 = arith.constant 0 : i32
    %c0_i32_1 = arith.constant 0 : i32
    return %c0_i32, %c0_i32_0 : i32, i32
  }
  func.func @transform_3(%arg0: i32) -> (i32, i32) {
    %c0_i32 = arith.constant 0 : i32
    %c0_i32_0 = arith.constant 0 : i32
    %c0_i32_1 = arith.constant 0 : i32
    return %c0_i32, %c0_i32_0 : i32, i32
  }
  func.func @transform_4(%arg0: i32) -> (i32, i32) {
    %c0_i32 = arith.constant 0 : i32
    %c0_i32_0 = arith.constant 0 : i32
    %c0_i32_1 = arith.constant 0 : i32
    return %c0_i32, %c0_i32_0 : i32, i32
  }
  func.func @transform_5(%arg0: i32) -> (i32, i32) {
    %c0_i32 = arith.constant 0 : i32
    %c0_i32_0 = arith.constant 0 : i32
    %c0_i32_1 = arith.constant 0 : i32
    return %c0_i32, %c0_i32_0 : i32, i32
  }
  func.func @transform_6(%arg0: i32) -> (i32, i32) {
    %c0_i32 = arith.constant 0 : i32
    %c0_i32_0 = arith.constant 0 : i32
    %c0_i32_1 = arith.constant 0 : i32
    return %c0_i32, %c0_i32_0 : i32, i32
  }
  func.func @transform_7(%arg0: i32) -> (i32, i32) {
    %c0_i32 = arith.constant 0 : i32
    %c0_i32_0 = arith.constant 0 : i32
    return %arg0, %c0_i32 : i32, i32
  }
}

</mosaic_0001>

<bundles_post_ra>
// kernel: tpu_custom_call.1
= control target key start
LH: loop header
LB: loop body
LE: loop exit
PB: predicated region body
PF: predicated region fallthrough
CT: control target
= control target key end

     0   :  { %12 = vsyncpa [#allocation3], 0  ;;  %s4953_s0 = inlined_call_operand.hbm [shape: bf16[16,768], index: 0, kind: input, shape index: {}]   ;;  %s4954_s1 = inlined_call_operand.hbm [shape: bf16[768,1024], index: 1, kind: input, shape index: {}]   ;;  %s4955_s2 = inlined_call_operand.hbm [shape: f32[1,1024], index: 2, kind: input, shape index: {}]   ;;  %s4956_s3 = inlined_call_operand.hbm [shape: bf16[1024,128], index: 3, kind: input, shape index: {}]   ;;  %s4957_s4 = inlined_call_operand.hbm [shape: f32[1,128], index: 4, kind: input, shape index: {}]   ;;  %s4958_s5 = inlined_call_operand.hbm [shape: bf16[128,128], index: 5, kind: input, shape index: {}]   ;;  %s4959_s6 = inlined_call_operand.hbm [shape: f32[1,128], index: 6, kind: input, shape index: {}]   ;;  %s4960_s7 = inlined_call_operand.hbm [shape: f32[16,128], index: 7, kind: output, shape index: {}]  }
   0x1   :  { %13 = vsyncpa [#allocation6], 0 }
   0x2   :  { %14 = vsyncpa [#allocation9], 0 }
   0x3   :  { %15 = vsyncpa [#allocation12], 0 }
   0x4   :  { %16 = vsyncpa [#allocation4], 0  ;;  %s4763_s24 = smov [#allocation5]   ;;  %s4577_s28 = scalar_lea.hbm %s4954_s1, 49152 }
   0x5   :  { %s34_s25 = sshll.u32 %s4763_s24, 4  ;;  %p4578_p0 = scmp.ne.s32.totalorder %s4954_s1, %s4577_s28  ;;  %s35_s25 = int_to_ptr.vmem [resolvable:$true] %s34_s25 }
   0x6   :  { %p4581_p1 = scmp.lt.u32.totalorder %s4577_s28, %s4954_s1 }
   0x8   :  { %p4583_p2 = pnand %p4581_p1, %p4578_p0 }
   0xa   :  { %4586 = shalt.err (!%p4583_p2)
}
   0xb   :  { %s4587_s10 = scalar_lea.vmem %s35_s25, 49152  ;;  %p4592_p4 = scmp.lt.s32.totalorder %s35_s25, %s35_s25 }
   0xc   :  { %p4588_p3 = scmp.ne.s32.totalorder %s35_s25, %s4587_s10  ;;  %p4593_p5 = scmp.lt.s32.totalorder %s4587_s10, %s4587_s10 }
   0xe   :  { %p4594_p6 = por %p4593_p5, %p4592_p4 }
  0x10   :  { %p4595_p7 = pnand %p4594_p6, %p4588_p3 }
  0x12   :  { %4598 = shalt.err (!%p4595_p7)
}
  0x13   :  { %s4764_s11 = smov 512   ;;  %s4765_s12 = smov 32  }
  0x14   :  { %40 = dma.hbm_to_vmem [thread:$0]  %s4954_s1, 49152, %s35_s25, [#allocation6], %s4764_s11, %s4764_s11, %s4765_s12  }
  0x15   :  { %s4766_s15 = smov [#allocation8]   ;;  %s4599_s19 = scalar_lea.hbm %s4956_s3, 8192 }
  0x16   :  { %s56_s16 = sshll.u32 %s4766_s15, 4  ;;  %p4600_p8 = scmp.ne.s32.totalorder %s4956_s3, %s4599_s19  ;;  %s57_s16 = int_to_ptr.vmem [resolvable:$true] %s56_s16 }
  0x17   :  { %p4603_p9 = scmp.lt.u32.totalorder %s4599_s19, %s4956_s3 }
  0x19   :  { %p4605_p10 = pnand %p4603_p9, %p4600_p8 }
  0x1b   :  { %4608 = shalt.err (!%p4605_p10)
}
  0x1c   :  { %s4609_s24 = scalar_lea.vmem %s57_s16, 8192  ;;  %p4614_p12 = scmp.lt.s32.totalorder %s57_s16, %s57_s16 }
  0x1d   :  { %p4610_p11 = scmp.ne.s32.totalorder %s57_s16, %s4609_s24  ;;  %p4615_p13 = scmp.lt.s32.totalorder %s4609_s24, %s4609_s24 }
  0x1f   :  { %p4616_p0 = por %p4615_p13, %p4614_p12 }
  0x21   :  { %p4617_p1 = pnand %p4616_p0, %p4610_p11 }
  0x23   :  { %4620 = shalt.err (!%p4617_p1)
}
  0x24   :  { %s4767_s1 = smov 64   ;;  %s4768_s25 = smov 4  }
  0x25   :  { %62 = dma.hbm_to_vmem [thread:$0]  %s4956_s3, 8192, %s57_s16, [#allocation9], %s4767_s1, %s4767_s1, %s4768_s25  }
  0x26   :  { %s4769_s28 = smov [#allocation11]   ;;  %s4770_s30 = smov [#allocation2]  }
  0x27   :  { %s78_s29 = sshll.u32 %s4769_s28, 4  ;;  %s22_s8 = sshll.u32 %s4770_s30, 4  ;;  %s79_s29 = int_to_ptr.vmem [resolvable:$true] %s78_s29  ;;  %s4845_s8 = int_to_ptr.vmem [resolvable:$true] %s22_s8 }
  0x28   :  { %s4621_s11 = scalar_lea.hbm %s4958_s5, 1024 }
  0x29   :  { %p4622_p2 = scmp.ne.s32.totalorder %s4958_s5, %s4621_s11  ;;  %p4625_p3 = scmp.lt.u32.totalorder %s4621_s11, %s4958_s5 }
  0x2b   :  { %p4627_p4 = pnand %p4625_p3, %p4622_p2 }
  0x2d   :  { %4630 = shalt.err (!%p4627_p4)
}
  0x2e   :  { %s4631_s3 = scalar_lea.vmem %s79_s29, 1024  ;;  %p4636_p6 = scmp.lt.s32.totalorder %s79_s29, %s79_s29 }
  0x2f   :  { %p4632_p5 = scmp.ne.s32.totalorder %s79_s29, %s4631_s3  ;;  %p4637_p7 = scmp.lt.s32.totalorder %s4631_s3, %s4631_s3 }
  0x31   :  { %p4638_p8 = por %p4637_p7, %p4636_p6 }
  0x33   :  { %p4639_p9 = pnand %p4638_p8, %p4632_p5 }
  0x35   :  { %4642 = shalt.err (!%p4639_p9)
}
  0x36   :  { %84 = dma.hbm_to_vmem [thread:$0]  %s4958_s5, 1024, %s79_s29, [#allocation12], %s4767_s1, %s4767_s1, %s4768_s25  }
  0x37   :  { %s4643_s20 = scalar_lea.hbm %s4953_s0, 768 }
  0x38   :  { %p4644_p10 = scmp.ne.s32.totalorder %s4953_s0, %s4643_s20  ;;  %p4647_p11 = scmp.lt.u32.totalorder %s4643_s20, %s4953_s0 }
  0x3a   :  { %p4649_p12 = pnand %p4647_p11, %p4644_p10 }
  0x3c   :  { %4652 = shalt.err (!%p4649_p12)
}
  0x3d   :  { %s4653_s26 = scalar_lea.vmem %s4845_s8, 768  ;;  %p4658_p0 = scmp.lt.s32.totalorder %s4845_s8, %s4845_s8 }
  0x3e   :  { %p4654_p13 = scmp.ne.s32.totalorder %s4845_s8, %s4653_s26  ;;  %p4659_p1 = scmp.lt.s32.totalorder %s4653_s26, %s4653_s26 }
  0x40   :  { %p4660_p2 = por %p4659_p1, %p4658_p0 }
  0x42   :  { %p4661_p3 = pnand %p4660_p2, %p4654_p13 }
  0x44   :  { %4664 = shalt.err (!%p4661_p3)
}
  0x45   :  { %s4771_s5 = smov 384   ;;  %s4772_s1 = smov 24  }
  0x46   :  { %28 = dma.hbm_to_vmem [thread:$0]  %s4953_s0, 768, %s4845_s8, [#allocation3], %s4771_s5, %s4771_s5, %s4772_s1  }
  0x47   :  { %s4773_s28 = smov [#allocation7]   ;;  %s4774_s30 = smov [#allocation10]  }
  0x48   :  { %s47_s29 = sshll.u32 %s4773_s28, 4  ;;  %s69_s9 = sshll.u32 %s4774_s30, 4  ;;  %s48_s29 = int_to_ptr.vmem [resolvable:$true] %s47_s29  ;;  %s70_s9 = int_to_ptr.vmem [resolvable:$true] %s69_s9 }
  0x49   :  { %s4665_s12 = scalar_lea.hbm %s4955_s2, 128 }
  0x4a   :  { %p4666_p4 = scmp.ne.s32.totalorder %s4955_s2, %s4665_s12  ;;  %p4669_p5 = scmp.lt.u32.totalorder %s4665_s12, %s4955_s2 }
  0x4c   :  { %p4671_p6 = pnand %p4669_p5, %p4666_p4 }
  0x4e   :  { %4674 = shalt.err (!%p4671_p6)
}
  0x4f   :  { %s4675_s0 = scalar_lea.vmem %s48_s29, 128  ;;  %p4680_p8 = scmp.lt.s32.totalorder %s48_s29, %s48_s29 }
  0x50   :  { %p4676_p7 = scmp.ne.s32.totalorder %s48_s29, %s4675_s0  ;;  %p4681_p9 = scmp.lt.s32.totalorder %s4675_s0, %s4675_s0 }
  0x52   :  { %p4682_p10 = por %p4681_p9, %p4680_p8 }
  0x54   :  { %p4683_p11 = pnand %p4682_p10, %p4676_p7 }
  0x56   :  { %4686 = shalt.err (!%p4683_p11)
}
  0x57   :  { %50 = dma.hbm_to_vmem [thread:$0]  %s4955_s2, 128, %s48_s29, [#allocation6]  }
  0x58   :  { %s4687_s19 = scalar_lea.hbm %s4957_s4, 16 }
  0x59   :  { %p4688_p12 = scmp.ne.s32.totalorder %s4957_s4, %s4687_s19  ;;  %p4691_p13 = scmp.lt.u32.totalorder %s4687_s19, %s4957_s4 }
  0x5b   :  { %p4693_p0 = pnand %p4691_p13, %p4688_p12 }
  0x5d   :  { %4696 = shalt.err (!%p4693_p0)
}
  0x5e   :  { %s4697_s24 = scalar_lea.vmem %s70_s9, 16  ;;  %s4701_s26 = scalar_lea.vmem %s70_s9, 32 }
  0x5f   :  { %p4698_p1 = scmp.ne.s32.totalorder %s70_s9, %s4697_s24  ;;  %p4702_p2 = scmp.lt.s32.totalorder %s70_s9, %s70_s9 }
  0x60   :  { %p4703_p3 = scmp.lt.s32.totalorder %s4701_s26, %s4697_s24 }
  0x62   :  { %p4704_p4 = por %p4703_p3, %p4702_p2 }
  0x64   :  { %p4705_p5 = pnand %p4704_p4, %p4698_p1 }
  0x66   :  { %4708 = shalt.err (!%p4705_p5)
}
  0x67   :  { %72 = dma.hbm_to_vmem [thread:$0]  %s4957_s4, 16, %s70_s9, [#allocation9]  }
  0x68   :  { %s4775_s1 = smov [#allocation13]   ;;  %s4709_s29 = scalar_lea.hbm %s4959_s6, 16 }
  0x69   :  { %s91_s25 = sshll.u32 %s4775_s1, 4  ;;  %p4710_p6 = scmp.ne.s32.totalorder %s4959_s6, %s4709_s29  ;;  %s92_s25 = int_to_ptr.vmem [resolvable:$true] %s91_s25 }
  0x6a   :  { %p4713_p7 = scmp.lt.u32.totalorder %s4709_s29, %s4959_s6 }
  0x6c   :  { %p4715_p8 = pnand %p4713_p7, %p4710_p6 }
  0x6e   :  { %4718 = shalt.err (!%p4715_p8)
}
  0x6f   :  { %s4719_s13 = scalar_lea.vmem %s92_s25, 16  ;;  %s4723_s4 = scalar_lea.vmem %s92_s25, 32 }
  0x70   :  { %p4720_p9 = scmp.ne.s32.totalorder %s92_s25, %s4719_s13  ;;  %p4724_p10 = scmp.lt.s32.totalorder %s92_s25, %s92_s25 }
  0x71   :  { %p4725_p11 = scmp.lt.s32.totalorder %s4723_s4, %s4719_s13 }
  0x73   :  { %p4726_p12 = por %p4725_p11, %p4724_p10 }
  0x75   :  { %p4727_p13 = pnand %p4726_p12, %p4720_p9 }
  0x77   :  { %4730 = shalt.err (!%p4727_p13)
}
  0x78   :  { %94 = dma.hbm_to_vmem [thread:$0]  %s4959_s6, 16, %s92_s25, [#allocation12]  }
  0x79   :  { %4753 = dma.done.wait [#allocation3], 768  }
  0x7a   :  { %4754 = vsyncadd [#allocation3], 4294966528 }
  0x7b   :  { %4755 = dma.done.wait [#allocation6], 49280  }
  0x7c   :  { %4756 = vsyncadd [#allocation6], 4294918016 }
  0x7d   :  { %4757 = dma.done.wait [#allocation9], 8208  }
  0x7e   :  { %4758 = vsyncadd [#allocation9], 4294959088 }
  0x7f   :  { %4759 = dma.done.wait [#allocation12], 1040  }
  0x80   :  { %4760 = vsyncadd [#allocation12], 4294966256  ;;  %v123_v0 = vld [vmem:[#allocation5] sm:$0xff]  ;;  %v124_v2 = vld [vmem:[#allocation5 + $0x8] sm:$0xff]  ;;  %vm4777_vm0 = vmmov 0   ;;  %s4778_s6 = smov [#allocation14]  }
  0x81   :  { %v127_v1 = vld [vmem:[#allocation5 + $0x20] sm:$0xff]  ;;  %v128_v4 = vld [vmem:[#allocation5 + $0x28] sm:$0xff]  ;;  %s3828_s15 = sshll.u32 %s4778_s6, 4  ;;  %s3829_s15 = int_to_ptr.vmem [resolvable:$true] %s3828_s15 }
  0x82   :  { %v3850_v3 = vcombine.high %v123_v0, %v127_v1  ;;  %v3849_v5 = vcombine.low %v123_v0, %v127_v1  ;;  %v131_v6 = vld [vmem:[#allocation5 + $0x40] sm:$0xff]  ;;  %v3852_v8 = vcombine.high %v124_v2, %v128_v4  ;;  %v3851_v9 = vcombine.low %v124_v2, %v128_v4  ;;  %v132_v11 = vld [vmem:[#allocation5 + $0x48] sm:$0xff]  ;;  %s4731_s3 = scalar_lea.vmem %s3829_s15, 256  ;;  %p4736_p1 = scmp.lt.s32.totalorder %s3829_s15, %s3829_s15 }
  0x83   :  { %v135_v7 = vld [vmem:[#allocation5 + $0x60] sm:$0xff]  ;;  %v136_v12 = vld [vmem:[#allocation5 + $0x68] sm:$0xff]  ;;  %p4732_p0 = scmp.ne.s32.totalorder %s3829_s15, %s4731_s3  ;;  %p4737_p2 = scmp.lt.s32.totalorder %s4731_s3, %s4731_s3 }
  0x84   :  { %v3858_v10 = vcombine.high %v131_v6, %v135_v7  ;;  %v139_v13 = vld [vmem:[#allocation5 + $0x80] sm:$0xff]  ;;  %2499 = vmatprep.subr.bf16.mxu0 %v3850_v3  ;;  %v3860_v14 = vcombine.high %v132_v11, %v136_v12  ;;  %v140_v16 = vld [vmem:[#allocation5 + $0x88] sm:$0xff]  ;;  %2628 = vmatprep.subr.bf16.mxu1 %v3852_v8  ;;  %v3857_v18 = vcombine.low %v131_v6, %v135_v7 }
  0x85   :  { %v143_v15 = vld [vmem:[#allocation5 + $0xa0] sm:$0xff]  ;;  %v144_v17 = vld [vmem:[#allocation5 + $0xa8] sm:$0xff]  ;;  %2500 = vmatpush1.bf16.msra.mxu0 %v3849_v5  ;;  %2629 = vmatpush1.bf16.msra.mxu1 %v3851_v9  ;;  %v3859_v19 = vcombine.low %v132_v11, %v136_v12  ;;  %p4738_p3 = por %p4737_p2, %p4736_p1 }
  0x86   :  { %2501 = vmatprep.subr.bf16.mxu0 %v3858_v10  ;;  %v3866_v20 = vcombine.high %v139_v13, %v143_v15  ;;  %2630 = vmatprep.subr.bf16.mxu1 %v3860_v14  ;;  %v3868_v21 = vcombine.high %v140_v16, %v144_v17  ;;  %v147_v22 = vld [vmem:[#allocation5 + $0xc0] sm:$0xff]  ;;  %v148_v24 = vld [vmem:[#allocation5 + $0xc8] sm:$0xff]  ;;  %v3865_v26 = vcombine.low %v139_v13, %v143_v15 }
  0x87   :  { %v151_v23 = vld [vmem:[#allocation5 + $0xe0] sm:$0xff]  ;;  %v152_v25 = vld [vmem:[#allocation5 + $0xe8] sm:$0xff]  ;;  %v3867_v27 = vcombine.low %v140_v16, %v144_v17  ;;  %p4739_p4 = pnand %p4738_p3, %p4732_p0 }
  0x88   :  { %v3874_v28 = vcombine.high %v147_v22, %v151_v23  ;;  %v3876_v29 = vcombine.high %v148_v24, %v152_v25  ;;  %v155_v30 = vld [vmem:[#allocation5 + $0x100] sm:$0xff]  ;;  %v156_v32 = vld [vmem:[#allocation5 + $0x108] sm:$0xff]  ;;  %v3873_v34 = vcombine.low %v147_v22, %v151_v23  ;;  %v3875_v35 = vcombine.low %v148_v24, %v152_v25 }
  0x89   :  { %2502 = vmatpush1.bf16.msra.mxu0 %v3857_v18  ;;  %2631 = vmatpush1.bf16.msra.mxu1 %v3859_v19  ;;  %v159_v31 = vld [vmem:[#allocation5 + $0x120] sm:$0xff]  ;;  %v160_v33 = vld [vmem:[#allocation5 + $0x128] sm:$0xff] }
  0x8a   :  { %2503 = vmatprep.subr.bf16.mxu0 %v3866_v20  ;;  %2632 = vmatprep.subr.bf16.mxu1 %v3868_v21  ;;  %v3882_v36 = vcombine.high %v155_v30, %v159_v31  ;;  %v3884_v37 = vcombine.high %v156_v32, %v160_v33  ;;  %v163_v38 = vld [vmem:[#allocation5 + $0x140] sm:$0xff]  ;;  %v164_v40 = vld [vmem:[#allocation5 + $0x148] sm:$0xff]  ;;  %v3881_v42 = vcombine.low %v155_v30, %v159_v31 }
  0x8b   :  { %v167_v39 = vld [vmem:[#allocation5 + $0x160] sm:$0xff]  ;;  %v168_v41 = vld [vmem:[#allocation5 + $0x168] sm:$0xff]  ;;  %v3883_v43 = vcombine.low %v156_v32, %v160_v33 }
  0x8c   :  { %v3890_v44 = vcombine.high %v163_v38, %v167_v39  ;;  %v3892_v45 = vcombine.high %v164_v40, %v168_v41  ;;  %v171_v46 = vld [vmem:[#allocation5 + $0x180] sm:$0xff]  ;;  %v172_v48 = vld [vmem:[#allocation5 + $0x188] sm:$0xff]  ;;  %v3889_v50 = vcombine.low %v163_v38, %v167_v39  ;;  %v3891_v51 = vcombine.low %v164_v40, %v168_v41 }
  0x8d   :  { %2504 = vmatpush1.bf16.msra.mxu0 %v3865_v26  ;;  %2633 = vmatpush1.bf16.msra.mxu1 %v3867_v27  ;;  %v175_v47 = vld [vmem:[#allocation5 + $0x1a0] sm:$0xff]  ;;  %v176_v49 = vld [vmem:[#allocation5 + $0x1a8] sm:$0xff] }
  0x8e   :  { %2505 = vmatprep.subr.bf16.mxu0 %v3874_v28  ;;  %2634 = vmatprep.subr.bf16.mxu1 %v3876_v29  ;;  %v3898_v52 = vcombine.high %v171_v46, %v175_v47  ;;  %v3900_v53 = vcombine.high %v172_v48, %v176_v49  ;;  %v179_v54 = vld [vmem:[#allocation5 + $0x1c0] sm:$0xff]  ;;  %v4490_v56 = vld [vmem:[#allocation2 + $0x4] ss:$24 sps:$4 sm:$0xff]   ;;  %v3897_v59 = vcombine.low %v171_v46, %v175_v47 }
  0x8f   :  { %v183_v55 = vld [vmem:[#allocation5 + $0x1e0] sm:$0xff]  ;;  %v180_v57 = vld [vmem:[#allocation5 + $0x1c8] sm:$0xff]  ;;  %2531 = vmatprep.mubr.bf16.mxu0 %v4490_v56  ;;  %v3899_v60 = vcombine.low %v172_v48, %v176_v49  ;;  %2660 = vmatprep.mubr.bf16.mxu1 %v4490_v56 }
  0x90   :  { %v184_v58 = vld [vmem:[#allocation5 + $0x1e8] sm:$0xff]  ;;  %v3906_v61 = vcombine.high %v179_v54, %v183_v55  ;;  %v187_v63 = vld [vmem:[#allocation5 + $0x200] sm:$0xff]  ;;  %v3905_v3 = vcombine.low %v179_v54, %v183_v55 }
  0x91   :  { %2506 = vmatpush1.bf16.msra.mxu0 %v3873_v34  ;;  %2635 = vmatpush1.bf16.msra.mxu1 %v3875_v35  ;;  %v3908_v62 = vcombine.high %v180_v57, %v184_v58  ;;  %v191_v0 = vld [vmem:[#allocation5 + $0x220] sm:$0xff]  ;;  %v188_v1 = vld [vmem:[#allocation5 + $0x208] sm:$0xff]  ;;  %v3907_v4 = vcombine.low %v180_v57, %v184_v58 }
  0x92   :  { %2507 = vmatprep.subr.bf16.mxu0 %v3882_v36  ;;  %2636 = vmatprep.subr.bf16.mxu1 %v3884_v37  ;;  %v192_v2 = vld [vmem:[#allocation5 + $0x228] sm:$0xff]  ;;  %v3914_v5 = vcombine.high %v187_v63, %v191_v0  ;;  %v195_v7 = vld [vmem:[#allocation5 + $0x240] sm:$0xff]  ;;  %v3913_v11 = vcombine.low %v187_v63, %v191_v0 }
  0x93   :  { %v3916_v6 = vcombine.high %v188_v1, %v192_v2  ;;  %v199_v8 = vld [vmem:[#allocation5 + $0x260] sm:$0xff]  ;;  %v196_v9 = vld [vmem:[#allocation5 + $0x248] sm:$0xff]  ;;  %v3915_v12 = vcombine.low %v188_v1, %v192_v2 }
  0x94   :  { %v200_v10 = vld [vmem:[#allocation5 + $0x268] sm:$0xff]  ;;  %v3922_v13 = vcombine.high %v195_v7, %v199_v8  ;;  %v203_v15 = vld [vmem:[#allocation5 + $0x280] sm:$0xff]  ;;  %v3921_v19 = vcombine.low %v195_v7, %v199_v8 }
  0x95   :  { %2508 = vmatpush1.bf16.msra.mxu0 %v3881_v42  ;;  %2637 = vmatpush1.bf16.msra.mxu1 %v3883_v43  ;;  %v3924_v14 = vcombine.high %v196_v9, %v200_v10  ;;  %v207_v16 = vld [vmem:[#allocation5 + $0x2a0] sm:$0xff]  ;;  %v204_v17 = vld [vmem:[#allocation5 + $0x288] sm:$0xff]  ;;  %v3923_v20 = vcombine.low %v196_v9, %v200_v10 }
  0x96   :  { %2509 = vmatprep.subr.bf16.mxu0 %v3890_v44  ;;  %2638 = vmatprep.subr.bf16.mxu1 %v3892_v45  ;;  %v208_v18 = vld [vmem:[#allocation5 + $0x2a8] sm:$0xff]  ;;  %v3930_v21 = vcombine.high %v203_v15, %v207_v16  ;;  %v211_v23 = vld [vmem:[#allocation5 + $0x2c0] sm:$0xff]  ;;  %v3929_v27 = vcombine.low %v203_v15, %v207_v16 }
  0x97   :  { %v3932_v22 = vcombine.high %v204_v17, %v208_v18  ;;  %v215_v24 = vld [vmem:[#allocation5 + $0x2e0] sm:$0xff]  ;;  %v212_v25 = vld [vmem:[#allocation5 + $0x2c8] sm:$0xff]  ;;  %v3931_v28 = vcombine.low %v204_v17, %v208_v18  ;;  %v4493_v18 = vld [vmem:[#allocation2 + $0xc] ss:$24 sps:$4 sm:$0xff]  }
  0x98   :  { %v216_v26 = vld [vmem:[#allocation5 + $0x2e8] sm:$0xff]  ;;  %v3938_v29 = vcombine.high %v211_v23, %v215_v24  ;;  %v219_v31 = vld [vmem:[#allocation5 + $0x300] sm:$0xff]  ;;  %v3937_v35 = vcombine.low %v211_v23, %v215_v24 }
  0x99   :  { %2510 = vmatpush1.bf16.msra.mxu0 %v3889_v50  ;;  %2639 = vmatpush1.bf16.msra.mxu1 %v3891_v51  ;;  %v3940_v30 = vcombine.high %v212_v25, %v216_v26  ;;  %v223_v32 = vld [vmem:[#allocation5 + $0x320] sm:$0xff]  ;;  %v220_v33 = vld [vmem:[#allocation5 + $0x308] sm:$0xff]  ;;  %v3939_v36 = vcombine.low %v212_v25, %v216_v26 }
  0x9a   :  { %2511 = vmatprep.subr.bf16.mxu0 %v3898_v52  ;;  %2640 = vmatprep.subr.bf16.mxu1 %v3900_v53  ;;  %v224_v34 = vld [vmem:[#allocation5 + $0x328] sm:$0xff]  ;;  %v3946_v37 = vcombine.high %v219_v31, %v223_v32  ;;  %v227_v39 = vld [vmem:[#allocation5 + $0x340] sm:$0xff]  ;;  %v3945_v43 = vcombine.low %v219_v31, %v223_v32 }
  0x9b   :  { %v3948_v38 = vcombine.high %v220_v33, %v224_v34  ;;  %v231_v40 = vld [vmem:[#allocation5 + $0x360] sm:$0xff]  ;;  %v228_v41 = vld [vmem:[#allocation5 + $0x348] sm:$0xff]  ;;  %v3947_v44 = vcombine.low %v220_v33, %v224_v34 }
  0x9c   :  { %v232_v42 = vld [vmem:[#allocation5 + $0x368] sm:$0xff]  ;;  %v3954_v45 = vcombine.high %v227_v39, %v231_v40  ;;  %v235_v47 = vld [vmem:[#allocation5 + $0x380] sm:$0xff]  ;;  %v3953_v51 = vcombine.low %v227_v39, %v231_v40 }
  0x9d   :  { %2512 = vmatpush1.bf16.msra.mxu0 %v3897_v59  ;;  %2641 = vmatpush1.bf16.msra.mxu1 %v3899_v60  ;;  %v3956_v46 = vcombine.high %v228_v41, %v232_v42  ;;  %v239_v48 = vld [vmem:[#allocation5 + $0x3a0] sm:$0xff]  ;;  %v236_v49 = vld [vmem:[#allocation5 + $0x388] sm:$0xff]  ;;  %v3955_v52 = vcombine.low %v228_v41, %v232_v42 }
  0x9e   :  { %2513 = vmatprep.subr.bf16.mxu0 %v3906_v61  ;;  %2642 = vmatprep.subr.bf16.mxu1 %v3908_v62  ;;  %v240_v50 = vld [vmem:[#allocation5 + $0x3a8] sm:$0xff]  ;;  %v3962_v53 = vcombine.high %v235_v47, %v239_v48  ;;  %v243_v55 = vld [vmem:[#allocation5 + $0x3c0] sm:$0xff]  ;;  %v3961_v59 = vcombine.low %v235_v47, %v239_v48 }
  0x9f   :  { %v3964_v54 = vcombine.high %v236_v49, %v240_v50  ;;  %v247_v56 = vld [vmem:[#allocation5 + $0x3e0] sm:$0xff]  ;;  %v244_v57 = vld [vmem:[#allocation5 + $0x3c8] sm:$0xff]  ;;  %v3963_v60 = vcombine.low %v236_v49, %v240_v50 }
  0xa0   :  { %v248_v58 = vld [vmem:[#allocation5 + $0x3e8] sm:$0xff]  ;;  %v3970_v61 = vcombine.high %v243_v55, %v247_v56  ;;  %v251_v63 = vld [vmem:[#allocation5 + $0x400] sm:$0xff] }
  0xa1   :  { %2514 = vmatpush1.bf16.msra.mxu0 %v3905_v3  ;;  %2643 = vmatpush1.bf16.msra.mxu1 %v3907_v4  ;;  %v3972_v62 = vcombine.high %v244_v57, %v248_v58  ;;  %v255_v0 = vld [vmem:[#allocation5 + $0x420] sm:$0xff]  ;;  %v252_v1 = vld [vmem:[#allocation5 + $0x408] sm:$0xff]  ;;  %v3969_v3 = vcombine.low %v243_v55, %v247_v56  ;;  %v3971_v4 = vcombine.low %v244_v57, %v248_v58 }
  0xa2   :  { %2515 = vmatprep.subr.bf16.mxu0 %v3914_v5  ;;  %2644 = vmatprep.subr.bf16.mxu1 %v3916_v6  ;;  %v256_v2 = vld [vmem:[#allocation5 + $0x428] sm:$0xff]  ;;  %v3978_v5 = vcombine.high %v251_v63, %v255_v0  ;;  %v259_v7 = vld [vmem:[#allocation5 + $0x440] sm:$0xff] }
  0xa3   :  { %v3980_v6 = vcombine.high %v252_v1, %v256_v2  ;;  %v263_v8 = vld [vmem:[#allocation5 + $0x460] sm:$0xff]  ;;  %v4492_v9 = vld [vmem:[#allocation2] ss:$24 sps:$4 sm:$0xff]  }
  0xa4   :  { %v260_v10 = vld [vmem:[#allocation5 + $0x448] sm:$0xff]  ;;  %v267_v15 = vld [vmem:[#allocation5 + $0x480] sm:$0xff] }
  0xa5   :  { %2516 = vmatpush1.bf16.msra.mxu0 %v3913_v11  ;;  %2645 = vmatpush1.bf16.msra.mxu1 %v3915_v12  ;;  %v264_v11 = vld [vmem:[#allocation5 + $0x468] sm:$0xff]  ;;  %v3977_v12 = vcombine.low %v251_v63, %v255_v0  ;;  %v271_v17 = vld [vmem:[#allocation5 + $0x4a0] sm:$0xff] }
  0xa6   :  { %2517 = vmatprep.subr.bf16.mxu0 %v3922_v13  ;;  %2646 = vmatprep.subr.bf16.mxu1 %v3924_v14  ;;  %v3979_v13 = vcombine.low %v252_v1, %v256_v2  ;;  %v3986_v14 = vcombine.high %v259_v7, %v263_v8  ;;  %v3988_v16 = vcombine.high %v260_v10, %v264_v11  ;;  %v275_v24 = vld [vmem:[#allocation5 + $0x4c0] sm:$0xff]  ;;  %v284_v34 = vld [vmem:[#allocation5 + $0x508] sm:$0xff] }
  0xa7   :  { %v3994_v23 = vcombine.high %v267_v15, %v271_v17  ;;  %v279_v25 = vld [vmem:[#allocation5 + $0x4e0] sm:$0xff]  ;;  %v292_v42 = vld [vmem:[#allocation5 + $0x548] sm:$0xff] }
  0xa8   :  { %v4002_v31 = vcombine.high %v275_v24, %v279_v25  ;;  %v283_v32 = vld [vmem:[#allocation5 + $0x500] sm:$0xff]  ;;  %v300_v50 = vld [vmem:[#allocation5 + $0x588] sm:$0xff] }
  0xa9   :  { %2518 = vmatpush1.bf16.msra.mxu0 %v3921_v19  ;;  %2647 = vmatpush1.bf16.msra.mxu1 %v3923_v20  ;;  %v268_v19 = vld [vmem:[#allocation5 + $0x488] sm:$0xff]  ;;  %v287_v33 = vld [vmem:[#allocation5 + $0x520] sm:$0xff] }
  0xaa   :  { %2519 = vmatprep.subr.bf16.mxu0 %v3930_v21  ;;  %2648 = vmatprep.subr.bf16.mxu1 %v3932_v22  ;;  %v272_v20 = vld [vmem:[#allocation5 + $0x4a8] sm:$0xff]  ;;  %v3985_v21 = vcombine.low %v259_v7, %v263_v8  ;;  %v3987_v22 = vcombine.low %v260_v10, %v264_v11  ;;  %v4010_v39 = vcombine.high %v283_v32, %v287_v33  ;;  %v291_v40 = vld [vmem:[#allocation5 + $0x540] sm:$0xff] }
  0xab   :  { %v3996_v26 = vcombine.high %v268_v19, %v272_v20  ;;  %v295_v41 = vld [vmem:[#allocation5 + $0x560] sm:$0xff]  ;;  %v308_v58 = vld [vmem:[#allocation5 + $0x5c8] sm:$0xff] }
  0xac   :  { %v4018_v47 = vcombine.high %v291_v40, %v295_v41  ;;  %v299_v48 = vld [vmem:[#allocation5 + $0x580] sm:$0xff]  ;;  %v316_v2 = vld [vmem:[#allocation5 + $0x608] sm:$0xff] }
  0xad   :  { %2520 = vmatpush1.bf16.msra.mxu0 %v3929_v27  ;;  %2649 = vmatpush1.bf16.msra.mxu1 %v3931_v28  ;;  %v276_v27 = vld [vmem:[#allocation5 + $0x4c8] sm:$0xff]  ;;  %v303_v49 = vld [vmem:[#allocation5 + $0x5a0] sm:$0xff] }
  0xae   :  { %2521 = vmatprep.subr.bf16.mxu0 %v3938_v29  ;;  %2650 = vmatprep.subr.bf16.mxu1 %v3940_v30  ;;  %v280_v28 = vld [vmem:[#allocation5 + $0x4e8] sm:$0xff]  ;;  %v3993_v29 = vcombine.low %v267_v15, %v271_v17  ;;  %v3995_v30 = vcombine.low %v268_v19, %v272_v20  ;;  %v4026_v55 = vcombine.high %v299_v48, %v303_v49  ;;  %v307_v56 = vld [vmem:[#allocation5 + $0x5c0] sm:$0xff] }
  0xaf   :  { %v311_v57 = vld [vmem:[#allocation5 + $0x5e0] sm:$0xff]  ;;  %v324_v10 = vld [vmem:[#allocation5 + $0x648] sm:$0xff] }
  0xb0   :  { %v4034_v63 = vcombine.high %v307_v56, %v311_v57  ;;  %v315_v0 = vld [vmem:[#allocation5 + $0x600] sm:$0xff]  ;;  %v336_v20 = vld [vmem:[#allocation5 + $0x6a8] sm:$0xff] }
  0xb1   :  { %2522 = vmatpush1.bf16.msra.mxu0 %v3937_v35  ;;  %2651 = vmatpush1.bf16.msra.mxu1 %v3939_v36  ;;  %v4004_v35 = vcombine.high %v276_v27, %v280_v28  ;;  %v288_v36 = vld [vmem:[#allocation5 + $0x528] sm:$0xff]  ;;  %v319_v1 = vld [vmem:[#allocation5 + $0x620] sm:$0xff] }
  0xb2   :  { %2523 = vmatprep.subr.bf16.mxu0 %v3946_v37  ;;  %2652 = vmatprep.subr.bf16.mxu1 %v3948_v38  ;;  %v4001_v37 = vcombine.low %v275_v24, %v279_v25  ;;  %v4003_v38 = vcombine.low %v276_v27, %v280_v28  ;;  %v4042_v7 = vcombine.high %v315_v0, %v319_v1  ;;  %v323_v8 = vld [vmem:[#allocation5 + $0x640] sm:$0xff]  ;;  %v344_v28 = vld [vmem:[#allocation5 + $0x6e8] sm:$0xff] }
  0xb3   :  { %v335_v17 = vld [vmem:[#allocation5 + $0x6a0] sm:$0xff] }
  0xb4   :  { %v339_v24 = vld [vmem:[#allocation5 + $0x6c0] sm:$0xff] }
  0xb5   :  { %2524 = vmatpush1.bf16.msra.mxu0 %v3945_v43  ;;  %2653 = vmatpush1.bf16.msra.mxu1 %v3947_v44  ;;  %v4012_v43 = vcombine.high %v284_v34, %v288_v36  ;;  %v296_v44 = vld [vmem:[#allocation5 + $0x568] sm:$0xff]  ;;  %v343_v25 = vld [vmem:[#allocation5 + $0x6e0] sm:$0xff] }
  0xb6   :  { %2525 = vmatprep.subr.bf16.mxu0 %v3954_v45  ;;  %2654 = vmatprep.subr.bf16.mxu1 %v3956_v46  ;;  %v4009_v45 = vcombine.low %v283_v32, %v287_v33  ;;  %v4011_v46 = vcombine.low %v284_v34, %v288_v36  ;;  %v347_v32 = vld [vmem:[#allocation5 + $0x700] sm:$0xff]  ;;  %v348_v34 = vld [vmem:[#allocation5 + $0x708] sm:$0xff] }
  0xb7   :  { %v351_v33 = vld [vmem:[#allocation5 + $0x720] sm:$0xff]  ;;  %v352_v36 = vld [vmem:[#allocation5 + $0x728] sm:$0xff] }
  0xb9   :  { %2526 = vmatpush1.bf16.msra.mxu0 %v3953_v51  ;;  %2655 = vmatpush1.bf16.msra.mxu1 %v3955_v52  ;;  %v4020_v51 = vcombine.high %v292_v42, %v296_v44  ;;  %v304_v52 = vld [vmem:[#allocation5 + $0x5a8] sm:$0xff] }
  0xba   :  { %2527 = vmatprep.subr.bf16.mxu0 %v3962_v53  ;;  %2656 = vmatprep.subr.bf16.mxu1 %v3964_v54  ;;  %v4017_v53 = vcombine.low %v291_v40, %v295_v41  ;;  %v4019_v54 = vcombine.low %v292_v42, %v296_v44  ;;  %v355_v40 = vld [vmem:[#allocation5 + $0x740] sm:$0xff]  ;;  %v356_v42 = vld [vmem:[#allocation5 + $0x748] sm:$0xff] }
  0xbb   :  { %v359_v41 = vld [vmem:[#allocation5 + $0x760] sm:$0xff]  ;;  %v360_v44 = vld [vmem:[#allocation5 + $0x768] sm:$0xff] }
  0xbd   :  { %2528 = vmatpush1.bf16.msra.mxu0 %v3961_v59  ;;  %2657 = vmatpush1.bf16.msra.mxu1 %v3963_v60  ;;  %v4028_v59 = vcombine.high %v300_v50, %v304_v52  ;;  %v312_v60 = vld [vmem:[#allocation5 + $0x5e8] sm:$0xff] }
  0xbe   :  { %2529 = vmatprep.subr.bf16.mxu0 %v3970_v61  ;;  %2658 = vmatprep.subr.bf16.mxu1 %v3972_v62  ;;  %v4025_v61 = vcombine.low %v299_v48, %v303_v49  ;;  %v4027_v62 = vcombine.low %v300_v50, %v304_v52  ;;  %v363_v48 = vld [vmem:[#allocation5 + $0x780] sm:$0xff]  ;;  %v364_v50 = vld [vmem:[#allocation5 + $0x788] sm:$0xff] }
  0xbf   :  { %v367_v49 = vld [vmem:[#allocation5 + $0x7a0] sm:$0xff]  ;;  %v368_v52 = vld [vmem:[#allocation5 + $0x7a8] sm:$0xff] }
  0xc1   :  { %2530 = vmatpush1.bf16.msra.mxu0 %v3969_v3  ;;  %2659 = vmatpush1.bf16.msra.mxu1 %v3971_v4  ;;  %v4036_v3 = vcombine.high %v308_v58, %v312_v60  ;;  %v320_v4 = vld [vmem:[#allocation5 + $0x628] sm:$0xff] }
  0xc2   :  { %2542 = vmatprep.subr.bf16.mxu0 %v3978_v5  ;;  %2671 = vmatprep.subr.bf16.mxu1 %v3980_v6  ;;  %v4033_v5 = vcombine.low %v307_v56, %v311_v57  ;;  %v4035_v6 = vcombine.low %v308_v58, %v312_v60  ;;  %v4044_v11 = vcombine.high %v316_v2, %v320_v4  ;;  %v371_v56 = vld [vmem:[#allocation5 + $0x7c0] sm:$0xff]  ;;  %v372_v58 = vld [vmem:[#allocation5 + $0x7c8] sm:$0xff] }
  0xc3   :  { %v375_v57 = vld [vmem:[#allocation5 + $0x7e0] sm:$0xff]  ;;  %v376_v60 = vld [vmem:[#allocation5 + $0x7e8] sm:$0xff] }
  0xc4   :  { %2532 = vmatmul.mubr.bf16.vlgmr.msra.gmra.mrb[0].mxu0 %v4492_v9  ;;  %2661 = vmatmul.mubr.bf16.vlgmr.msra.gmra.mrb[0].mxu1 %v4492_v9  ;;  %v327_v9 = vld [vmem:[#allocation5 + $0x660] sm:$0xff] }
  0xc5   :  { %2543 = vmatpush1.bf16.msra.mxu0 %v3977_v12  ;;  %2672 = vmatpush1.bf16.msra.mxu1 %v3979_v13  ;;  %v328_v12 = vld [vmem:[#allocation5 + $0x668] sm:$0xff]  ;;  %v4041_v13 = vcombine.low %v315_v0, %v319_v1  ;;  %v4050_v15 = vcombine.high %v323_v8, %v327_v9  ;;  %v379_v0 = vld [vmem:[#allocation5 + $0x800] sm:$0xff] }
  0xc6   :  { %2544 = vmatprep.subr.bf16.mxu0 %v3986_v14  ;;  %2673 = vmatprep.subr.bf16.mxu1 %v3988_v16  ;;  %v4043_v14 = vcombine.low %v316_v2, %v320_v4  ;;  %v331_v16 = vld [vmem:[#allocation5 + $0x680] sm:$0xff]  ;;  %v4052_v19 = vcombine.high %v324_v10, %v328_v12  ;;  %v380_v2 = vld [vmem:[#allocation5 + $0x808] sm:$0xff] }
  0xc7   :  { %2574 = vmatprep.mubr.bf16.mxu0 %v4493_v18  ;;  %2703 = vmatprep.mubr.bf16.mxu1 %v4493_v18  ;;  %v332_v18 = vld [vmem:[#allocation5 + $0x688] sm:$0xff]  ;;  %v383_v1 = vld [vmem:[#allocation5 + $0x820] sm:$0xff] }
  0xc8   :  { %v4060_v27 = vcombine.high %v332_v18, %v336_v20  ;;  %v384_v4 = vld [vmem:[#allocation5 + $0x828] sm:$0xff] }
  0xc9   :  { %2545 = vmatpush1.bf16.msra.mxu0 %v3985_v21  ;;  %2674 = vmatpush1.bf16.msra.mxu1 %v3987_v22  ;;  %v4049_v21 = vcombine.low %v323_v8, %v327_v9  ;;  %v4051_v22 = vcombine.low %v324_v10, %v328_v12  ;;  %v4495_v8 = vld [vmem:[#allocation2 + $0x8] ss:$24 sps:$4 sm:$0xff]   ;;  %v387_v9 = vld [vmem:[#allocation5 + $0x840] sm:$0xff]  ;;  %v4108_v12 = vcombine.high %v380_v2, %v384_v4 }
  0xca   :  { %2546 = vmatprep.subr.bf16.mxu0 %v3994_v23  ;;  %2675 = vmatprep.subr.bf16.mxu1 %v3996_v26  ;;  %v4058_v23 = vcombine.high %v331_v16, %v335_v17  ;;  %v340_v26 = vld [vmem:[#allocation5 + $0x6c8] sm:$0xff]  ;;  %v391_v10 = vld [vmem:[#allocation5 + $0x860] sm:$0xff] }
  0xcd   :  { %2547 = vmatpush1.bf16.msra.mxu0 %v3993_v29  ;;  %2676 = vmatpush1.bf16.msra.mxu1 %v3995_v30  ;;  %v4057_v29 = vcombine.low %v331_v16, %v335_v17  ;;  %v4059_v30 = vcombine.low %v332_v18, %v336_v20  ;;  %v4107_v16 = vcombine.low %v380_v2, %v384_v4  ;;  %v399_v18 = vld [vmem:[#allocation5 + $0x8a0] sm:$0xff]  ;;  %v400_v20 = vld [vmem:[#allocation5 + $0x8a8] sm:$0xff] }
  0xce   :  { %2548 = vmatprep.subr.bf16.mxu0 %v4002_v31  ;;  %2677 = vmatprep.subr.bf16.mxu1 %v4004_v35  ;;  %v4066_v31 = vcombine.high %v339_v24, %v343_v25  ;;  %v4068_v35 = vcombine.high %v340_v26, %v344_v28  ;;  %v4114_v17 = vcombine.high %v387_v9, %v391_v10  ;;  %v447_v4 = vld [vmem:[#allocation5 + $0xa20] sm:$0xff] }
  0xd1   :  { %2549 = vmatpush1.bf16.msra.mxu0 %v4001_v37  ;;  %2678 = vmatpush1.bf16.msra.mxu1 %v4003_v38  ;;  %v4065_v37 = vcombine.low %v339_v24, %v343_v25  ;;  %v4067_v38 = vcombine.low %v340_v26, %v344_v28  ;;  %v403_v26 = vld [vmem:[#allocation5 + $0x8c0] sm:$0xff]  ;;  %v404_v28 = vld [vmem:[#allocation5 + $0x8c8] sm:$0xff] }
  0xd2   :  { %2550 = vmatprep.subr.bf16.mxu0 %v4010_v39  ;;  %2679 = vmatprep.subr.bf16.mxu1 %v4012_v43  ;;  %v4074_v39 = vcombine.high %v347_v32, %v351_v33  ;;  %v4076_v43 = vcombine.high %v348_v34, %v352_v36 }
  0xd5   :  { %2551 = vmatpush1.bf16.msra.mxu0 %v4009_v45  ;;  %2680 = vmatpush1.bf16.msra.mxu1 %v4011_v46  ;;  %v4073_v45 = vcombine.low %v347_v32, %v351_v33  ;;  %v4075_v46 = vcombine.low %v348_v34, %v352_v36  ;;  %v411_v34 = vld [vmem:[#allocation5 + $0x900] sm:$0xff]  ;;  %v412_v36 = vld [vmem:[#allocation5 + $0x908] sm:$0xff] }
  0xd6   :  { %2552 = vmatprep.subr.bf16.mxu0 %v4018_v47  ;;  %2681 = vmatprep.subr.bf16.mxu1 %v4020_v51  ;;  %v4082_v47 = vcombine.high %v355_v40, %v359_v41  ;;  %v4084_v51 = vcombine.high %v356_v42, %v360_v44 }
  0xd9   :  { %2553 = vmatpush1.bf16.msra.mxu0 %v4017_v53  ;;  %2682 = vmatpush1.bf16.msra.mxu1 %v4019_v54  ;;  %v4081_v53 = vcombine.low %v355_v40, %v359_v41  ;;  %v4083_v54 = vcombine.low %v356_v42, %v360_v44  ;;  %v423_v44 = vld [vmem:[#allocation5 + $0x960] sm:$0xff] }
  0xda   :  { %2554 = vmatprep.subr.bf16.mxu0 %v4026_v55  ;;  %2683 = vmatprep.subr.bf16.mxu1 %v4028_v59  ;;  %v4090_v55 = vcombine.high %v363_v48, %v367_v49  ;;  %v4092_v59 = vcombine.high %v364_v50, %v368_v52 }
  0xdd   :  { %2555 = vmatpush1.bf16.msra.mxu0 %v4025_v61  ;;  %2684 = vmatpush1.bf16.msra.mxu1 %v4027_v62  ;;  %v4089_v61 = vcombine.low %v363_v48, %v367_v49  ;;  %v4091_v62 = vcombine.low %v364_v50, %v368_v52  ;;  %v431_v52 = vld [vmem:[#allocation5 + $0x9a0] sm:$0xff] }
  0xde   :  { %2556 = vmatprep.subr.bf16.mxu0 %v4034_v63  ;;  %2685 = vmatprep.subr.bf16.mxu1 %v4036_v3  ;;  %v4098_v63 = vcombine.high %v371_v56, %v375_v57  ;;  %v4100_v3 = vcombine.high %v372_v58, %v376_v60 }
  0xe1   :  { %2557 = vmatpush1.bf16.msra.mxu0 %v4033_v5  ;;  %2686 = vmatpush1.bf16.msra.mxu1 %v4035_v6  ;;  %v4097_v5 = vcombine.low %v371_v56, %v375_v57  ;;  %v4099_v6 = vcombine.low %v372_v58, %v376_v60  ;;  %v439_v60 = vld [vmem:[#allocation5 + $0x9e0] sm:$0xff] }
  0xe2   :  { %2558 = vmatprep.subr.bf16.mxu0 %v4042_v7  ;;  %2687 = vmatprep.subr.bf16.mxu1 %v4044_v11  ;;  %v4106_v7 = vcombine.high %v379_v0, %v383_v1  ;;  %v388_v11 = vld [vmem:[#allocation5 + $0x848] sm:$0xff] }
  0xe5   :  { %2559 = vmatpush1.bf16.msra.mxu0 %v4041_v13  ;;  %2688 = vmatpush1.bf16.msra.mxu1 %v4043_v14  ;;  %v392_v13 = vld [vmem:[#allocation5 + $0x868] sm:$0xff]  ;;  %v4105_v14 = vcombine.low %v379_v0, %v383_v1 }
  0xe6   :  { %2560 = vmatprep.subr.bf16.mxu0 %v4050_v15  ;;  %2689 = vmatprep.subr.bf16.mxu1 %v4052_v19  ;;  %v395_v15 = vld [vmem:[#allocation5 + $0x880] sm:$0xff]  ;;  %v396_v19 = vld [vmem:[#allocation5 + $0x888] sm:$0xff]  ;;  %v4115_v24 = vcombine.low %v388_v11, %v392_v13 }
  0xe7   :  { %v4122_v25 = vcombine.high %v395_v15, %v399_v18  ;;  %v4123_v32 = vcombine.low %v396_v19, %v400_v20 }
  0xe9   :  { %2561 = vmatpush1.bf16.msra.mxu0 %v4049_v21  ;;  %2690 = vmatpush1.bf16.msra.mxu1 %v4051_v22  ;;  %v4116_v21 = vcombine.high %v388_v11, %v392_v13  ;;  %v4496_v22 = vld [vmem:[#allocation2 + $0x14] ss:$24 sps:$4 sm:$0xff]   ;;  %v452_v13 = vld [vmem:[#allocation5 + $0xa48] sm:$0xff] }
  0xea   :  { %2562 = vmatprep.subr.bf16.mxu0 %v4058_v23  ;;  %2691 = vmatprep.subr.bf16.mxu1 %v4060_v27  ;;  %v4113_v23 = vcombine.low %v387_v9, %v391_v10  ;;  %v407_v27 = vld [vmem:[#allocation5 + $0x8e0] sm:$0xff] }
  0xeb   :  { %v4130_v33 = vcombine.high %v403_v26, %v407_v27  ;;  %v451_v11 = vld [vmem:[#allocation5 + $0xa40] sm:$0xff] }
  0xed   :  { %2563 = vmatpush1.bf16.msra.mxu0 %v4057_v29  ;;  %2692 = vmatpush1.bf16.msra.mxu1 %v4059_v30  ;;  %v4124_v29 = vcombine.high %v396_v19, %v400_v20  ;;  %v408_v30 = vld [vmem:[#allocation5 + $0x8e8] sm:$0xff]  ;;  %v459_v19 = vld [vmem:[#allocation5 + $0xa80] sm:$0xff] }
  0xee   :  { %2564 = vmatprep.subr.bf16.mxu0 %v4066_v31  ;;  %2693 = vmatprep.subr.bf16.mxu1 %v4068_v35  ;;  %v4121_v31 = vcombine.low %v395_v15, %v399_v18  ;;  %v415_v35 = vld [vmem:[#allocation5 + $0x920] sm:$0xff]  ;;  %v4131_v40 = vcombine.low %v404_v28, %v408_v30 }
  0xef   :  { %v4138_v41 = vcombine.high %v411_v34, %v415_v35  ;;  %v463_v20 = vld [vmem:[#allocation5 + $0xaa0] sm:$0xff] }
  0xf1   :  { %2565 = vmatpush1.bf16.msra.mxu0 %v4065_v37  ;;  %2694 = vmatpush1.bf16.msra.mxu1 %v4067_v38  ;;  %v4132_v37 = vcombine.high %v404_v28, %v408_v30  ;;  %v416_v38 = vld [vmem:[#allocation5 + $0x928] sm:$0xff]  ;;  %v471_v28 = vld [vmem:[#allocation5 + $0xae0] sm:$0xff] }
  0xf2   :  { %2566 = vmatprep.subr.bf16.mxu0 %v4074_v39  ;;  %2695 = vmatprep.subr.bf16.mxu1 %v4076_v43  ;;  %v4129_v39 = vcombine.low %v403_v26, %v407_v27  ;;  %v4140_v42 = vcombine.high %v412_v36, %v416_v38  ;;  %v419_v43 = vld [vmem:[#allocation5 + $0x940] sm:$0xff]  ;;  %v4139_v48 = vcombine.low %v412_v36, %v416_v38  ;;  %v472_v30 = vld [vmem:[#allocation5 + $0xae8] sm:$0xff] }
  0xf3   :  { %v4146_v49 = vcombine.high %v419_v43, %v423_v44  ;;  %v467_v27 = vld [vmem:[#allocation5 + $0xac0] sm:$0xff]  ;;  %v480_v38 = vld [vmem:[#allocation5 + $0xb28] sm:$0xff] }
  0xf4   :  { %v479_v36 = vld [vmem:[#allocation5 + $0xb20] sm:$0xff] }
  0xf5   :  { %2567 = vmatpush1.bf16.msra.mxu0 %v4073_v45  ;;  %2696 = vmatpush1.bf16.msra.mxu1 %v4075_v46  ;;  %v420_v45 = vld [vmem:[#allocation5 + $0x948] sm:$0xff] }
  0xf6   :  { %2568 = vmatprep.subr.bf16.mxu0 %v4082_v47  ;;  %2697 = vmatprep.subr.bf16.mxu1 %v4084_v51  ;;  %v424_v46 = vld [vmem:[#allocation5 + $0x968] sm:$0xff]  ;;  %v4137_v47 = vcombine.low %v411_v34, %v415_v35  ;;  %v427_v51 = vld [vmem:[#allocation5 + $0x980] sm:$0xff] }
  0xf7   :  { %v4148_v50 = vcombine.high %v420_v45, %v424_v46  ;;  %v4147_v56 = vcombine.low %v420_v45, %v424_v46  ;;  %v4154_v57 = vcombine.high %v427_v51, %v431_v52  ;;  %v475_v35 = vld [vmem:[#allocation5 + $0xb00] sm:$0xff]  ;;  %v484_v45 = vld [vmem:[#allocation5 + $0xb48] sm:$0xff] }
  0xf8   :  { %v488_v46 = vld [vmem:[#allocation5 + $0xb68] sm:$0xff] }
  0xf9   :  { %2569 = vmatpush1.bf16.msra.mxu0 %v4081_v53  ;;  %2698 = vmatpush1.bf16.msra.mxu1 %v4083_v54  ;;  %v428_v53 = vld [vmem:[#allocation5 + $0x988] sm:$0xff] }
  0xfa   :  { %2570 = vmatprep.subr.bf16.mxu0 %v4090_v55  ;;  %2699 = vmatprep.subr.bf16.mxu1 %v4092_v59  ;;  %v432_v54 = vld [vmem:[#allocation5 + $0x9a8] sm:$0xff]  ;;  %v4145_v55 = vcombine.low %v419_v43, %v423_v44  ;;  %v435_v59 = vld [vmem:[#allocation5 + $0x9c0] sm:$0xff] }
  0xfb   :  { %v4156_v58 = vcombine.high %v428_v53, %v432_v54  ;;  %v4155_v0 = vcombine.low %v428_v53, %v432_v54  ;;  %v4162_v1 = vcombine.high %v435_v59, %v439_v60  ;;  %v483_v43 = vld [vmem:[#allocation5 + $0xb40] sm:$0xff]  ;;  %v492_v53 = vld [vmem:[#allocation5 + $0xb88] sm:$0xff] }
  0xfc   :  { %v487_v44 = vld [vmem:[#allocation5 + $0xb60] sm:$0xff]  ;;  %v496_v54 = vld [vmem:[#allocation5 + $0xba8] sm:$0xff] }
  0xfd   :  { %2571 = vmatpush1.bf16.msra.mxu0 %v4089_v61  ;;  %2700 = vmatpush1.bf16.msra.mxu1 %v4091_v62  ;;  %v436_v61 = vld [vmem:[#allocation5 + $0x9c8] sm:$0xff] }
  0xfe   :  { %2572 = vmatprep.subr.bf16.mxu0 %v4098_v63  ;;  %2701 = vmatprep.subr.bf16.mxu1 %v4100_v3  ;;  %v440_v62 = vld [vmem:[#allocation5 + $0x9e8] sm:$0xff]  ;;  %v4153_v63 = vcombine.low %v427_v51, %v431_v52  ;;  %v443_v3 = vld [vmem:[#allocation5 + $0xa00] sm:$0xff] }
  0xff   :  { %v4164_v2 = vcombine.high %v436_v61, %v440_v62  ;;  %v4170_v9 = vcombine.high %v443_v3, %v447_v4  ;;  %v4169_v15 = vcombine.low %v443_v3, %v447_v4  ;;  %v491_v51 = vld [vmem:[#allocation5 + $0xb80] sm:$0xff]  ;;  %v125_v3 = vld [vmem:[#allocation5 + $0x10] sm:$0xff] }
 0x100   :  { %v495_v52 = vld [vmem:[#allocation5 + $0xba0] sm:$0xff]  ;;  %v129_v4 = vld [vmem:[#allocation5 + $0x30] sm:$0xff] }
 0x101   :  { %2573 = vmatpush1.bf16.msra.mxu0 %v4097_v5  ;;  %2702 = vmatpush1.bf16.msra.mxu1 %v4099_v6  ;;  %v444_v5 = vld [vmem:[#allocation5 + $0xa08] sm:$0xff] }
 0x102   :  { %2585 = vmatprep.subr.bf16.mxu0 %v4106_v7  ;;  %2714 = vmatprep.subr.bf16.mxu1 %v4108_v12  ;;  %v448_v6 = vld [vmem:[#allocation5 + $0xa28] sm:$0xff]  ;;  %v4161_v7 = vcombine.low %v435_v59, %v439_v60  ;;  %v455_v12 = vld [vmem:[#allocation5 + $0xa60] sm:$0xff] }
 0x103   :  { %v4172_v10 = vcombine.high %v444_v5, %v448_v6  ;;  %v499_v59 = vld [vmem:[#allocation5 + $0xbc0] sm:$0xff] }
 0x104   :  { %2575 = vmatmul.mubr.bf16.vlgmr.msra.gmra.mrb[0].mxu0 %v4495_v8  ;;  %2704 = vmatmul.mubr.bf16.vlgmr.msra.gmra.mrb[0].mxu1 %v4495_v8  ;;  %v4163_v8 = vcombine.low %v436_v61, %v440_v62  ;;  %v503_v60 = vld [vmem:[#allocation5 + $0xbe0] sm:$0xff]  ;;  %v500_v61 = vld [vmem:[#allocation5 + $0xbc8] sm:$0xff] }
 0x105   :  { %2586 = vmatpush1.bf16.msra.mxu0 %v4105_v14  ;;  %2715 = vmatpush1.bf16.msra.mxu1 %v4107_v16  ;;  %v456_v14 = vld [vmem:[#allocation5 + $0xa68] sm:$0xff]  ;;  %v4171_v16 = vcombine.low %v444_v5, %v448_v6  ;;  %v126_v5 = vld [vmem:[#allocation5 + $0x18] sm:$0xff] }
 0x106   :  { %2587 = vmatprep.subr.bf16.mxu0 %v4114_v17  ;;  %2716 = vmatprep.subr.bf16.mxu1 %v4116_v21  ;;  %v4178_v17 = vcombine.high %v451_v11, %v455_v12  ;;  %v4180_v18 = vcombine.high %v452_v13, %v456_v14  ;;  %v460_v21 = vld [vmem:[#allocation5 + $0xa88] sm:$0xff]  ;;  %v130_v6 = vld [vmem:[#allocation5 + $0x38] sm:$0xff] }
 0x107   :  { %2617 = vmatprep.mubr.bf16.mxu0 %v4496_v22  ;;  %2746 = vmatprep.mubr.bf16.mxu1 %v4496_v22  ;;  %v464_v22 = vld [vmem:[#allocation5 + $0xaa8] sm:$0xff] }
 0x108   :  { %v4188_v26 = vcombine.high %v460_v21, %v464_v22  ;;  %v504_v62 = vld [vmem:[#allocation5 + $0xbe8] sm:$0xff] }
 0x109   :  { %2588 = vmatpush1.bf16.msra.mxu0 %v4113_v23  ;;  %2717 = vmatpush1.bf16.msra.mxu1 %v4115_v24  ;;  %v4177_v23 = vcombine.low %v451_v11, %v455_v12  ;;  %v4179_v24 = vcombine.low %v452_v13, %v456_v14  ;;  %v133_v11 = vld [vmem:[#allocation5 + $0x50] sm:$0xff]  ;;  %v4498_v13 = vld [vmem:[#allocation2 + $0x10] ss:$24 sps:$4 sm:$0xff]  }
 0x10a   :  { %2589 = vmatprep.subr.bf16.mxu0 %v4122_v25  ;;  %2718 = vmatprep.subr.bf16.mxu1 %v4124_v29  ;;  %v4186_v25 = vcombine.high %v459_v19, %v463_v20  ;;  %v468_v29 = vld [vmem:[#allocation5 + $0xac8] sm:$0xff]  ;;  %v137_v12 = vld [vmem:[#allocation5 + $0x70] sm:$0xff]  ;;  %v134_v14 = vld [vmem:[#allocation5 + $0x58] sm:$0xff] }
 0x10b   :  { %v4196_v34 = vcombine.high %v468_v29, %v472_v30 }
 0x10d   :  { %2590 = vmatpush1.bf16.msra.mxu0 %v4121_v31  ;;  %2719 = vmatpush1.bf16.msra.mxu1 %v4123_v32  ;;  %v4185_v31 = vcombine.low %v459_v19, %v463_v20  ;;  %v4187_v32 = vcombine.low %v460_v21, %v464_v22  ;;  %v141_v20 = vld [vmem:[#allocation5 + $0x90] sm:$0xff]  ;;  %v142_v22 = vld [vmem:[#allocation5 + $0x98] sm:$0xff] }
 0x10e   :  { %2591 = vmatprep.subr.bf16.mxu0 %v4130_v33  ;;  %2720 = vmatprep.subr.bf16.mxu1 %v4132_v37  ;;  %v4194_v33 = vcombine.high %v467_v27, %v471_v28  ;;  %v476_v37 = vld [vmem:[#allocation5 + $0xb08] sm:$0xff]  ;;  %v145_v21 = vld [vmem:[#allocation5 + $0xb0] sm:$0xff] }
 0x111   :  { %2592 = vmatpush1.bf16.msra.mxu0 %v4129_v39  ;;  %2721 = vmatpush1.bf16.msra.mxu1 %v4131_v40  ;;  %v4193_v39 = vcombine.low %v467_v27, %v471_v28  ;;  %v4195_v40 = vcombine.low %v468_v29, %v472_v30  ;;  %v149_v28 = vld [vmem:[#allocation5 + $0xd0] sm:$0xff] }
 0x112   :  { %2593 = vmatprep.subr.bf16.mxu0 %v4138_v41  ;;  %2722 = vmatprep.subr.bf16.mxu1 %v4140_v42  ;;  %v4202_v41 = vcombine.high %v475_v35, %v479_v36  ;;  %v4204_v42 = vcombine.high %v476_v37, %v480_v38  ;;  %v153_v29 = vld [vmem:[#allocation5 + $0xf0] sm:$0xff] }
 0x113   :  { %v4571_v30 = vld [vmem:[#allocation2 + $0x4] ss:$24 sps:$4 sm:$0xff]  }
 0x115   :  { %2594 = vmatpush1.bf16.msra.mxu0 %v4137_v47  ;;  %2723 = vmatpush1.bf16.msra.mxu1 %v4139_v48  ;;  %v4201_v47 = vcombine.low %v475_v35, %v479_v36  ;;  %v4203_v48 = vcombine.low %v476_v37, %v480_v38  ;;  %v3878_v35 = vcombine.high %v149_v28, %v153_v29  ;;  %v157_v37 = vld [vmem:[#allocation5 + $0x110] sm:$0xff] }
 0x116   :  { %2595 = vmatprep.subr.bf16.mxu0 %v4146_v49  ;;  %2724 = vmatprep.subr.bf16.mxu1 %v4148_v50  ;;  %v4210_v49 = vcombine.high %v483_v43, %v487_v44  ;;  %v4212_v50 = vcombine.high %v484_v45, %v488_v46  ;;  %v161_v38 = vld [vmem:[#allocation5 + $0x130] sm:$0xff] }
 0x119   :  { %2596 = vmatpush1.bf16.msra.mxu0 %v4145_v55  ;;  %2725 = vmatpush1.bf16.msra.mxu1 %v4147_v56  ;;  %v4209_v55 = vcombine.low %v483_v43, %v487_v44  ;;  %v4211_v56 = vcombine.low %v484_v45, %v488_v46  ;;  %v3886_v43 = vcombine.high %v157_v37, %v161_v38  ;;  %v165_v45 = vld [vmem:[#allocation5 + $0x150] sm:$0xff] }
 0x11a   :  { %2597 = vmatprep.subr.bf16.mxu0 %v4154_v57  ;;  %2726 = vmatprep.subr.bf16.mxu1 %v4156_v58  ;;  %v4218_v57 = vcombine.high %v491_v51, %v495_v52  ;;  %v4220_v58 = vcombine.high %v492_v53, %v496_v54  ;;  %v169_v46 = vld [vmem:[#allocation5 + $0x170] sm:$0xff] }
 0x11d   :  { %2598 = vmatpush1.bf16.msra.mxu0 %v4153_v63  ;;  %2727 = vmatpush1.bf16.msra.mxu1 %v4155_v0  ;;  %v4217_v63 = vcombine.low %v491_v51, %v495_v52  ;;  %v4219_v0 = vcombine.low %v492_v53, %v496_v54  ;;  %v3894_v51 = vcombine.high %v165_v45, %v169_v46  ;;  %v173_v53 = vld [vmem:[#allocation5 + $0x190] sm:$0xff] }
 0x11e   :  { %2599 = vmatprep.subr.bf16.mxu0 %v4162_v1  ;;  %2728 = vmatprep.subr.bf16.mxu1 %v4164_v2  ;;  %v4226_v1 = vcombine.high %v499_v59, %v503_v60  ;;  %v4228_v2 = vcombine.high %v500_v61, %v504_v62  ;;  %v177_v54 = vld [vmem:[#allocation5 + $0x1b0] sm:$0xff] }
 0x121   :  { %2600 = vmatpush1.bf16.msra.mxu0 %v4161_v7  ;;  %2729 = vmatpush1.bf16.msra.mxu1 %v4163_v8  ;;  %v4225_v7 = vcombine.low %v499_v59, %v503_v60  ;;  %v4227_v8 = vcombine.low %v500_v61, %v504_v62  ;;  %v3902_v59 = vcombine.high %v173_v53, %v177_v54  ;;  %v181_v61 = vld [vmem:[#allocation5 + $0x1d0] sm:$0xff] }
 0x122   :  { %2601 = vmatprep.subr.bf16.mxu0 %v4170_v9  ;;  %2730 = vmatprep.subr.bf16.mxu1 %v4172_v10  ;;  %v3854_v9 = vcombine.high %v125_v3, %v129_v4  ;;  %v3856_v10 = vcombine.high %v126_v5, %v130_v6  ;;  %v185_v62 = vld [vmem:[#allocation5 + $0x1f0] sm:$0xff] }
 0x125   :  { %2602 = vmatpush1.bf16.msra.mxu0 %v4169_v15  ;;  %2731 = vmatpush1.bf16.msra.mxu1 %v4171_v16  ;;  %v138_v15 = vld [vmem:[#allocation5 + $0x78] sm:$0xff]  ;;  %v3853_v16 = vcombine.low %v125_v3, %v129_v4  ;;  %v3910_v3 = vcombine.high %v181_v61, %v185_v62 }
 0x126   :  { %2603 = vmatprep.subr.bf16.mxu0 %v4178_v17  ;;  %2732 = vmatprep.subr.bf16.mxu1 %v4180_v18  ;;  %v3855_v17 = vcombine.low %v126_v5, %v130_v6  ;;  %v3862_v18 = vcombine.high %v133_v11, %v137_v12  ;;  %v3864_v19 = vcombine.high %v134_v14, %v138_v15  ;;  %v189_v5 = vld [vmem:[#allocation5 + $0x210] sm:$0xff] }
 0x127   :  { %v193_v6 = vld [vmem:[#allocation5 + $0x230] sm:$0xff] }
 0x129   :  { %2604 = vmatpush1.bf16.msra.mxu0 %v4177_v23  ;;  %2733 = vmatpush1.bf16.msra.mxu1 %v4179_v24  ;;  %v146_v23 = vld [vmem:[#allocation5 + $0xb8] sm:$0xff]  ;;  %v3861_v24 = vcombine.low %v133_v11, %v137_v12  ;;  %v3918_v11 = vcombine.high %v189_v5, %v193_v6 }
 0x12a   :  { %2605 = vmatprep.subr.bf16.mxu0 %v4186_v25  ;;  %2734 = vmatprep.subr.bf16.mxu1 %v4188_v26  ;;  %v3863_v25 = vcombine.low %v134_v14, %v138_v15  ;;  %v3870_v26 = vcombine.high %v141_v20, %v145_v21  ;;  %v3872_v27 = vcombine.high %v142_v22, %v146_v23  ;;  %v201_v14 = vld [vmem:[#allocation5 + $0x270] sm:$0xff]  ;;  %v198_v15 = vld [vmem:[#allocation5 + $0x258] sm:$0xff] }
 0x12d   :  { %2606 = vmatpush1.bf16.msra.mxu0 %v4185_v31  ;;  %2735 = vmatpush1.bf16.msra.mxu1 %v4187_v32  ;;  %v150_v31 = vld [vmem:[#allocation5 + $0xd8] sm:$0xff] }
 0x12e   :  { %2607 = vmatprep.subr.bf16.mxu0 %v4194_v33  ;;  %2736 = vmatprep.subr.bf16.mxu1 %v4196_v34  ;;  %v154_v32 = vld [vmem:[#allocation5 + $0xf8] sm:$0xff]  ;;  %v3869_v33 = vcombine.low %v141_v20, %v145_v21  ;;  %v3871_v34 = vcombine.low %v142_v22, %v146_v23  ;;  %v205_v21 = vld [vmem:[#allocation5 + $0x290] sm:$0xff] }
 0x12f   :  { %v3880_v36 = vcombine.high %v150_v31, %v154_v32  ;;  %v209_v22 = vld [vmem:[#allocation5 + $0x2b0] sm:$0xff]  ;;  %v206_v23 = vld [vmem:[#allocation5 + $0x298] sm:$0xff] }
 0x131   :  { %2608 = vmatpush1.bf16.msra.mxu0 %v4193_v39  ;;  %2737 = vmatpush1.bf16.msra.mxu1 %v4195_v40  ;;  %v158_v39 = vld [vmem:[#allocation5 + $0x118] sm:$0xff] }
 0x132   :  { %2609 = vmatprep.subr.bf16.mxu0 %v4202_v41  ;;  %2738 = vmatprep.subr.bf16.mxu1 %v4204_v42  ;;  %v162_v40 = vld [vmem:[#allocation5 + $0x138] sm:$0xff]  ;;  %v3877_v41 = vcombine.low %v149_v28, %v153_v29  ;;  %v3879_v42 = vcombine.low %v150_v31, %v154_v32  ;;  %v213_v29 = vld [vmem:[#allocation5 + $0x2d0] sm:$0xff] }
 0x133   :  { %v3888_v44 = vcombine.high %v158_v39, %v162_v40  ;;  %v214_v31 = vld [vmem:[#allocation5 + $0x2d8] sm:$0xff] }
 0x134   :  { %v218_v32 = vld [vmem:[#allocation5 + $0x2f8] sm:$0xff] }
 0x135   :  { %2610 = vmatpush1.bf16.msra.mxu0 %v4201_v47  ;;  %2739 = vmatpush1.bf16.msra.mxu1 %v4203_v48  ;;  %v166_v47 = vld [vmem:[#allocation5 + $0x158] sm:$0xff] }
 0x136   :  { %2611 = vmatprep.subr.bf16.mxu0 %v4210_v49  ;;  %2740 = vmatprep.subr.bf16.mxu1 %v4212_v50  ;;  %v170_v48 = vld [vmem:[#allocation5 + $0x178] sm:$0xff]  ;;  %v3885_v49 = vcombine.low %v157_v37, %v161_v38  ;;  %v3887_v50 = vcombine.low %v158_v39, %v162_v40  ;;  %v221_v37 = vld [vmem:[#allocation5 + $0x310] sm:$0xff] }
 0x137   :  { %v3896_v52 = vcombine.high %v166_v47, %v170_v48  ;;  %v225_v38 = vld [vmem:[#allocation5 + $0x330] sm:$0xff]  ;;  %v222_v39 = vld [vmem:[#allocation5 + $0x318] sm:$0xff] }
 0x138   :  { %v226_v40 = vld [vmem:[#allocation5 + $0x338] sm:$0xff] }
 0x139   :  { %2612 = vmatpush1.bf16.msra.mxu0 %v4209_v55  ;;  %2741 = vmatpush1.bf16.msra.mxu1 %v4211_v56  ;;  %v174_v55 = vld [vmem:[#allocation5 + $0x198] sm:$0xff] }
 0x13a   :  { %2613 = vmatprep.subr.bf16.mxu0 %v4218_v57  ;;  %2742 = vmatprep.subr.bf16.mxu1 %v4220_v58  ;;  %v178_v56 = vld [vmem:[#allocation5 + $0x1b8] sm:$0xff]  ;;  %v3893_v57 = vcombine.low %v165_v45, %v169_v46  ;;  %v3895_v58 = vcombine.low %v166_v47, %v170_v48  ;;  %v229_v45 = vld [vmem:[#allocation5 + $0x350] sm:$0xff] }
 0x13b   :  { %v3904_v60 = vcombine.high %v174_v55, %v178_v56  ;;  %v233_v46 = vld [vmem:[#allocation5 + $0x370] sm:$0xff]  ;;  %v230_v47 = vld [vmem:[#allocation5 + $0x358] sm:$0xff] }
 0x13c   :  { %v234_v48 = vld [vmem:[#allocation5 + $0x378] sm:$0xff] }
 0x13d   :  { %2614 = vmatpush1.bf16.msra.mxu0 %v4217_v63  ;;  %2743 = vmatpush1.bf16.msra.mxu1 %v4219_v0  ;;  %v182_v63 = vld [vmem:[#allocation5 + $0x1d8] sm:$0xff] }
 0x13e   :  { %2615 = vmatprep.subr.bf16.mxu0 %v4226_v1  ;;  %2744 = vmatprep.subr.bf16.mxu1 %v4228_v2  ;;  %v186_v0 = vld [vmem:[#allocation5 + $0x1f8] sm:$0xff]  ;;  %v3901_v1 = vcombine.low %v173_v53, %v177_v54  ;;  %v3903_v2 = vcombine.low %v174_v55, %v178_v56  ;;  %v237_v53 = vld [vmem:[#allocation5 + $0x390] sm:$0xff] }
 0x13f   :  { %v3912_v4 = vcombine.high %v182_v63, %v186_v0  ;;  %v241_v54 = vld [vmem:[#allocation5 + $0x3b0] sm:$0xff]  ;;  %v238_v55 = vld [vmem:[#allocation5 + $0x398] sm:$0xff] }
 0x140   :  { %v242_v56 = vld [vmem:[#allocation5 + $0x3b8] sm:$0xff] }
 0x141   :  { %2616 = vmatpush1.bf16.msra.mxu0 %v4225_v7  ;;  %2745 = vmatpush1.bf16.msra.mxu1 %v4227_v8  ;;  %v190_v7 = vld [vmem:[#allocation5 + $0x218] sm:$0xff] }
 0x142   :  { %2757 = vmatprep.subr.bf16.mxu0 %v3854_v9  ;;  %2886 = vmatprep.subr.bf16.mxu1 %v3856_v10  ;;  %v194_v8 = vld [vmem:[#allocation5 + $0x238] sm:$0xff]  ;;  %v3909_v9 = vcombine.low %v181_v61, %v185_v62  ;;  %v3911_v10 = vcombine.low %v182_v63, %v186_v0  ;;  %v245_v61 = vld [vmem:[#allocation5 + $0x3d0] sm:$0xff] }
 0x143   :  { %v3920_v12 = vcombine.high %v190_v7, %v194_v8  ;;  %v249_v62 = vld [vmem:[#allocation5 + $0x3f0] sm:$0xff]  ;;  %v246_v63 = vld [vmem:[#allocation5 + $0x3d8] sm:$0xff] }
 0x144   :  { %2618 = vmatmul.mubr.bf16.vlgmr.msra.gmra.mrb[0].mxu0 %v4498_v13  ;;  %2747 = vmatmul.mubr.bf16.vlgmr.msra.gmra.mrb[0].mxu1 %v4498_v13  ;;  %v197_v13 = vld [vmem:[#allocation5 + $0x250] sm:$0xff]  ;;  %v250_v0 = vld [vmem:[#allocation5 + $0x3f8] sm:$0xff] }
 0x145   :  { %2758 = vmatpush1.bf16.msra.mxu0 %v3853_v16  ;;  %2887 = vmatpush1.bf16.msra.mxu1 %v3855_v17  ;;  %v202_v16 = vld [vmem:[#allocation5 + $0x278] sm:$0xff]  ;;  %v3917_v17 = vcombine.low %v189_v5, %v193_v6  ;;  %v253_v5 = vld [vmem:[#allocation5 + $0x410] sm:$0xff] }
 0x146   :  { %2759 = vmatprep.subr.bf16.mxu0 %v3862_v18  ;;  %2888 = vmatprep.subr.bf16.mxu1 %v3864_v19  ;;  %v3919_v18 = vcombine.low %v190_v7, %v194_v8  ;;  %v3926_v19 = vcombine.high %v197_v13, %v201_v14  ;;  %v3928_v20 = vcombine.high %v198_v15, %v202_v16  ;;  %v257_v6 = vld [vmem:[#allocation5 + $0x430] sm:$0xff]  ;;  %v254_v7 = vld [vmem:[#allocation5 + $0x418] sm:$0xff] }
 0x147   :  { %2789 = vmatprep.mubr.bf16.mxu0 %v4571_v30  ;;  %2918 = vmatprep.mubr.bf16.mxu1 %v4571_v30  ;;  %v217_v30 = vld [vmem:[#allocation5 + $0x2f0] sm:$0xff]  ;;  %v258_v8 = vld [vmem:[#allocation5 + $0x438] sm:$0xff] }
 0x149   :  { %2760 = vmatpush1.bf16.msra.mxu0 %v3861_v24  ;;  %2889 = vmatpush1.bf16.msra.mxu1 %v3863_v25  ;;  %v210_v24 = vld [vmem:[#allocation5 + $0x2b8] sm:$0xff]  ;;  %v3925_v25 = vcombine.low %v197_v13, %v201_v14  ;;  %v261_v13 = vld [vmem:[#allocation5 + $0x450] sm:$0xff] }
 0x14a   :  { %2761 = vmatprep.subr.bf16.mxu0 %v3870_v26  ;;  %2890 = vmatprep.subr.bf16.mxu1 %v3872_v27  ;;  %v3927_v26 = vcombine.low %v198_v15, %v202_v16  ;;  %v3934_v27 = vcombine.high %v205_v21, %v209_v22  ;;  %v3936_v28 = vcombine.high %v206_v23, %v210_v24  ;;  %v265_v14 = vld [vmem:[#allocation5 + $0x470] sm:$0xff]  ;;  %v262_v15 = vld [vmem:[#allocation5 + $0x458] sm:$0xff] }
 0x14b   :  { %v266_v16 = vld [vmem:[#allocation5 + $0x478] sm:$0xff] }
 0x14d   :  { %2762 = vmatpush1.bf16.msra.mxu0 %v3869_v33  ;;  %2891 = vmatpush1.bf16.msra.mxu1 %v3871_v34  ;;  %v3933_v33 = vcombine.low %v205_v21, %v209_v22  ;;  %v3935_v34 = vcombine.low %v206_v23, %v210_v24  ;;  %v269_v21 = vld [vmem:[#allocation5 + $0x490] sm:$0xff]  ;;  %v270_v24 = vld [vmem:[#allocation5 + $0x498] sm:$0xff] }
 0x14e   :  { %2763 = vmatprep.subr.bf16.mxu0 %v3878_v35  ;;  %2892 = vmatprep.subr.bf16.mxu1 %v3880_v36  ;;  %v3942_v35 = vcombine.high %v213_v29, %v217_v30  ;;  %v3944_v36 = vcombine.high %v214_v31, %v218_v32  ;;  %v273_v22 = vld [vmem:[#allocation5 + $0x4b0] sm:$0xff] }
 0x14f   :  { %v4572_v23 = vld [vmem:[#allocation2] ss:$24 sps:$4 sm:$0xff]  }
 0x151   :  { %2764 = vmatpush1.bf16.msra.mxu0 %v3877_v41  ;;  %2893 = vmatpush1.bf16.msra.mxu1 %v3879_v42  ;;  %v3941_v41 = vcombine.low %v213_v29, %v217_v30  ;;  %v3943_v42 = vcombine.low %v214_v31, %v218_v32  ;;  %v277_v30 = vld [vmem:[#allocation5 + $0x4d0] sm:$0xff] }
 0x152   :  { %2765 = vmatprep.subr.bf16.mxu0 %v3886_v43  ;;  %2894 = vmatprep.subr.bf16.mxu1 %v3888_v44  ;;  %v3950_v43 = vcombine.high %v221_v37, %v225_v38  ;;  %v3952_v44 = vcombine.high %v222_v39, %v226_v40  ;;  %v281_v31 = vld [vmem:[#allocation5 + $0x4f0] sm:$0xff] }
 0x153   :  { %v4573_v32 = vld [vmem:[#allocation2 + $0xc] ss:$24 sps:$4 sm:$0xff]  }
 0x155   :  { %2766 = vmatpush1.bf16.msra.mxu0 %v3885_v49  ;;  %2895 = vmatpush1.bf16.msra.mxu1 %v3887_v50  ;;  %v3949_v49 = vcombine.low %v221_v37, %v225_v38  ;;  %v3951_v50 = vcombine.low %v222_v39, %v226_v40  ;;  %v4006_v37 = vcombine.high %v277_v30, %v281_v31  ;;  %v285_v39 = vld [vmem:[#allocation5 + $0x510] sm:$0xff] }
 0x156   :  { %2767 = vmatprep.subr.bf16.mxu0 %v3894_v51  ;;  %2896 = vmatprep.subr.bf16.mxu1 %v3896_v52  ;;  %v3958_v51 = vcombine.high %v229_v45, %v233_v46  ;;  %v3960_v52 = vcombine.high %v230_v47, %v234_v48  ;;  %v289_v40 = vld [vmem:[#allocation5 + $0x530] sm:$0xff] }
 0x159   :  { %2768 = vmatpush1.bf16.msra.mxu0 %v3893_v57  ;;  %2897 = vmatpush1.bf16.msra.mxu1 %v3895_v58  ;;  %v3957_v57 = vcombine.low %v229_v45, %v233_v46  ;;  %v3959_v58 = vcombine.low %v230_v47, %v234_v48  ;;  %v4014_v45 = vcombine.high %v285_v39, %v289_v40  ;;  %v293_v47 = vld [vmem:[#allocation5 + $0x550] sm:$0xff] }
 0x15a   :  { %2769 = vmatprep.subr.bf16.mxu0 %v3902_v59  ;;  %2898 = vmatprep.subr.bf16.mxu1 %v3904_v60  ;;  %v3966_v59 = vcombine.high %v237_v53, %v241_v54  ;;  %v3968_v60 = vcombine.high %v238_v55, %v242_v56  ;;  %v297_v48 = vld [vmem:[#allocation5 + $0x570] sm:$0xff] }
 0x15d   :  { %2770 = vmatpush1.bf16.msra.mxu0 %v3901_v1  ;;  %2899 = vmatpush1.bf16.msra.mxu1 %v3903_v2  ;;  %v3965_v1 = vcombine.low %v237_v53, %v241_v54  ;;  %v3967_v2 = vcombine.low %v238_v55, %v242_v56  ;;  %v4022_v53 = vcombine.high %v293_v47, %v297_v48  ;;  %v301_v55 = vld [vmem:[#allocation5 + $0x590] sm:$0xff] }
 0x15e   :  { %2771 = vmatprep.subr.bf16.mxu0 %v3910_v3  ;;  %2900 = vmatprep.subr.bf16.mxu1 %v3912_v4  ;;  %v3974_v3 = vcombine.high %v245_v61, %v249_v62  ;;  %v3976_v4 = vcombine.high %v246_v63, %v250_v0  ;;  %v305_v56 = vld [vmem:[#allocation5 + $0x5b0] sm:$0xff] }
 0x161   :  { %2772 = vmatpush1.bf16.msra.mxu0 %v3909_v9  ;;  %2901 = vmatpush1.bf16.msra.mxu1 %v3911_v10  ;;  %v3973_v9 = vcombine.low %v245_v61, %v249_v62  ;;  %v3975_v10 = vcombine.low %v246_v63, %v250_v0  ;;  %v4030_v61 = vcombine.high %v301_v55, %v305_v56  ;;  %v309_v63 = vld [vmem:[#allocation5 + $0x5d0] sm:$0xff] }
 0x162   :  { %2773 = vmatprep.subr.bf16.mxu0 %v3918_v11  ;;  %2902 = vmatprep.subr.bf16.mxu1 %v3920_v12  ;;  %v3982_v11 = vcombine.high %v253_v5, %v257_v6  ;;  %v3984_v12 = vcombine.high %v254_v7, %v258_v8  ;;  %v313_v0 = vld [vmem:[#allocation5 + $0x5f0] sm:$0xff] }
 0x165   :  { %2774 = vmatpush1.bf16.msra.mxu0 %v3917_v17  ;;  %2903 = vmatpush1.bf16.msra.mxu1 %v3919_v18  ;;  %v3981_v17 = vcombine.low %v253_v5, %v257_v6  ;;  %v3983_v18 = vcombine.low %v254_v7, %v258_v8  ;;  %v4038_v5 = vcombine.high %v309_v63, %v313_v0  ;;  %v317_v7 = vld [vmem:[#allocation5 + $0x610] sm:$0xff] }
 0x166   :  { %2775 = vmatprep.subr.bf16.mxu0 %v3926_v19  ;;  %2904 = vmatprep.subr.bf16.mxu1 %v3928_v20  ;;  %v3990_v19 = vcombine.high %v261_v13, %v265_v14  ;;  %v3992_v20 = vcombine.high %v262_v15, %v266_v16  ;;  %v321_v8 = vld [vmem:[#allocation5 + $0x630] sm:$0xff] }
 0x169   :  { %2776 = vmatpush1.bf16.msra.mxu0 %v3925_v25  ;;  %2905 = vmatpush1.bf16.msra.mxu1 %v3927_v26  ;;  %v274_v25 = vld [vmem:[#allocation5 + $0x4b8] sm:$0xff]  ;;  %v3989_v26 = vcombine.low %v261_v13, %v265_v14  ;;  %v4046_v13 = vcombine.high %v317_v7, %v321_v8 }
 0x16a   :  { %2777 = vmatprep.subr.bf16.mxu0 %v3934_v27  ;;  %2906 = vmatprep.subr.bf16.mxu1 %v3936_v28  ;;  %v3991_v27 = vcombine.low %v262_v15, %v266_v16  ;;  %v3998_v28 = vcombine.high %v269_v21, %v273_v22  ;;  %v4000_v29 = vcombine.high %v270_v24, %v274_v25  ;;  %v325_v15 = vld [vmem:[#allocation5 + $0x650] sm:$0xff] }
 0x16b   :  { %v329_v16 = vld [vmem:[#allocation5 + $0x670] sm:$0xff] }
 0x16d   :  { %2778 = vmatpush1.bf16.msra.mxu0 %v3933_v33  ;;  %2907 = vmatpush1.bf16.msra.mxu1 %v3935_v34  ;;  %v278_v33 = vld [vmem:[#allocation5 + $0x4d8] sm:$0xff] }
 0x16e   :  { %2779 = vmatprep.subr.bf16.mxu0 %v3942_v35  ;;  %2908 = vmatprep.subr.bf16.mxu1 %v3944_v36  ;;  %v282_v34 = vld [vmem:[#allocation5 + $0x4f8] sm:$0xff]  ;;  %v3997_v35 = vcombine.low %v269_v21, %v273_v22  ;;  %v3999_v36 = vcombine.low %v270_v24, %v274_v25  ;;  %v4054_v21 = vcombine.high %v325_v15, %v329_v16  ;;  %v337_v24 = vld [vmem:[#allocation5 + $0x6b0] sm:$0xff] }
 0x16f   :  { %v4008_v38 = vcombine.high %v278_v33, %v282_v34  ;;  %v334_v25 = vld [vmem:[#allocation5 + $0x698] sm:$0xff] }
 0x171   :  { %2780 = vmatpush1.bf16.msra.mxu0 %v3941_v41  ;;  %2909 = vmatpush1.bf16.msra.mxu1 %v3943_v42  ;;  %v286_v41 = vld [vmem:[#allocation5 + $0x518] sm:$0xff] }
 0x172   :  { %2781 = vmatprep.subr.bf16.mxu0 %v3950_v43  ;;  %2910 = vmatprep.subr.bf16.mxu1 %v3952_v44  ;;  %v290_v42 = vld [vmem:[#allocation5 + $0x538] sm:$0xff]  ;;  %v4005_v43 = vcombine.low %v277_v30, %v281_v31  ;;  %v4007_v44 = vcombine.low %v278_v33, %v282_v34  ;;  %v341_v31 = vld [vmem:[#allocation5 + $0x6d0] sm:$0xff] }
 0x173   :  { %v4016_v46 = vcombine.high %v286_v41, %v290_v42  ;;  %v342_v33 = vld [vmem:[#allocation5 + $0x6d8] sm:$0xff] }
 0x174   :  { %v346_v34 = vld [vmem:[#allocation5 + $0x6f8] sm:$0xff] }
 0x175   :  { %2782 = vmatpush1.bf16.msra.mxu0 %v3949_v49  ;;  %2911 = vmatpush1.bf16.msra.mxu1 %v3951_v50  ;;  %v294_v49 = vld [vmem:[#allocation5 + $0x558] sm:$0xff] }
 0x176   :  { %2783 = vmatprep.subr.bf16.mxu0 %v3958_v51  ;;  %2912 = vmatprep.subr.bf16.mxu1 %v3960_v52  ;;  %v298_v50 = vld [vmem:[#allocation5 + $0x578] sm:$0xff]  ;;  %v4013_v51 = vcombine.low %v285_v39, %v289_v40  ;;  %v4015_v52 = vcombine.low %v286_v41, %v290_v42  ;;  %v349_v39 = vld [vmem:[#allocation5 + $0x710] sm:$0xff] }
 0x177   :  { %v4024_v54 = vcombine.high %v294_v49, %v298_v50  ;;  %v353_v40 = vld [vmem:[#allocation5 + $0x730] sm:$0xff]  ;;  %v350_v41 = vld [vmem:[#allocation5 + $0x718] sm:$0xff] }
 0x178   :  { %v354_v42 = vld [vmem:[#allocation5 + $0x738] sm:$0xff] }
 0x179   :  { %2784 = vmatpush1.bf16.msra.mxu0 %v3957_v57  ;;  %2913 = vmatpush1.bf16.msra.mxu1 %v3959_v58  ;;  %v302_v57 = vld [vmem:[#allocation5 + $0x598] sm:$0xff] }
 0x17a   :  { %2785 = vmatprep.subr.bf16.mxu0 %v3966_v59  ;;  %2914 = vmatprep.subr.bf16.mxu1 %v3968_v60  ;;  %v306_v58 = vld [vmem:[#allocation5 + $0x5b8] sm:$0xff]  ;;  %v4021_v59 = vcombine.low %v293_v47, %v297_v48  ;;  %v4023_v60 = vcombine.low %v294_v49, %v298_v50  ;;  %v357_v47 = vld [vmem:[#allocation5 + $0x750] sm:$0xff] }
 0x17b   :  { %v4032_v62 = vcombine.high %v302_v57, %v306_v58  ;;  %v361_v48 = vld [vmem:[#allocation5 + $0x770] sm:$0xff]  ;;  %v358_v49 = vld [vmem:[#allocation5 + $0x758] sm:$0xff] }
 0x17c   :  { %v362_v50 = vld [vmem:[#allocation5 + $0x778] sm:$0xff] }
 0x17d   :  { %2786 = vmatpush1.bf16.msra.mxu0 %v3965_v1  ;;  %2915 = vmatpush1.bf16.msra.mxu1 %v3967_v2  ;;  %v310_v1 = vld [vmem:[#allocation5 + $0x5d8] sm:$0xff] }
 0x17e   :  { %2787 = vmatprep.subr.bf16.mxu0 %v3974_v3  ;;  %2916 = vmatprep.subr.bf16.mxu1 %v3976_v4  ;;  %v314_v2 = vld [vmem:[#allocation5 + $0x5f8] sm:$0xff]  ;;  %v4029_v3 = vcombine.low %v301_v55, %v305_v56  ;;  %v4031_v4 = vcombine.low %v302_v57, %v306_v58  ;;  %v365_v55 = vld [vmem:[#allocation5 + $0x790] sm:$0xff] }
 0x17f   :  { %v4040_v6 = vcombine.high %v310_v1, %v314_v2  ;;  %v369_v56 = vld [vmem:[#allocation5 + $0x7b0] sm:$0xff]  ;;  %v366_v57 = vld [vmem:[#allocation5 + $0x798] sm:$0xff] }
 0x180   :  { %v370_v58 = vld [vmem:[#allocation5 + $0x7b8] sm:$0xff] }
 0x181   :  { %2788 = vmatpush1.bf16.msra.mxu0 %v3973_v9  ;;  %2917 = vmatpush1.bf16.msra.mxu1 %v3975_v10  ;;  %v318_v9 = vld [vmem:[#allocation5 + $0x618] sm:$0xff] }
 0x182   :  { %2800 = vmatprep.subr.bf16.mxu0 %v3982_v11  ;;  %2929 = vmatprep.subr.bf16.mxu1 %v3984_v12  ;;  %v322_v10 = vld [vmem:[#allocation5 + $0x638] sm:$0xff]  ;;  %v4037_v11 = vcombine.low %v309_v63, %v313_v0  ;;  %v4039_v12 = vcombine.low %v310_v1, %v314_v2  ;;  %v373_v63 = vld [vmem:[#allocation5 + $0x7d0] sm:$0xff] }
 0x183   :  { %v4048_v14 = vcombine.high %v318_v9, %v322_v10  ;;  %v377_v0 = vld [vmem:[#allocation5 + $0x7f0] sm:$0xff]  ;;  %v374_v1 = vld [vmem:[#allocation5 + $0x7d8] sm:$0xff] }
 0x184   :  { %2790 = vmatmul.mubr.bf16.vlgmr.msra.gmra.mrb[4].mxu0 %v4572_v23  ;;  %2919 = vmatmul.mubr.bf16.vlgmr.msra.gmra.mrb[4].mxu1 %v4572_v23  ;;  %v333_v23 = vld [vmem:[#allocation5 + $0x690] sm:$0xff]  ;;  %v378_v2 = vld [vmem:[#allocation5 + $0x7f8] sm:$0xff] }
 0x185   :  { %2801 = vmatpush1.bf16.msra.mxu0 %v3981_v17  ;;  %2930 = vmatpush1.bf16.msra.mxu1 %v3983_v18  ;;  %v326_v17 = vld [vmem:[#allocation5 + $0x658] sm:$0xff] }
 0x186   :  { %2802 = vmatprep.subr.bf16.mxu0 %v3990_v19  ;;  %2931 = vmatprep.subr.bf16.mxu1 %v3992_v20  ;;  %v330_v18 = vld [vmem:[#allocation5 + $0x678] sm:$0xff]  ;;  %v4045_v19 = vcombine.low %v317_v7, %v321_v8  ;;  %v4047_v20 = vcombine.low %v318_v9, %v322_v10  ;;  %v381_v7 = vld [vmem:[#allocation5 + $0x810] sm:$0xff] }
 0x187   :  { %2832 = vmatprep.mubr.bf16.mxu0 %v4573_v32  ;;  %2961 = vmatprep.mubr.bf16.mxu1 %v4573_v32  ;;  %v4056_v22 = vcombine.high %v326_v17, %v330_v18  ;;  %v345_v32 = vld [vmem:[#allocation5 + $0x6f0] sm:$0xff]  ;;  %v382_v9 = vld [vmem:[#allocation5 + $0x818] sm:$0xff] }
 0x188   :  { %v385_v8 = vld [vmem:[#allocation5 + $0x830] sm:$0xff]  ;;  %v386_v10 = vld [vmem:[#allocation5 + $0x838] sm:$0xff] }
 0x189   :  { %2803 = vmatpush1.bf16.msra.mxu0 %v3989_v26  ;;  %2932 = vmatpush1.bf16.msra.mxu1 %v3991_v27  ;;  %v338_v26 = vld [vmem:[#allocation5 + $0x6b8] sm:$0xff]  ;;  %v4053_v27 = vcombine.low %v325_v15, %v329_v16  ;;  %v389_v15 = vld [vmem:[#allocation5 + $0x850] sm:$0xff] }
 0x18a   :  { %2804 = vmatprep.subr.bf16.mxu0 %v3998_v28  ;;  %2933 = vmatprep.subr.bf16.mxu1 %v4000_v29  ;;  %v4055_v28 = vcombine.low %v326_v17, %v330_v18  ;;  %v4062_v29 = vcombine.high %v333_v23, %v337_v24  ;;  %v4064_v30 = vcombine.high %v334_v25, %v338_v26  ;;  %v393_v16 = vld [vmem:[#allocation5 + $0x870] sm:$0xff]  ;;  %v390_v17 = vld [vmem:[#allocation5 + $0x858] sm:$0xff] }
 0x18b   :  { %v394_v18 = vld [vmem:[#allocation5 + $0x878] sm:$0xff] }
 0x18d   :  { %2805 = vmatpush1.bf16.msra.mxu0 %v3997_v35  ;;  %2934 = vmatpush1.bf16.msra.mxu1 %v3999_v36  ;;  %v4061_v35 = vcombine.low %v333_v23, %v337_v24  ;;  %v4063_v36 = vcombine.low %v334_v25, %v338_v26  ;;  %v397_v23 = vld [vmem:[#allocation5 + $0x890] sm:$0xff]  ;;  %v398_v26 = vld [vmem:[#allocation5 + $0x898] sm:$0xff] }
 0x18e   :  { %2806 = vmatprep.subr.bf16.mxu0 %v4006_v37  ;;  %2935 = vmatprep.subr.bf16.mxu1 %v4008_v38  ;;  %v4070_v37 = vcombine.high %v341_v31, %v345_v32  ;;  %v4072_v38 = vcombine.high %v342_v33, %v346_v34  ;;  %v401_v24 = vld [vmem:[#allocation5 + $0x8b0] sm:$0xff] }
 0x18f   :  { %v4574_v25 = vld [vmem:[#allocation2 + $0x8] ss:$24 sps:$4 sm:$0xff]  }
 0x191   :  { %2807 = vmatpush1.bf16.msra.mxu0 %v4005_v43  ;;  %2936 = vmatpush1.bf16.msra.mxu1 %v4007_v44  ;;  %v4069_v43 = vcombine.low %v341_v31, %v345_v32  ;;  %v4071_v44 = vcombine.low %v342_v33, %v346_v34  ;;  %v405_v32 = vld [vmem:[#allocation5 + $0x8d0] sm:$0xff]  ;;  %v4575_v34 = vld [vmem:[#allocation2 + $0x14] ss:$24 sps:$4 sm:$0xff]  }
 0x192   :  { %2808 = vmatprep.subr.bf16.mxu0 %v4014_v45  ;;  %2937 = vmatprep.subr.bf16.mxu1 %v4016_v46  ;;  %v4078_v45 = vcombine.high %v349_v39, %v353_v40  ;;  %v4080_v46 = vcombine.high %v350_v41, %v354_v42  ;;  %v409_v33 = vld [vmem:[#allocation5 + $0x8f0] sm:$0xff] }
 0x195   :  { %2809 = vmatpush1.bf16.msra.mxu0 %v4013_v51  ;;  %2938 = vmatpush1.bf16.msra.mxu1 %v4015_v52  ;;  %v4077_v51 = vcombine.low %v349_v39, %v353_v40  ;;  %v4079_v52 = vcombine.low %v350_v41, %v354_v42  ;;  %v4134_v39 = vcombine.high %v405_v32, %v409_v33  ;;  %v413_v41 = vld [vmem:[#allocation5 + $0x910] sm:$0xff] }
 0x196   :  { %2810 = vmatprep.subr.bf16.mxu0 %v4022_v53  ;;  %2939 = vmatprep.subr.bf16.mxu1 %v4024_v54  ;;  %v4086_v53 = vcombine.high %v357_v47, %v361_v48  ;;  %v4088_v54 = vcombine.high %v358_v49, %v362_v50  ;;  %v417_v42 = vld [vmem:[#allocation5 + $0x930] sm:$0xff] }
 0x199   :  { %2811 = vmatpush1.bf16.msra.mxu0 %v4021_v59  ;;  %2940 = vmatpush1.bf16.msra.mxu1 %v4023_v60  ;;  %v4085_v59 = vcombine.low %v357_v47, %v361_v48  ;;  %v4087_v60 = vcombine.low %v358_v49, %v362_v50  ;;  %v4142_v47 = vcombine.high %v413_v41, %v417_v42  ;;  %v421_v49 = vld [vmem:[#allocation5 + $0x950] sm:$0xff] }
 0x19a   :  { %2812 = vmatprep.subr.bf16.mxu0 %v4030_v61  ;;  %2941 = vmatprep.subr.bf16.mxu1 %v4032_v62  ;;  %v4094_v61 = vcombine.high %v365_v55, %v369_v56  ;;  %v4096_v62 = vcombine.high %v366_v57, %v370_v58  ;;  %v425_v50 = vld [vmem:[#allocation5 + $0x970] sm:$0xff] }
 0x19d   :  { %2813 = vmatpush1.bf16.msra.mxu0 %v4029_v3  ;;  %2942 = vmatpush1.bf16.msra.mxu1 %v4031_v4  ;;  %v4093_v3 = vcombine.low %v365_v55, %v369_v56  ;;  %v4095_v4 = vcombine.low %v366_v57, %v370_v58  ;;  %v4150_v55 = vcombine.high %v421_v49, %v425_v50  ;;  %v429_v57 = vld [vmem:[#allocation5 + $0x990] sm:$0xff] }
 0x19e   :  { %2814 = vmatprep.subr.bf16.mxu0 %v4038_v5  ;;  %2943 = vmatprep.subr.bf16.mxu1 %v4040_v6  ;;  %v4102_v5 = vcombine.high %v373_v63, %v377_v0  ;;  %v4104_v6 = vcombine.high %v374_v1, %v378_v2  ;;  %v433_v58 = vld [vmem:[#allocation5 + $0x9b0] sm:$0xff] }
 0x1a1   :  { %2815 = vmatpush1.bf16.msra.mxu0 %v4037_v11  ;;  %2944 = vmatpush1.bf16.msra.mxu1 %v4039_v12  ;;  %v4101_v11 = vcombine.low %v373_v63, %v377_v0  ;;  %v4103_v12 = vcombine.low %v374_v1, %v378_v2  ;;  %v4158_v63 = vcombine.high %v429_v57, %v433_v58  ;;  %v437_v1 = vld [vmem:[#allocation5 + $0x9d0] sm:$0xff] }
 0x1a2   :  { %2816 = vmatprep.subr.bf16.mxu0 %v4046_v13  ;;  %2945 = vmatprep.subr.bf16.mxu1 %v4048_v14  ;;  %v4110_v13 = vcombine.high %v381_v7, %v385_v8  ;;  %v4112_v14 = vcombine.high %v382_v9, %v386_v10  ;;  %v441_v2 = vld [vmem:[#allocation5 + $0x9f0] sm:$0xff] }
 0x1a5   :  { %2817 = vmatpush1.bf16.msra.mxu0 %v4045_v19  ;;  %2946 = vmatpush1.bf16.msra.mxu1 %v4047_v20  ;;  %v4109_v19 = vcombine.low %v381_v7, %v385_v8  ;;  %v4111_v20 = vcombine.low %v382_v9, %v386_v10  ;;  %v4166_v7 = vcombine.high %v437_v1, %v441_v2  ;;  %v445_v9 = vld [vmem:[#allocation5 + $0xa10] sm:$0xff] }
 0x1a6   :  { %2818 = vmatprep.subr.bf16.mxu0 %v4054_v21  ;;  %2947 = vmatprep.subr.bf16.mxu1 %v4056_v22  ;;  %v4118_v21 = vcombine.high %v389_v15, %v393_v16  ;;  %v4120_v22 = vcombine.high %v390_v17, %v394_v18  ;;  %v449_v10 = vld [vmem:[#allocation5 + $0xa30] sm:$0xff] }
 0x1a9   :  { %2819 = vmatpush1.bf16.msra.mxu0 %v4053_v27  ;;  %2948 = vmatpush1.bf16.msra.mxu1 %v4055_v28  ;;  %v402_v27 = vld [vmem:[#allocation5 + $0x8b8] sm:$0xff]  ;;  %v4117_v28 = vcombine.low %v389_v15, %v393_v16  ;;  %v4174_v15 = vcombine.high %v445_v9, %v449_v10 }
 0x1aa   :  { %2820 = vmatprep.subr.bf16.mxu0 %v4062_v29  ;;  %2949 = vmatprep.subr.bf16.mxu1 %v4064_v30  ;;  %v4119_v29 = vcombine.low %v390_v17, %v394_v18  ;;  %v4126_v30 = vcombine.high %v397_v23, %v401_v24  ;;  %v4128_v31 = vcombine.high %v398_v26, %v402_v27  ;;  %v453_v17 = vld [vmem:[#allocation5 + $0xa50] sm:$0xff] }
 0x1ab   :  { %v457_v18 = vld [vmem:[#allocation5 + $0xa70] sm:$0xff] }
 0x1ad   :  { %2821 = vmatpush1.bf16.msra.mxu0 %v4061_v35  ;;  %2950 = vmatpush1.bf16.msra.mxu1 %v4063_v36  ;;  %v406_v35 = vld [vmem:[#allocation5 + $0x8d8] sm:$0xff] }
 0x1ae   :  { %2822 = vmatprep.subr.bf16.mxu0 %v4070_v37  ;;  %2951 = vmatprep.subr.bf16.mxu1 %v4072_v38  ;;  %v410_v36 = vld [vmem:[#allocation5 + $0x8f8] sm:$0xff]  ;;  %v4125_v37 = vcombine.low %v397_v23, %v401_v24  ;;  %v4127_v38 = vcombine.low %v398_v26, %v402_v27  ;;  %v4182_v23 = vcombine.high %v453_v17, %v457_v18  ;;  %v465_v26 = vld [vmem:[#allocation5 + $0xab0] sm:$0xff] }
 0x1af   :  { %v4136_v40 = vcombine.high %v406_v35, %v410_v36  ;;  %v462_v27 = vld [vmem:[#allocation5 + $0xa98] sm:$0xff] }
 0x1b1   :  { %2823 = vmatpush1.bf16.msra.mxu0 %v4069_v43  ;;  %2952 = vmatpush1.bf16.msra.mxu1 %v4071_v44  ;;  %v414_v43 = vld [vmem:[#allocation5 + $0x918] sm:$0xff] }
 0x1b2   :  { %2824 = vmatprep.subr.bf16.mxu0 %v4078_v45  ;;  %2953 = vmatprep.subr.bf16.mxu1 %v4080_v46  ;;  %v418_v44 = vld [vmem:[#allocation5 + $0x938] sm:$0xff]  ;;  %v4133_v45 = vcombine.low %v405_v32, %v409_v33  ;;  %v4135_v46 = vcombine.low %v406_v35, %v410_v36  ;;  %v469_v33 = vld [vmem:[#allocation5 + $0xad0] sm:$0xff] }
 0x1b3   :  { %v4144_v48 = vcombine.high %v414_v43, %v418_v44  ;;  %v470_v35 = vld [vmem:[#allocation5 + $0xad8] sm:$0xff] }
 0x1b4   :  { %v474_v36 = vld [vmem:[#allocation5 + $0xaf8] sm:$0xff] }
 0x1b5   :  { %2825 = vmatpush1.bf16.msra.mxu0 %v4077_v51  ;;  %2954 = vmatpush1.bf16.msra.mxu1 %v4079_v52  ;;  %v422_v51 = vld [vmem:[#allocation5 + $0x958] sm:$0xff] }
 0x1b6   :  { %2826 = vmatprep.subr.bf16.mxu0 %v4086_v53  ;;  %2955 = vmatprep.subr.bf16.mxu1 %v4088_v54  ;;  %v426_v52 = vld [vmem:[#allocation5 + $0x978] sm:$0xff]  ;;  %v4141_v53 = vcombine.low %v413_v41, %v417_v42  ;;  %v4143_v54 = vcombine.low %v414_v43, %v418_v44  ;;  %v477_v41 = vld [vmem:[#allocation5 + $0xb10] sm:$0xff] }
 0x1b7   :  { %v4152_v56 = vcombine.high %v422_v51, %v426_v52  ;;  %v481_v42 = vld [vmem:[#allocation5 + $0xb30] sm:$0xff]  ;;  %v478_v43 = vld [vmem:[#allocation5 + $0xb18] sm:$0xff] }
 0x1b8   :  { %v482_v44 = vld [vmem:[#allocation5 + $0xb38] sm:$0xff] }
 0x1b9   :  { %2827 = vmatpush1.bf16.msra.mxu0 %v4085_v59  ;;  %2956 = vmatpush1.bf16.msra.mxu1 %v4087_v60  ;;  %v430_v59 = vld [vmem:[#allocation5 + $0x998] sm:$0xff] }
 0x1ba   :  { %2828 = vmatprep.subr.bf16.mxu0 %v4094_v61  ;;  %2957 = vmatprep.subr.bf16.mxu1 %v4096_v62  ;;  %v434_v60 = vld [vmem:[#allocation5 + $0x9b8] sm:$0xff]  ;;  %v4149_v61 = vcombine.low %v421_v49, %v425_v50  ;;  %v4151_v62 = vcombine.low %v422_v51, %v426_v52  ;;  %v485_v49 = vld [vmem:[#allocation5 + $0xb50] sm:$0xff] }
 0x1bb   :  { %v4160_v0 = vcombine.high %v430_v59, %v434_v60  ;;  %v489_v50 = vld [vmem:[#allocation5 + $0xb70] sm:$0xff]  ;;  %v486_v51 = vld [vmem:[#allocation5 + $0xb58] sm:$0xff] }
 0x1bc   :  { %v490_v52 = vld [vmem:[#allocation5 + $0xb78] sm:$0xff] }
 0x1bd   :  { %2829 = vmatpush1.bf16.msra.mxu0 %v4093_v3  ;;  %2958 = vmatpush1.bf16.msra.mxu1 %v4095_v4  ;;  %v438_v3 = vld [vmem:[#allocation5 + $0x9d8] sm:$0xff] }
 0x1be   :  { %2830 = vmatprep.subr.bf16.mxu0 %v4102_v5  ;;  %2959 = vmatprep.subr.bf16.mxu1 %v4104_v6  ;;  %v442_v4 = vld [vmem:[#allocation5 + $0x9f8] sm:$0xff]  ;;  %v4157_v5 = vcombine.low %v429_v57, %v433_v58  ;;  %v4159_v6 = vcombine.low %v430_v59, %v434_v60  ;;  %v493_v57 = vld [vmem:[#allocation5 + $0xb90] sm:$0xff] }
 0x1bf   :  { %v4168_v8 = vcombine.high %v438_v3, %v442_v4  ;;  %v497_v58 = vld [vmem:[#allocation5 + $0xbb0] sm:$0xff]  ;;  %v494_v59 = vld [vmem:[#allocation5 + $0xb98] sm:$0xff] }
 0x1c0   :  { %v498_v60 = vld [vmem:[#allocation5 + $0xbb8] sm:$0xff] }
 0x1c1   :  { %2831 = vmatpush1.bf16.msra.mxu0 %v4101_v11  ;;  %2960 = vmatpush1.bf16.msra.mxu1 %v4103_v12  ;;  %v446_v11 = vld [vmem:[#allocation5 + $0xa18] sm:$0xff] }
 0x1c2   :  { %2843 = vmatprep.subr.bf16.mxu0 %v4110_v13  ;;  %2972 = vmatprep.subr.bf16.mxu1 %v4112_v14  ;;  %v450_v12 = vld [vmem:[#allocation5 + $0xa38] sm:$0xff]  ;;  %v4165_v13 = vcombine.low %v437_v1, %v441_v2  ;;  %v4167_v14 = vcombine.low %v438_v3, %v442_v4  ;;  %v501_v1 = vld [vmem:[#allocation5 + $0xbd0] sm:$0xff] }
 0x1c3   :  { %v4176_v16 = vcombine.high %v446_v11, %v450_v12  ;;  %v505_v2 = vld [vmem:[#allocation5 + $0xbf0] sm:$0xff]  ;;  %v502_v3 = vld [vmem:[#allocation5 + $0xbd8] sm:$0xff] }
 0x1c4   :  { %2833 = vmatmul.mubr.bf16.vlgmr.msra.gmra.mrb[4].mxu0 %v4574_v25  ;;  %2962 = vmatmul.mubr.bf16.vlgmr.msra.gmra.mrb[4].mxu1 %v4574_v25  ;;  %v461_v25 = vld [vmem:[#allocation5 + $0xa90] sm:$0xff]  ;;  %v506_v4 = vld [vmem:[#allocation5 + $0xbf8] sm:$0xff] }
 0x1c5   :  { %2844 = vmatpush1.bf16.msra.mxu0 %v4109_v19  ;;  %2973 = vmatpush1.bf16.msra.mxu1 %v4111_v20  ;;  %v454_v19 = vld [vmem:[#allocation5 + $0xa58] sm:$0xff] }
 0x1c6   :  { %2845 = vmatprep.subr.bf16.mxu0 %v4118_v21  ;;  %2974 = vmatprep.subr.bf16.mxu1 %v4120_v22  ;;  %v458_v20 = vld [vmem:[#allocation5 + $0xa78] sm:$0xff]  ;;  %v4173_v21 = vcombine.low %v445_v9, %v449_v10  ;;  %v4175_v22 = vcombine.low %v446_v11, %v450_v12  ;;  %v4229_v9 = vcombine.low %v501_v1, %v505_v2  ;;  %v4499_v11 = vld [vmem:[#allocation8 + $0x40] sm:$0xff]  }
 0x1c7   :  { %2875 = vmatprep.mubr.bf16.mxu0 %v4575_v34  ;;  %3004 = vmatprep.mubr.bf16.mxu1 %v4575_v34  ;;  %v4184_v24 = vcombine.high %v454_v19, %v458_v20  ;;  %v473_v34 = vld [vmem:[#allocation5 + $0xaf0] sm:$0xff]  ;;  %v4231_v10 = vcombine.low %v502_v3, %v506_v4  ;;  %v4500_v12 = vld [vmem:[#allocation8 + $0xc0] sm:$0xff]  }
 0x1c9   :  { %2846 = vmatpush1.bf16.msra.mxu0 %v4117_v28  ;;  %2975 = vmatpush1.bf16.msra.mxu1 %v4119_v29  ;;  %v466_v28 = vld [vmem:[#allocation5 + $0xab8] sm:$0xff]  ;;  %v4181_v29 = vcombine.low %v453_v17, %v457_v18  ;;  %v4505_v18 = vld [vmem:[#allocation8 + $0x8] sm:$0xff]  }
 0x1ca   :  { %2847 = vmatprep.subr.bf16.mxu0 %v4126_v30  ;;  %2976 = vmatprep.subr.bf16.mxu1 %v4128_v31  ;;  %v4183_v30 = vcombine.low %v454_v19, %v458_v20  ;;  %v4190_v31 = vcombine.high %v461_v25, %v465_v26  ;;  %v4192_v32 = vcombine.high %v462_v27, %v466_v28  ;;  %v4576_v17 = vld [vmem:[#allocation2 + $0x10] ss:$24 sps:$4 sm:$0xff]   ;;  %v4506_v19 = vld [vmem:[#allocation8 + $0x88] sm:$0xff]  }
 0x1cb   :  { %v4507_v20 = vld [vmem:[#allocation8 + $0x50] sm:$0xff]  }
 0x1cd   :  { %2848 = vmatpush1.bf16.msra.mxu0 %v4125_v37  ;;  %2977 = vmatpush1.bf16.msra.mxu1 %v4127_v38  ;;  %v4189_v37 = vcombine.low %v461_v25, %v465_v26  ;;  %v4191_v38 = vcombine.low %v462_v27, %v466_v28  ;;  %v509_v25 = vlaneseq  ;;  %v4512_v26 = vld [vmem:[#allocation8 + $0xd8] sm:$0xff]  }
 0x1ce   :  { %2849 = vmatprep.subr.bf16.mxu0 %v4134_v39  ;;  %2978 = vmatprep.subr.bf16.mxu1 %v4136_v40  ;;  %v4198_v39 = vcombine.high %v469_v33, %v473_v34  ;;  %v4200_v40 = vcombine.high %v470_v35, %v474_v36  ;;  %v4513_v27 = vld [vmem:[#allocation8 + $0x18] sm:$0xff]  }
 0x1cf   :  { %v4514_v28 = vld [vmem:[#allocation8 + $0x98] sm:$0xff]  }
 0x1d1   :  { %2850 = vmatpush1.bf16.msra.mxu0 %v4133_v45  ;;  %2979 = vmatpush1.bf16.msra.mxu1 %v4135_v46  ;;  %v4197_v45 = vcombine.low %v469_v33, %v473_v34  ;;  %v4199_v46 = vcombine.low %v470_v35, %v474_v36  ;;  %v4518_v33 = vld [vmem:[#allocation8 + $0xa0] sm:$0xff]   ;;  %v4519_v35 = vld [vmem:[#allocation8 + $0x68] sm:$0xff]   ;;  %v4915_v36 = vld [vmem:[#allocation7] sm:$0xff] }
 0x1d2   :  { %2851 = vmatprep.subr.bf16.mxu0 %v4142_v47  ;;  %2980 = vmatprep.subr.bf16.mxu1 %v4144_v48  ;;  %v4206_v47 = vcombine.high %v477_v41, %v481_v42  ;;  %v4208_v48 = vcombine.high %v478_v43, %v482_v44 }
 0x1d5   :  { %2852 = vmatpush1.bf16.msra.mxu0 %v4141_v53  ;;  %2981 = vmatpush1.bf16.msra.mxu1 %v4143_v54  ;;  %v4205_v53 = vcombine.low %v477_v41, %v481_v42  ;;  %v4207_v54 = vcombine.low %v478_v43, %v482_v44  ;;  %v4521_v41 = vld [vmem:[#allocation8 + $0x28] sm:$0xff]   ;;  %v4523_v44 = vld [vmem:[#allocation8 + $0x70] sm:$0xff]  }
 0x1d6   :  { %2853 = vmatprep.subr.bf16.mxu0 %v4150_v55  ;;  %2982 = vmatprep.subr.bf16.mxu1 %v4152_v56  ;;  %v4214_v55 = vcombine.high %v485_v49, %v489_v50  ;;  %v4216_v56 = vcombine.high %v486_v51, %v490_v52  ;;  %v4522_v43 = vld [vmem:[#allocation8 + $0xa8] sm:$0xff]  }
 0x1d9   :  { %2854 = vmatpush1.bf16.msra.mxu0 %v4149_v61  ;;  %2983 = vmatpush1.bf16.msra.mxu1 %v4151_v62  ;;  %v4213_v61 = vcombine.low %v485_v49, %v489_v50  ;;  %v4215_v62 = vcombine.low %v486_v51, %v490_v52 }
 0x1da   :  { %2855 = vmatprep.subr.bf16.mxu0 %v4158_v63  ;;  %2984 = vmatprep.subr.bf16.mxu1 %v4160_v0  ;;  %v4222_v63 = vcombine.high %v493_v57, %v497_v58  ;;  %v4224_v0 = vcombine.high %v494_v59, %v498_v60 }
 0x1dd   :  { %2856 = vmatpush1.bf16.msra.mxu0 %v4157_v5  ;;  %2985 = vmatpush1.bf16.msra.mxu1 %v4159_v6  ;;  %v4221_v5 = vcombine.low %v493_v57, %v497_v58  ;;  %v4223_v6 = vcombine.low %v494_v59, %v498_v60  ;;  %v4526_v59 = vld [vmem:[#allocation8 + $0xb0] sm:$0xff]   ;;  %v4527_v60 = vld [vmem:[#allocation8 + $0x78] sm:$0xff]  }
 0x1de   :  { %2857 = vmatprep.subr.bf16.mxu0 %v4166_v7  ;;  %2986 = vmatprep.subr.bf16.mxu1 %v4168_v8  ;;  %v4230_v7 = vcombine.high %v501_v1, %v505_v2  ;;  %v4232_v8 = vcombine.high %v502_v3, %v506_v4  ;;  %v4528_v2 = vld [vmem:[#allocation8 + $0xf8] sm:$0xff]  }
 0x1e1   :  { %2858 = vmatpush1.bf16.msra.mxu0 %v4165_v13  ;;  %2987 = vmatpush1.bf16.msra.mxu1 %v4167_v14  ;;  %v4501_v13 = vld [vmem:[#allocation8] sm:$0xff]  }
 0x1e2   :  { %2859 = vmatprep.subr.bf16.mxu0 %v4174_v15  ;;  %2988 = vmatprep.subr.bf16.mxu1 %v4176_v16  ;;  %v4502_v14 = vld [vmem:[#allocation8 + $0x80] sm:$0xff]   ;;  %v4503_v15 = vld [vmem:[#allocation8 + $0x48] sm:$0xff]  }
 0x1e3   :  { %v4504_v16 = vld [vmem:[#allocation8 + $0xc8] sm:$0xff]  }
 0x1e5   :  { %2860 = vmatpush1.bf16.msra.mxu0 %v4173_v21  ;;  %2989 = vmatpush1.bf16.msra.mxu1 %v4175_v22  ;;  %v4508_v21 = vld [vmem:[#allocation8 + $0xd0] sm:$0xff]  }
 0x1e6   :  { %2861 = vmatprep.subr.bf16.mxu0 %v4182_v23  ;;  %2990 = vmatprep.subr.bf16.mxu1 %v4184_v24  ;;  %v4509_v22 = vld [vmem:[#allocation8 + $0x10] sm:$0xff]   ;;  %v4511_v24 = vld [vmem:[#allocation8 + $0x58] sm:$0xff]  }
 0x1e7   :  { %v4510_v23 = vld [vmem:[#allocation8 + $0x90] sm:$0xff]  }
 0x1e9   :  { %2862 = vmatpush1.bf16.msra.mxu0 %v4181_v29  ;;  %2991 = vmatpush1.bf16.msra.mxu1 %v4183_v30  ;;  %v4515_v29 = vld [vmem:[#allocation8 + $0x60] sm:$0xff]   ;;  %v4912_v30 = vshrl.u32 %v509_v25, 7  ;;  %v4545_v25 = vld [vmem:[#allocation8 + $0x118] sm:$0xff]  }
 0x1ea   :  { %2863 = vmatprep.subr.bf16.mxu0 %v4190_v31  ;;  %2992 = vmatprep.subr.bf16.mxu1 %v4192_v32  ;;  %v4516_v31 = vld [vmem:[#allocation8 + $0xe0] sm:$0xff]  }
 0x1eb   :  { %v4517_v32 = vld [vmem:[#allocation8 + $0x20] sm:$0xff]   ;;  %v511_v34 = vsub.s32 0, %v4912_v30 }
 0x1ed   :  { %2864 = vmatpush1.bf16.msra.mxu0 %v4189_v37  ;;  %2993 = vmatpush1.bf16.msra.mxu1 %v4191_v38  ;;  %v519_v37 = vsub.s32 2, %v4912_v30  ;;  %v515_v38 = vsub.s32 1, %v4912_v30  ;;  %v512_v42 = vrot.slane %v4915_v36, %v511_v34  ;;  %v4553_v34 = vld [vmem:[#allocation8 + $0x128] sm:$0xff]  }
 0x1ee   :  { %2865 = vmatprep.subr.bf16.mxu0 %v4198_v39  ;;  %2994 = vmatprep.subr.bf16.mxu1 %v4200_v40  ;;  %v4520_v39 = vld [vmem:[#allocation8 + $0xe8] sm:$0xff]   ;;  %v523_v40 = vsub.s32 3, %v4912_v30 }
 0x1f0   :  { %v524_v51 = vrot.slane %v4915_v36, %v523_v40  ;;  %v4558_v40 = vld [vmem:[#allocation8 + $0x1b0] sm:$0xff]  }
 0x1f1   :  { %2866 = vmatpush1.bf16.msra.mxu0 %v4197_v45  ;;  %2995 = vmatpush1.bf16.msra.mxu1 %v4199_v46  ;;  %v520_v46 = vrot.slane %v4915_v36, %v519_v37  ;;  %v4555_v37 = vld [vmem:[#allocation8 + $0x170] sm:$0xff]  }
 0x1f2   :  { %2867 = vmatprep.subr.bf16.mxu0 %v4206_v47  ;;  %2996 = vmatprep.subr.bf16.mxu1 %v4208_v48  ;;  %v516_v47 = vrot.slane %v4915_v36, %v515_v38  ;;  %v4524_v48 = vld [vmem:[#allocation8 + $0xf0] sm:$0xff]  }
 0x1f3   :  { %v4556_v38 = vld [vmem:[#allocation8 + $0x1f0] sm:$0xff]  }
 0x1f5   :  { %2868 = vmatpush1.bf16.msra.mxu0 %v4205_v53  ;;  %2997 = vmatpush1.bf16.msra.mxu1 %v4207_v54  ;;  %v4525_v54 = vld [vmem:[#allocation8 + $0x30] sm:$0xff]  }
 0x1f6   :  { %2869 = vmatprep.subr.bf16.mxu0 %v4214_v55  ;;  %2998 = vmatprep.subr.bf16.mxu1 %v4216_v56 }
 0x1f9   :  { %2870 = vmatpush1.bf16.msra.mxu0 %v4213_v61  ;;  %2999 = vmatpush1.bf16.msra.mxu1 %v4215_v62 }
 0x1fa   :  { %2871 = vmatprep.subr.bf16.mxu0 %v4222_v63  ;;  %3000 = vmatprep.subr.bf16.mxu1 %v4224_v0 }
 0x1fd   :  { %2872 = vmatpush1.bf16.msra.mxu0 %v4221_v5  ;;  %3001 = vmatpush1.bf16.msra.mxu1 %v4223_v6 }
 0x1fe   :  { %2873 = vmatprep.subr.bf16.mxu0 %v4230_v7  ;;  %3002 = vmatprep.subr.bf16.mxu1 %v4232_v8  ;;  %v4529_v8 = vld [vmem:[#allocation8 + $0x38] sm:$0xff]  }
 0x201   :  { %2874 = vmatpush1.bf16.msra.mxu0 %v4229_v9  ;;  %3003 = vmatpush1.bf16.msra.mxu1 %v4231_v10  ;;  %v4530_v10 = vld [vmem:[#allocation8 + $0xb8] sm:$0xff]  }
 0x202   :  { %4307 = vmatprep.subr.bf16.mxu0 %v4499_v11  ;;  %4329 = vmatprep.subr.bf16.mxu1 %v4500_v12  ;;  %v4531_v11 = vld [vmem:[#allocation8 + $0x140] sm:$0xff]  }
 0x203   :  { %v4532_v12 = vld [vmem:[#allocation8 + $0x1c0] sm:$0xff]  }
 0x204   :  { %2876 = vmatmul.mubr.bf16.vlgmr.msra.gmra.mrb[4].mxu0 %v4576_v17  ;;  %3005 = vmatmul.mubr.bf16.vlgmr.msra.gmra.mrb[4].mxu1 %v4576_v17  ;;  %v4537_v17 = vld [vmem:[#allocation8 + $0x108] sm:$0xff]  }
 0x205   :  { %4308 = vmatpush3.bf16.msra.mxu0 %v4501_v13  ;;  %4330 = vmatpush3.bf16.msra.mxu1 %v4502_v14  ;;  %v4533_v13 = vld [vmem:[#allocation8 + $0x100] sm:$0xff]  }
 0x206   :  { %4309 = vmatprep.subr.bf16.mxu0 %v4503_v15  ;;  %4331 = vmatprep.subr.bf16.mxu1 %v4504_v16  ;;  %v4534_v14 = vld [vmem:[#allocation8 + $0x180] sm:$0xff]   ;;  %v4535_v15 = vld [vmem:[#allocation8 + $0x148] sm:$0xff]  }
 0x207   :  { %v4536_v16 = vld [vmem:[#allocation8 + $0x1c8] sm:$0xff]  }
 0x209   :  { %4310 = vmatpush3.bf16.msra.mxu0 %v4505_v18  ;;  %4332 = vmatpush3.bf16.msra.mxu1 %v4506_v19  ;;  %v4538_v18 = vld [vmem:[#allocation8 + $0x188] sm:$0xff]   ;;  %v4539_v19 = vld [vmem:[#allocation8 + $0x150] sm:$0xff]  }
 0x20a   :  { %4311 = vmatprep.subr.bf16.mxu0 %v4507_v20  ;;  %4333 = vmatprep.subr.bf16.mxu1 %v4508_v21  ;;  %v4540_v20 = vld [vmem:[#allocation8 + $0x1d0] sm:$0xff]  }
 0x20b   :  { %v4541_v21 = vld [vmem:[#allocation8 + $0x110] sm:$0xff]  }
 0x20d   :  { %4312 = vmatpush3.bf16.msra.mxu0 %v4509_v22  ;;  %4334 = vmatpush3.bf16.msra.mxu1 %v4510_v23  ;;  %v4542_v22 = vld [vmem:[#allocation8 + $0x190] sm:$0xff]   ;;  %v4543_v23 = vld [vmem:[#allocation8 + $0x158] sm:$0xff]  }
 0x20e   :  { %4313 = vmatprep.subr.bf16.mxu0 %v4511_v24  ;;  %4335 = vmatprep.subr.bf16.mxu1 %v4512_v26  ;;  %v4544_v24 = vld [vmem:[#allocation8 + $0x1d8] sm:$0xff]  }
 0x20f   :  { %v4546_v26 = vld [vmem:[#allocation8 + $0x198] sm:$0xff]  }
 0x211   :  { %4314 = vmatpush3.bf16.msra.mxu0 %v4513_v27  ;;  %4336 = vmatpush3.bf16.msra.mxu1 %v4514_v28  ;;  %v4547_v27 = vld [vmem:[#allocation8 + $0x160] sm:$0xff]  }
 0x212   :  { %4315 = vmatprep.subr.bf16.mxu0 %v4515_v29  ;;  %4337 = vmatprep.subr.bf16.mxu1 %v4516_v31  ;;  %v4548_v28 = vld [vmem:[#allocation8 + $0x1e0] sm:$0xff]  }
 0x213   :  { %v4549_v29 = vld [vmem:[#allocation8 + $0x120] sm:$0xff]  }
 0x214   :  { %v4550_v31 = vld [vmem:[#allocation8 + $0x1a0] sm:$0xff]  }
 0x215   :  { %4316 = vmatpush3.bf16.msra.mxu0 %v4517_v32  ;;  %4338 = vmatpush3.bf16.msra.mxu1 %v4518_v33  ;;  %v4551_v32 = vld [vmem:[#allocation8 + $0x168] sm:$0xff]  }
 0x216   :  { %4317 = vmatprep.subr.bf16.mxu0 %v4519_v35  ;;  %4339 = vmatprep.subr.bf16.mxu1 %v4520_v39  ;;  %v4552_v33 = vld [vmem:[#allocation8 + $0x1e8] sm:$0xff]   ;;  %v4557_v39 = vld [vmem:[#allocation8 + $0x130] sm:$0xff]  }
 0x217   :  { %v2619_v45 = vpop.f32.mrb[0].mxu0  ;;  %v2748_v49 = vpop.f32.mrb[0].mxu1  ;;  %v4554_v35 = vld [vmem:[#allocation8 + $0x1a8] sm:$0xff]  }
 0x218   :  { %v2621_v50 = vpop.f32.mrb[1].mxu0  ;;  %v2750_v52 = vpop.f32.mrb[1].mxu1  ;;  %v4424_v55 = vadd.f32 %v2619_v45, %v512_v42  ;;  %v4428_v61 = vadd.f32 %v2748_v49, %v520_v46  ;;  %v4776_v45 = vmov 0.0   ;;  %v539_v49 = vsub.s32 7, %v4912_v30 }
 0x219   :  { %v2623_v53 = vpop.f32.mrb[2].mxu0  ;;  %4318 = vmatpush3.bf16.msra.mxu0 %v4521_v41  ;;  %v2752_v57 = vpop.f32.mrb[2].mxu1  ;;  %4340 = vmatpush3.bf16.msra.mxu1 %v4522_v43  ;;  %v4425_v62 = vadd.f32 %v2621_v50, %v516_v47  ;;  %v4429_v3 = vadd.f32 %v2750_v52, %v524_v51  ;;  %v4559_v41 = vld [vmem:[#allocation8 + $0x178] sm:$0xff]  }
 0x21a   :  { %v4426_v56 = vadd.f32 %v2623_v53, %v512_v42  ;;  %v2625_v58 = vpop.f32.mrb[3].mxu0  ;;  %4319 = vmatprep.subr.bf16.mxu0 %v4523_v44  ;;  %v4430_v63 = vadd.f32 %v2752_v57, %v520_v46  ;;  %v2754_v1 = vpop.f32.mrb[3].mxu1  ;;  %4341 = vmatprep.subr.bf16.mxu1 %v4524_v48  ;;  %v4560_v42 = vld [vmem:[#allocation8 + $0x1f8] sm:$0xff]   ;;  %v527_v46 = vsub.s32 4, %v4912_v30  ;;  %v531_v48 = vsub.s32 5, %v4912_v30 }
 0x21b   :  { %v4427_v0 = vadd.f32 %v2625_v58, %v516_v47  ;;  %v4431_v5 = vadd.f32 %v2754_v1, %v524_v51  ;;  %v4561_v43 = vld [vmem:[#allocation8 + $0x138] sm:$0xff]   ;;  %v535_v47 = vsub.s32 6, %v4912_v30 }
 0x21c   :  { %v3015_v4 = vpack.c.bf16 %v4426_v56, %v4424_v55  ;;  %v3017_v6 = vpack.c.bf16 %v4430_v63, %v4428_v61  ;;  %v4562_v44 = vld [vmem:[#allocation8 + $0x1b8] sm:$0xff]   ;;  %v528_v50 = vrot.slane %v4915_v36, %v527_v46  ;;  %v532_v53 = vrot.slane %v4915_v36, %v531_v48 }
 0x21d   :  { %v3016_v7 = vpack.c.bf16 %v4427_v0, %v4425_v62  ;;  %4320 = vmatpush3.bf16.msra.mxu0 %v4525_v54  ;;  %v3018_v9 = vpack.c.bf16 %v4431_v5, %v4429_v3  ;;  %4342 = vmatpush3.bf16.msra.mxu1 %v4526_v59  ;;  %v536_v52 = vrot.slane %v4915_v36, %v535_v47 }
 0x21e   :  { %4321 = vmatprep.subr.bf16.mxu0 %v4527_v60  ;;  %4343 = vmatprep.subr.bf16.mxu1 %v4528_v2  ;;  %v540_v56 = vrot.slane %v4915_v36, %v539_v49  ;;  %v4564_v36 = vld [vmem:[#allocation11 + $0x8] sm:$0xff]  }
 0x21f   :  { %3574 = vmatprep.mubr.bf16.mxu0 %v3016_v7  ;;  %3615 = vmatprep.mubr.bf16.mxu1 %v3018_v9 }
 0x221   :  { %4322 = vmatpush3.bf16.msra.mxu0 %v4529_v8  ;;  %4344 = vmatpush3.bf16.msra.mxu1 %v4530_v10  ;;  %v4563_v8 = vld [vmem:[#allocation11] sm:$0xff]   ;;  %v4565_v10 = vld [vmem:[#allocation11 + $0x10] sm:$0xff]  }
 0x222   :  { %4351 = vmatprep.subr.bf16.mxu0 %v4531_v11  ;;  %4373 = vmatprep.subr.bf16.mxu1 %v4532_v12  ;;  %v4566_v11 = vld [vmem:[#allocation11 + $0x18] sm:$0xff]   ;;  %v4567_v12 = vld [vmem:[#allocation11 + $0x20] sm:$0xff]  }
 0x224   :  { %3575 = vmatmul.mubr.bf16.vlgmr.msra.gmra.mrb[8].mxu0 %v3015_v4  ;;  %3616 = vmatmul.mubr.bf16.vlgmr.msra.gmra.mrb[8].mxu1 %v3017_v6 }
 0x225   :  { %4352 = vmatpush3.bf16.msra.mxu0 %v4533_v13  ;;  %4374 = vmatpush3.bf16.msra.mxu1 %v4534_v14 }
 0x226   :  { %4353 = vmatprep.subr.bf16.mxu0 %v4535_v15  ;;  %4375 = vmatprep.subr.bf16.mxu1 %v4536_v16  ;;  %v4233_v15 = vld [vmem:[#allocation10] ss:$0 sm:$0xff] }
 0x229   :  { %4354 = vmatpush3.bf16.msra.mxu0 %v4537_v17  ;;  %4376 = vmatpush3.bf16.msra.mxu1 %v4538_v18 }
 0x22a   :  { %4355 = vmatprep.subr.bf16.mxu0 %v4539_v19  ;;  %4377 = vmatprep.subr.bf16.mxu1 %v4540_v20 }
 0x22d   :  { %4356 = vmatpush3.bf16.msra.mxu0 %v4541_v21  ;;  %4378 = vmatpush3.bf16.msra.mxu1 %v4542_v22 }
 0x22e   :  { %4357 = vmatprep.subr.bf16.mxu0 %v4543_v23  ;;  %4379 = vmatprep.subr.bf16.mxu1 %v4544_v24 }
 0x231   :  { %4358 = vmatpush3.bf16.msra.mxu0 %v4545_v25  ;;  %4380 = vmatpush3.bf16.msra.mxu1 %v4546_v26 }
 0x232   :  { %4359 = vmatprep.subr.bf16.mxu0 %v4547_v27  ;;  %4381 = vmatprep.subr.bf16.mxu1 %v4548_v28 }
 0x235   :  { %4360 = vmatpush3.bf16.msra.mxu0 %v4549_v29  ;;  %4382 = vmatpush3.bf16.msra.mxu1 %v4550_v31  ;;  %v4568_v31 = vld [vmem:[#allocation11 + $0x28] sm:$0xff]  }
 0x236   :  { %4361 = vmatprep.subr.bf16.mxu0 %v4551_v32  ;;  %4383 = vmatprep.subr.bf16.mxu1 %v4552_v33  ;;  %v4569_v32 = vld [vmem:[#allocation11 + $0x30] sm:$0xff]   ;;  %v4570_v33 = vld [vmem:[#allocation11 + $0x38] sm:$0xff]  }
 0x239   :  { %4362 = vmatpush3.bf16.msra.mxu0 %v4553_v34  ;;  %4384 = vmatpush3.bf16.msra.mxu1 %v4554_v35 }
 0x23a   :  { %4363 = vmatprep.subr.bf16.mxu0 %v4555_v37  ;;  %4385 = vmatprep.subr.bf16.mxu1 %v4556_v38 }
 0x23d   :  { %4364 = vmatpush3.bf16.msra.mxu0 %v4557_v39  ;;  %4386 = vmatpush3.bf16.msra.mxu1 %v4558_v40 }
 0x23e   :  { %4365 = vmatprep.subr.bf16.mxu0 %v4559_v41  ;;  %4387 = vmatprep.subr.bf16.mxu1 %v4560_v42 }
 0x241   :  { %4366 = vmatpush3.bf16.msra.mxu0 %v4561_v43  ;;  %4388 = vmatpush3.bf16.msra.mxu1 %v4562_v44 }
 0x242   :  { %4404 = vmatprep.subr.bf16.mxu0 %v4776_v45 }
 0x2d7   :  { %v2877_v51 = vpop.f32.mrb[4].mxu0  ;;  %v3006_v54 = vpop.f32.mrb[4].mxu1 }
 0x2d8   :  { %v2879_v55 = vpop.f32.mrb[5].mxu0  ;;  %v3008_v57 = vpop.f32.mrb[5].mxu1  ;;  %v4432_v59 = vadd.f32 %v2877_v51, %v528_v50  ;;  %v4436_v63 = vadd.f32 %v3006_v54, %v536_v52 }
 0x2d9   :  { %v2881_v58 = vpop.f32.mrb[6].mxu0  ;;  %v3010_v61 = vpop.f32.mrb[6].mxu1  ;;  %v4433_v0 = vadd.f32 %v2879_v55, %v532_v53  ;;  %v4437_v3 = vadd.f32 %v3008_v57, %v540_v56 }
 0x2da   :  { %v4434_v60 = vadd.f32 %v2881_v58, %v528_v50  ;;  %v2883_v62 = vpop.f32.mrb[7].mxu0  ;;  %v4438_v30 = vadd.f32 %v3010_v61, %v536_v52  ;;  %v3012_v2 = vpop.f32.mrb[7].mxu1 }
 0x2db   :  { %v4435_v1 = vadd.f32 %v2883_v62, %v532_v53  ;;  %v4439_v5 = vadd.f32 %v3012_v2, %v540_v56 }
 0x2dc   :  { %v3019_v4 = vpack.c.bf16 %v4434_v60, %v4432_v59  ;;  %v3021_v6 = vpack.c.bf16 %v4438_v30, %v4436_v63 }
 0x2dd   :  { %v3020_v7 = vpack.c.bf16 %v4435_v1, %v4433_v0  ;;  %v3022_v9 = vpack.c.bf16 %v4439_v5, %v4437_v3 }
 0x2df   :  { %3656 = vmatprep.mubr.bf16.mxu0 %v3020_v7  ;;  %3697 = vmatprep.mubr.bf16.mxu1 %v3022_v9 }
 0x2e0   :  { %3657 = vmatmul.mubr.bf16.vlgmr.msra.gmra.mrb[12].mxu0 %v3019_v4  ;;  %3698 = vmatmul.mubr.bf16.vlgmr.msra.gmra.mrb[12].mxu1 %v3021_v6 }
 0x2e1   :  { %4405 = vmatpush3.bf16.msra.mxu0 %v4563_v8  ;;  %4420 = vmatprep.mubr.msk.bf16.mxu0 %vm4777_vm0, %v4776_v45 }
 0x2e2   :  { %4406 = vmatprep.subr.bf16.mxu0 %v4776_v45 }
 0x2e5   :  { %4407 = vmatpush3.bf16.msra.mxu0 %v4564_v36 }
 0x2e6   :  { %4408 = vmatprep.subr.bf16.mxu0 %v4776_v45 }
 0x2e9   :  { %4409 = vmatpush3.bf16.msra.mxu0 %v4565_v10 }
 0x2ea   :  { %4410 = vmatprep.subr.bf16.mxu0 %v4776_v45 }
 0x2ed   :  { %4411 = vmatpush3.bf16.msra.mxu0 %v4566_v11 }
 0x2ee   :  { %4412 = vmatprep.subr.bf16.mxu0 %v4776_v45 }
 0x2f1   :  { %4413 = vmatpush3.bf16.msra.mxu0 %v4567_v12 }
 0x2f2   :  { %4414 = vmatprep.subr.bf16.mxu0 %v4776_v45 }
 0x2f5   :  { %4415 = vmatpush3.bf16.msra.mxu0 %v4568_v31 }
 0x2f6   :  { %4416 = vmatprep.subr.bf16.mxu0 %v4776_v45 }
 0x2f7   :  { %v4323_v13 = vpop.f32.mrb[8].mxu0  ;;  %v4345_v14 = vpop.f32.mrb[8].mxu1 }
 0x2f8   :  { %v4324_v16 = vpop.f32.mrb[9].mxu0  ;;  %v4346_v18 = vpop.f32.mrb[9].mxu1 }
 0x2f9   :  { %v4325_v17 = vadd.f32 %v4324_v16, %v4323_v13  ;;  %v4326_v19 = vpop.f32.mrb[10].mxu0  ;;  %v4347_v20 = vadd.f32 %v4346_v18, %v4345_v14  ;;  %v4348_v21 = vpop.f32.mrb[10].mxu1  ;;  %4417 = vmatpush3.bf16.msra.mxu0 %v4569_v32 }
 0x2fa   :  { %v4327_v22 = vpop.f32.mrb[11].mxu0  ;;  %v4349_v25 = vpop.f32.mrb[11].mxu1  ;;  %4418 = vmatprep.subr.bf16.mxu0 %v4776_v45  ;;  %v4298_v45 = vld [vmem:[#allocation13] ss:$0 sm:$0xff] }
 0x2fb   :  { %v3577_v23 = vadd.f32 %v4325_v17, %v4233_v15  ;;  %v4328_v24 = vadd.f32 %v4327_v22, %v4326_v19  ;;  %v4350_v26 = vadd.f32 %v4349_v25, %v4348_v21 }
 0x2fd   :  { %v3618_v27 = vadd.f32 %v4347_v20, %v3577_v23  ;;  %v3580_v28 = vadd.f32 %v4328_v24, %v4233_v15  ;;  %4419 = vmatpush3.bf16.msra.mxu0 %v4570_v33 }
 0x2ff   :  { %v3621_v29 = vadd.f32 %v4350_v26, %v3580_v28 }
 0x3b3   :  { %v4367_v34 = vpop.f32.mrb[12].mxu0  ;;  %v4389_v35 = vpop.f32.mrb[12].mxu1 }
 0x3b4   :  { %v4368_v37 = vpop.f32.mrb[13].mxu0  ;;  %v4390_v39 = vpop.f32.mrb[13].mxu1 }
 0x3b5   :  { %v4369_v38 = vadd.f32 %v4368_v37, %v4367_v34  ;;  %v4370_v40 = vpop.f32.mrb[14].mxu0  ;;  %v4391_v41 = vadd.f32 %v4390_v39, %v4389_v35  ;;  %v4392_v42 = vpop.f32.mrb[14].mxu1 }
 0x3b6   :  { %v4371_v43 = vpop.f32.mrb[15].mxu0  ;;  %v4393_v47 = vpop.f32.mrb[15].mxu1 }
 0x3b7   :  { %v3659_v44 = vadd.f32 %v4369_v38, %v3618_v27  ;;  %v4372_v46 = vadd.f32 %v4371_v43, %v4370_v40  ;;  %v4394_v48 = vadd.f32 %v4393_v47, %v4392_v42 }
 0x3b9   :  { %v3700_v49 = vadd.f32 %v4391_v41, %v3659_v44  ;;  %v3662_v50 = vadd.f32 %v4372_v46, %v3621_v29 }
 0x3bb   :  { %v3703_v51 = vadd.f32 %v4394_v48, %v3662_v50  ;;  %v3706_v52 = vmax.f32 %v3700_v49, 0.0 }
 0x3bd   :  { %v3707_v53 = vmax.f32 %v3703_v51, 0.0 }
 0x3bf   :  { %v3708_v54 = vpack.c.bf16 %v3707_v53, %v3706_v52 }
 0x3c1   :  { %4421 = vmatmul.mubr.bf16.vlgmr.msra.gmra.mrb[16].mxu0 %v3708_v54 }
 0x494   :  { %v3814_v55 = vpop.f32.mrb[16].mxu0 }
 0x495   :  { %v3815_v56 = vadd.f32 %v4298_v45, %v3814_v55  ;;  %v4422_v57 = vpop.f32.mrb[17].mxu0 }
 0x496   :  { %v3817_v58 = vpop.f32.mrb[18].mxu0 }
 0x497   :  { %3821 = vst [vmem:[#allocation14] sm:$0xff] %v3815_v56  ;;  %v3818_v59 = vadd.f32 %v4298_v45, %v3817_v58  ;;  %v4423_v60 = vpop.f32.mrb[19].mxu0 }
 0x499   :  { %3822 = vst [vmem:[#allocation14 + $0x8] sm:$0xff] %v3818_v59 }
 0x49a   :  { %4742 = shalt.err (!%p4739_p4)
}
 0x49b   :  { %s4743_s16 = scalar_lea.hbm %s4960_s7, 256 }
 0x49c   :  { %p4744_p5 = scmp.ne.s32.totalorder %s4960_s7, %s4743_s16  ;;  %p4747_p6 = scmp.lt.u32.totalorder %s4743_s16, %s4960_s7 }
 0x49e   :  { %p4749_p7 = pnand %p4747_p6, %p4744_p5 }
 0x4a0   :  { %4752 = shalt.err (!%p4749_p7)
}
 0x4a1   :  { %s4779_s21 = smov 128   ;;  %s4780_s22 = smov 8  }
 0x4a2   :  { %3834 = dma.vmem_to_hbm [thread:$0]  %s3829_s15, 256, %s4960_s7, [#allocation4], %s4779_s21, %s4779_s21, %s4780_s22  }
 0x4a3   :  { %4761 = dma.done.wait [#allocation4], 256  }
 0x4a4   :  { %4762 = vsyncadd [#allocation4], 4294967040 }
 0x4a5   :  { %3838 = vsyncpa [#allocation3], 1 }
 0x4a6   :  { %3839 = vsyncpa [#allocation6], 1 }
 0x4a7   :  { %3840 = vsyncpa [#allocation9], 1 }
 0x4a8   :  { %3841 = vsyncpa [#allocation12], 1 }
 0x4a9   :  { %3842 = vsyncpa [#allocation4], 1 }

// kernel: tpu_custom_call.1
= control target key start
LH: loop header
LB: loop body
LE: loop exit
PB: predicated region body
PF: predicated region fallthrough
CT: control target
= control target key end

     0   :  { %12 = vsyncpa [#allocation3], 0  ;;  %s4953_s0 = inlined_call_operand.hbm [shape: bf16[16,768], index: 0, kind: input, shape index: {}]   ;;  %s4954_s1 = inlined_call_operand.hbm [shape: bf16[768,1024], index: 1, kind: input, shape index: {}]   ;;  %s4955_s2 = inlined_call_operand.hbm [shape: f32[1,1024], index: 2, kind: input, shape index: {}]   ;;  %s4956_s3 = inlined_call_operand.hbm [shape: bf16[1024,128], index: 3, kind: input, shape index: {}]   ;;  %s4957_s4 = inlined_call_operand.hbm [shape: f32[1,128], index: 4, kind: input, shape index: {}]   ;;  %s4958_s5 = inlined_call_operand.hbm [shape: bf16[128,128], index: 5, kind: input, shape index: {}]   ;;  %s4959_s6 = inlined_call_operand.hbm [shape: f32[1,128], index: 6, kind: input, shape index: {}]   ;;  %s4960_s7 = inlined_call_operand.hbm [shape: f32[16,128], index: 7, kind: output, shape index: {}]  }
   0x1   :  { %13 = vsyncpa [#allocation6], 0 }
   0x2   :  { %14 = vsyncpa [#allocation9], 0 }
   0x3   :  { %15 = vsyncpa [#allocation12], 0 }
   0x4   :  { %16 = vsyncpa [#allocation4], 0  ;;  %s4763_s24 = smov [#allocation5]   ;;  %s4577_s28 = scalar_lea.hbm %s4954_s1, 49152 }
   0x5   :  { %s34_s25 = sshll.u32 %s4763_s24, 4  ;;  %p4578_p0 = scmp.ne.s32.totalorder %s4954_s1, %s4577_s28  ;;  %s35_s25 = int_to_ptr.vmem [resolvable:$true] %s34_s25 }
   0x6   :  { %p4581_p1 = scmp.lt.u32.totalorder %s4577_s28, %s4954_s1 }
   0x8   :  { %p4583_p2 = pnand %p4581_p1, %p4578_p0 }
   0xa   :  { %4586 = shalt.err (!%p4583_p2)
}
   0xb   :  { %s4587_s10 = scalar_lea.vmem %s35_s25, 49152  ;;  %p4592_p4 = scmp.lt.s32.totalorder %s35_s25, %s35_s25 }
   0xc   :  { %p4588_p3 = scmp.ne.s32.totalorder %s35_s25, %s4587_s10  ;;  %p4593_p5 = scmp.lt.s32.totalorder %s4587_s10, %s4587_s10 }
   0xe   :  { %p4594_p6 = por %p4593_p5, %p4592_p4 }
  0x10   :  { %p4595_p7 = pnand %p4594_p6, %p4588_p3 }
  0x12   :  { %4598 = shalt.err (!%p4595_p7)
}
  0x13   :  { %s4764_s11 = smov 512   ;;  %s4765_s12 = smov 32  }
  0x14   :  { %40 = dma.hbm_to_vmem [thread:$0]  %s4954_s1, 49152, %s35_s25, [#allocation6], %s4764_s11, %s4764_s11, %s4765_s12  }
  0x15   :  { %s4766_s15 = smov [#allocation8]   ;;  %s4599_s19 = scalar_lea.hbm %s4956_s3, 8192 }
  0x16   :  { %s56_s16 = sshll.u32 %s4766_s15, 4  ;;  %p4600_p8 = scmp.ne.s32.totalorder %s4956_s3, %s4599_s19  ;;  %s57_s16 = int_to_ptr.vmem [resolvable:$true] %s56_s16 }
  0x17   :  { %p4603_p9 = scmp.lt.u32.totalorder %s4599_s19, %s4956_s3 }
  0x19   :  { %p4605_p10 = pnand %p4603_p9, %p4600_p8 }
  0x1b   :  { %4608 = shalt.err (!%p4605_p10)
}
  0x1c   :  { %s4609_s24 = scalar_lea.vmem %s57_s16, 8192  ;;  %p4614_p12 = scmp.lt.s32.totalorder %s57_s16, %s57_s16 }
  0x1d   :  { %p4610_p11 = scmp.ne.s32.totalorder %s57_s16, %s4609_s24  ;;  %p4615_p13 = scmp.lt.s32.totalorder %s4609_s24, %s4609_s24 }
  0x1f   :  { %p4616_p0 = por %p4615_p13, %p4614_p12 }
  0x21   :  { %p4617_p1 = pnand %p4616_p0, %p4610_p11 }
  0x23   :  { %4620 = shalt.err (!%p4617_p1)
}
  0x24   :  { %s4767_s1 = smov 64   ;;  %s4768_s25 = smov 4  }
  0x25   :  { %62 = dma.hbm_to_vmem [thread:$0]  %s4956_s3, 8192, %s57_s16, [#allocation9], %s4767_s1, %s4767_s1, %s4768_s25  }
  0x26   :  { %s4769_s28 = smov [#allocation11]   ;;  %s4770_s30 = smov [#allocation2]  }
  0x27   :  { %s78_s29 = sshll.u32 %s4769_s28, 4  ;;  %s22_s8 = sshll.u32 %s4770_s30, 4  ;;  %s79_s29 = int_to_ptr.vmem [resolvable:$true] %s78_s29  ;;  %s4845_s8 = int_to_ptr.vmem [resolvable:$true] %s22_s8 }
  0x28   :  { %s4621_s11 = scalar_lea.hbm %s4958_s5, 1024 }
  0x29   :  { %p4622_p2 = scmp.ne.s32.totalorder %s4958_s5, %s4621_s11  ;;  %p4625_p3 = scmp.lt.u32.totalorder %s4621_s11, %s4958_s5 }
  0x2b   :  { %p4627_p4 = pnand %p4625_p3, %p4622_p2 }
  0x2d   :  { %4630 = shalt.err (!%p4627_p4)
}
  0x2e   :  { %s4631_s3 = scalar_lea.vmem %s79_s29, 1024  ;;  %p4636_p6 = scmp.lt.s32.totalorder %s79_s29, %s79_s29 }
  0x2f   :  { %p4632_p5 = scmp.ne.s32.totalorder %s79_s29, %s4631_s3  ;;  %p4637_p7 = scmp.lt.s32.totalorder %s4631_s3, %s4631_s3 }
  0x31   :  { %p4638_p8 = por %p4637_p7, %p4636_p6 }
  0x33   :  { %p4639_p9 = pnand %p4638_p8, %p4632_p5 }
  0x35   :  { %4642 = shalt.err (!%p4639_p9)
}
  0x36   :  { %84 = dma.hbm_to_vmem [thread:$0]  %s4958_s5, 1024, %s79_s29, [#allocation12], %s4767_s1, %s4767_s1, %s4768_s25  }
  0x37   :  { %s4643_s20 = scalar_lea.hbm %s4953_s0, 768 }
  0x38   :  { %p4644_p10 = scmp.ne.s32.totalorder %s4953_s0, %s4643_s20  ;;  %p4647_p11 = scmp.lt.u32.totalorder %s4643_s20, %s4953_s0 }
  0x3a   :  { %p4649_p12 = pnand %p4647_p11, %p4644_p10 }
  0x3c   :  { %4652 = shalt.err (!%p4649_p12)
}
  0x3d   :  { %s4653_s26 = scalar_lea.vmem %s4845_s8, 768  ;;  %p4658_p0 = scmp.lt.s32.totalorder %s4845_s8, %s4845_s8 }
  0x3e   :  { %p4654_p13 = scmp.ne.s32.totalorder %s4845_s8, %s4653_s26  ;;  %p4659_p1 = scmp.lt.s32.totalorder %s4653_s26, %s4653_s26 }
  0x40   :  { %p4660_p2 = por %p4659_p1, %p4658_p0 }
  0x42   :  { %p4661_p3 = pnand %p4660_p2, %p4654_p13 }
  0x44   :  { %4664 = shalt.err (!%p4661_p3)
}
  0x45   :  { %s4771_s5 = smov 384   ;;  %s4772_s1 = smov 24  }
  0x46   :  { %28 = dma.hbm_to_vmem [thread:$0]  %s4953_s0, 768, %s4845_s8, [#allocation3], %s4771_s5, %s4771_s5, %s4772_s1  }
  0x47   :  { %s4773_s28 = smov [#allocation7]   ;;  %s4774_s30 = smov [#allocation10]  }
  0x48   :  { %s47_s29 = sshll.u32 %s4773_s28, 4  ;;  %s69_s9 = sshll.u32 %s4774_s30, 4  ;;  %s48_s29 = int_to_ptr.vmem [resolvable:$true] %s47_s29  ;;  %s70_s9 = int_to_ptr.vmem [resolvable:$true] %s69_s9 }
  0x49   :  { %s4665_s12 = scalar_lea.hbm %s4955_s2, 128 }
  0x4a   :  { %p4666_p4 = scmp.ne.s32.totalorder %s4955_s2, %s4665_s12  ;;  %p4669_p5 = scmp.lt.u32.totalorder %s4665_s12, %s4955_s2 }
  0x4c   :  { %p4671_p6 = pnand %p4669_p5, %p4666_p4 }
  0x4e   :  { %4674 = shalt.err (!%p4671_p6)
}
  0x4f   :  { %s4675_s0 = scalar_lea.vmem %s48_s29, 128  ;;  %p4680_p8 = scmp.lt.s32.totalorder %s48_s29, %s48_s29 }
  0x50   :  { %p4676_p7 = scmp.ne.s32.totalorder %s48_s29, %s4675_s0  ;;  %p4681_p9 = scmp.lt.s32.totalorder %s4675_s0, %s4675_s0 }
  0x52   :  { %p4682_p10 = por %p4681_p9, %p4680_p8 }
  0x54   :  { %p4683_p11 = pnand %p4682_p10, %p4676_p7 }
  0x56   :  { %4686 = shalt.err (!%p4683_p11)
}
  0x57   :  { %50 = dma.hbm_to_vmem [thread:$0]  %s4955_s2, 128, %s48_s29, [#allocation6]  }
  0x58   :  { %s4687_s19 = scalar_lea.hbm %s4957_s4, 16 }
  0x59   :  { %p4688_p12 = scmp.ne.s32.totalorder %s4957_s4, %s4687_s19  ;;  %p4691_p13 = scmp.lt.u32.totalorder %s4687_s19, %s4957_s4 }
  0x5b   :  { %p4693_p0 = pnand %p4691_p13, %p4688_p12 }
  0x5d   :  { %4696 = shalt.err (!%p4693_p0)
}
  0x5e   :  { %s4697_s24 = scalar_lea.vmem %s70_s9, 16  ;;  %s4701_s26 = scalar_lea.vmem %s70_s9, 32 }
  0x5f   :  { %p4698_p1 = scmp.ne.s32.totalorder %s70_s9, %s4697_s24  ;;  %p4702_p2 = scmp.lt.s32.totalorder %s70_s9, %s70_s9 }
  0x60   :  { %p4703_p3 = scmp.lt.s32.totalorder %s4701_s26, %s4697_s24 }
  0x62   :  { %p4704_p4 = por %p4703_p3, %p4702_p2 }
  0x64   :  { %p4705_p5 = pnand %p4704_p4, %p4698_p1 }
  0x66   :  { %4708 = shalt.err (!%p4705_p5)
}
  0x67   :  { %72 = dma.hbm_to_vmem [thread:$0]  %s4957_s4, 16, %s70_s9, [#allocation9]  }
  0x68   :  { %s4775_s1 = smov [#allocation13]   ;;  %s4709_s29 = scalar_lea.hbm %s4959_s6, 16 }
  0x69   :  { %s91_s25 = sshll.u32 %s4775_s1, 4  ;;  %p4710_p6 = scmp.ne.s32.totalorder %s4959_s6, %s4709_s29  ;;  %s92_s25 = int_to_ptr.vmem [resolvable:$true] %s91_s25 }
  0x6a   :  { %p4713_p7 = scmp.lt.u32.totalorder %s4709_s29, %s4959_s6 }
  0x6c   :  { %p4715_p8 = pnand %p4713_p7, %p4710_p6 }
  0x6e   :  { %4718 = shalt.err (!%p4715_p8)
}
  0x6f   :  { %s4719_s13 = scalar_lea.vmem %s92_s25, 16  ;;  %s4723_s4 = scalar_lea.vmem %s92_s25, 32 }
  0x70   :  { %p4720_p9 = scmp.ne.s32.totalorder %s92_s25, %s4719_s13  ;;  %p4724_p10 = scmp.lt.s32.totalorder %s92_s25, %s92_s25 }
  0x71   :  { %p4725_p11 = scmp.lt.s32.totalorder %s4723_s4, %s4719_s13 }
  0x73   :  { %p4726_p12 = por %p4725_p11, %p4724_p10 }
  0x75   :  { %p4727_p13 = pnand %p4726_p12, %p4720_p9 }
  0x77   :  { %4730 = shalt.err (!%p4727_p13)
}
  0x78   :  { %94 = dma.hbm_to_vmem [thread:$0]  %s4959_s6, 16, %s92_s25, [#allocation12]  }
  0x79   :  { %4753 = dma.done.wait [#allocation3], 768  }
  0x7a   :  { %4754 = vsyncadd [#allocation3], 4294966528 }
  0x7b   :  { %4755 = dma.done.wait [#allocation6], 49280  }
  0x7c   :  { %4756 = vsyncadd [#allocation6], 4294918016 }
  0x7d   :  { %4757 = dma.done.wait [#allocation9], 8208  }
  0x7e   :  { %4758 = vsyncadd [#allocation9], 4294959088 }
  0x7f   :  { %4759 = dma.done.wait [#allocation12], 1040  }
  0x80   :  { %4760 = vsyncadd [#allocation12], 4294966256  ;;  %v123_v0 = vld [vmem:[#allocation5] sm:$0xff]  ;;  %v124_v2 = vld [vmem:[#allocation5 + $0x8] sm:$0xff]  ;;  %vm4777_vm0 = vmmov 0   ;;  %s4778_s6 = smov [#allocation14]  }
  0x81   :  { %v127_v1 = vld [vmem:[#allocation5 + $0x20] sm:$0xff]  ;;  %v128_v4 = vld [vmem:[#allocation5 + $0x28] sm:$0xff]  ;;  %s3828_s15 = sshll.u32 %s4778_s6, 4  ;;  %s3829_s15 = int_to_ptr.vmem [resolvable:$true] %s3828_s15 }
  0x82   :  { %v3850_v3 = vcombine.high %v123_v0, %v127_v1  ;;  %v3849_v5 = vcombine.low %v123_v0, %v127_v1  ;;  %v131_v6 = vld [vmem:[#allocation5 + $0x40] sm:$0xff]  ;;  %v3852_v8 = vcombine.high %v124_v2, %v128_v4  ;;  %v3851_v9 = vcombine.low %v124_v2, %v128_v4  ;;  %v132_v11 = vld [vmem:[#allocation5 + $0x48] sm:$0xff]  ;;  %s4731_s3 = scalar_lea.vmem %s3829_s15, 256  ;;  %p4736_p1 = scmp.lt.s32.totalorder %s3829_s15, %s3829_s15 }
  0x83   :  { %v135_v7 = vld [vmem:[#allocation5 + $0x60] sm:$0xff]  ;;  %v136_v12 = vld [vmem:[#allocation5 + $0x68] sm:$0xff]  ;;  %p4732_p0 = scmp.ne.s32.totalorder %s3829_s15, %s4731_s3  ;;  %p4737_p2 = scmp.lt.s32.totalorder %s4731_s3, %s4731_s3 }
  0x84   :  { %v3858_v10 = vcombine.high %v131_v6, %v135_v7  ;;  %v139_v13 = vld [vmem:[#allocation5 + $0x80] sm:$0xff]  ;;  %2499 = vmatprep.subr.bf16.mxu0 %v3850_v3  ;;  %v3860_v14 = vcombine.high %v132_v11, %v136_v12  ;;  %v140_v16 = vld [vmem:[#allocation5 + $0x88] sm:$0xff]  ;;  %2628 = vmatprep.subr.bf16.mxu1 %v3852_v8  ;;  %v3857_v18 = vcombine.low %v131_v6, %v135_v7 }
  0x85   :  { %v143_v15 = vld [vmem:[#allocation5 + $0xa0] sm:$0xff]  ;;  %v144_v17 = vld [vmem:[#allocation5 + $0xa8] sm:$0xff]  ;;  %2500 = vmatpush1.bf16.msra.mxu0 %v3849_v5  ;;  %2629 = vmatpush1.bf16.msra.mxu1 %v3851_v9  ;;  %v3859_v19 = vcombine.low %v132_v11, %v136_v12  ;;  %p4738_p3 = por %p4737_p2, %p4736_p1 }
  0x86   :  { %2501 = vmatprep.subr.bf16.mxu0 %v3858_v10  ;;  %v3866_v20 = vcombine.high %v139_v13, %v143_v15  ;;  %2630 = vmatprep.subr.bf16.mxu1 %v3860_v14  ;;  %v3868_v21 = vcombine.high %v140_v16, %v144_v17  ;;  %v147_v22 = vld [vmem:[#allocation5 + $0xc0] sm:$0xff]  ;;  %v148_v24 = vld [vmem:[#allocation5 + $0xc8] sm:$0xff]  ;;  %v3865_v26 = vcombine.low %v139_v13, %v143_v15 }
  0x87   :  { %v151_v23 = vld [vmem:[#allocation5 + $0xe0] sm:$0xff]  ;;  %v152_v25 = vld [vmem:[#allocation5 + $0xe8] sm:$0xff]  ;;  %v3867_v27 = vcombine.low %v140_v16, %v144_v17  ;;  %p4739_p4 = pnand %p4738_p3, %p4732_p0 }
  0x88   :  { %v3874_v28 = vcombine.high %v147_v22, %v151_v23  ;;  %v3876_v29 = vcombine.high %v148_v24, %v152_v25  ;;  %v155_v30 = vld [vmem:[#allocation5 + $0x100] sm:$0xff]  ;;  %v156_v32 = vld [vmem:[#allocation5 + $0x108] sm:$0xff]  ;;  %v3873_v34 = vcombine.low %v147_v22, %v151_v23  ;;  %v3875_v35 = vcombine.low %v148_v24, %v152_v25 }
  0x89   :  { %2502 = vmatpush1.bf16.msra.mxu0 %v3857_v18  ;;  %2631 = vmatpush1.bf16.msra.mxu1 %v3859_v19  ;;  %v159_v31 = vld [vmem:[#allocation5 + $0x120] sm:$0xff]  ;;  %v160_v33 = vld [vmem:[#allocation5 + $0x128] sm:$0xff] }
  0x8a   :  { %2503 = vmatprep.subr.bf16.mxu0 %v3866_v20  ;;  %2632 = vmatprep.subr.bf16.mxu1 %v3868_v21  ;;  %v3882_v36 = vcombine.high %v155_v30, %v159_v31  ;;  %v3884_v37 = vcombine.high %v156_v32, %v160_v33  ;;  %v163_v38 = vld [vmem:[#allocation5 + $0x140] sm:$0xff]  ;;  %v164_v40 = vld [vmem:[#allocation5 + $0x148] sm:$0xff]  ;;  %v3881_v42 = vcombine.low %v155_v30, %v159_v31 }
  0x8b   :  { %v167_v39 = vld [vmem:[#allocation5 + $0x160] sm:$0xff]  ;;  %v168_v41 = vld [vmem:[#allocation5 + $0x168] sm:$0xff]  ;;  %v3883_v43 = vcombine.low %v156_v32, %v160_v33 }
  0x8c   :  { %v3890_v44 = vcombine.high %v163_v38, %v167_v39  ;;  %v3892_v45 = vcombine.high %v164_v40, %v168_v41  ;;  %v171_v46 = vld [vmem:[#allocation5 + $0x180] sm:$0xff]  ;;  %v172_v48 = vld [vmem:[#allocation5 + $0x188] sm:$0xff]  ;;  %v3889_v50 = vcombine.low %v163_v38, %v167_v39  ;;  %v3891_v51 = vcombine.low %v164_v40, %v168_v41 }
  0x8d   :  { %2504 = vmatpush1.bf16.msra.mxu0 %v3865_v26  ;;  %2633 = vmatpush1.bf16.msra.mxu1 %v3867_v27  ;;  %v175_v47 = vld [vmem:[#allocation5 + $0x1a0] sm:$0xff]  ;;  %v176_v49 = vld [vmem:[#allocation5 + $0x1a8] sm:$0xff] }
  0x8e   :  { %2505 = vmatprep.subr.bf16.mxu0 %v3874_v28  ;;  %2634 = vmatprep.subr.bf16.mxu1 %v3876_v29  ;;  %v3898_v52 = vcombine.high %v171_v46, %v175_v47  ;;  %v3900_v53 = vcombine.high %v172_v48, %v176_v49  ;;  %v179_v54 = vld [vmem:[#allocation5 + $0x1c0] sm:$0xff]  ;;  %v4490_v56 = vld [vmem:[#allocation2 + $0x4] ss:$24 sps:$4 sm:$0xff]   ;;  %v3897_v59 = vcombine.low %v171_v46, %v175_v47 }
  0x8f   :  { %v183_v55 = vld [vmem:[#allocation5 + $0x1e0] sm:$0xff]  ;;  %v180_v57 = vld [vmem:[#allocation5 + $0x1c8] sm:$0xff]  ;;  %2531 = vmatprep.mubr.bf16.mxu0 %v4490_v56  ;;  %v3899_v60 = vcombine.low %v172_v48, %v176_v49  ;;  %2660 = vmatprep.mubr.bf16.mxu1 %v4490_v56 }
  0x90   :  { %v184_v58 = vld [vmem:[#allocation5 + $0x1e8] sm:$0xff]  ;;  %v3906_v61 = vcombine.high %v179_v54, %v183_v55  ;;  %v187_v63 = vld [vmem:[#allocation5 + $0x200] sm:$0xff]  ;;  %v3905_v3 = vcombine.low %v179_v54, %v183_v55 }
  0x91   :  { %2506 = vmatpush1.bf16.msra.mxu0 %v3873_v34  ;;  %2635 = vmatpush1.bf16.msra.mxu1 %v3875_v35  ;;  %v3908_v62 = vcombine.high %v180_v57, %v184_v58  ;;  %v191_v0 = vld [vmem:[#allocation5 + $0x220] sm:$0xff]  ;;  %v188_v1 = vld [vmem:[#allocation5 + $0x208] sm:$0xff]  ;;  %v3907_v4 = vcombine.low %v180_v57, %v184_v58 }
  0x92   :  { %2507 = vmatprep.subr.bf16.mxu0 %v3882_v36  ;;  %2636 = vmatprep.subr.bf16.mxu1 %v3884_v37  ;;  %v192_v2 = vld [vmem:[#allocation5 + $0x228] sm:$0xff]  ;;  %v3914_v5 = vcombine.high %v187_v63, %v191_v0  ;;  %v195_v7 = vld [vmem:[#allocation5 + $0x240] sm:$0xff]  ;;  %v3913_v11 = vcombine.low %v187_v63, %v191_v0 }
  0x93   :  { %v3916_v6 = vcombine.high %v188_v1, %v192_v2  ;;  %v199_v8 = vld [vmem:[#allocation5 + $0x260] sm:$0xff]  ;;  %v196_v9 = vld [vmem:[#allocation5 + $0x248] sm:$0xff]  ;;  %v3915_v12 = vcombine.low %v188_v1, %v192_v2 }
  0x94   :  { %v200_v10 = vld [vmem:[#allocation5 + $0x268] sm:$0xff]  ;;  %v3922_v13 = vcombine.high %v195_v7, %v199_v8  ;;  %v203_v15 = vld [vmem:[#allocation5 + $0x280] sm:$0xff]  ;;  %v3921_v19 = vcombine.low %v195_v7, %v199_v8 }
  0x95   :  { %2508 = vmatpush1.bf16.msra.mxu0 %v3881_v42  ;;  %2637 = vmatpush1.bf16.msra.mxu1 %v3883_v43  ;;  %v3924_v14 = vcombine.high %v196_v9, %v200_v10  ;;  %v207_v16 = vld [vmem:[#allocation5 + $0x2a0] sm:$0xff]  ;;  %v204_v17 = vld [vmem:[#allocation5 + $0x288] sm:$0xff]  ;;  %v3923_v20 = vcombine.low %v196_v9, %v200_v10 }
  0x96   :  { %2509 = vmatprep.subr.bf16.mxu0 %v3890_v44  ;;  %2638 = vmatprep.subr.bf16.mxu1 %v3892_v45  ;;  %v208_v18 = vld [vmem:[#allocation5 + $0x2a8] sm:$0xff]  ;;  %v3930_v21 = vcombine.high %v203_v15, %v207_v16  ;;  %v211_v23 = vld [vmem:[#allocation5 + $0x2c0] sm:$0xff]  ;;  %v3929_v27 = vcombine.low %v203_v15, %v207_v16 }
  0x97   :  { %v3932_v22 = vcombine.high %v204_v17, %v208_v18  ;;  %v215_v24 = vld [vmem:[#allocation5 + $0x2e0] sm:$0xff]  ;;  %v212_v25 = vld [vmem:[#allocation5 + $0x2c8] sm:$0xff]  ;;  %v3931_v28 = vcombine.low %v204_v17, %v208_v18  ;;  %v4493_v18 = vld [vmem:[#allocation2 + $0xc] ss:$24 sps:$4 sm:$0xff]  }
  0x98   :  { %v216_v26 = vld [vmem:[#allocation5 + $0x2e8] sm:$0xff]  ;;  %v3938_v29 = vcombine.high %v211_v23, %v215_v24  ;;  %v219_v31 = vld [vmem:[#allocation5 + $0x300] sm:$0xff]  ;;  %v3937_v35 = vcombine.low %v211_v23, %v215_v24 }
  0x99   :  { %2510 = vmatpush1.bf16.msra.mxu0 %v3889_v50  ;;  %2639 = vmatpush1.bf16.msra.mxu1 %v3891_v51  ;;  %v3940_v30 = vcombine.high %v212_v25, %v216_v26  ;;  %v223_v32 = vld [vmem:[#allocation5 + $0x320] sm:$0xff]  ;;  %v220_v33 = vld [vmem:[#allocation5 + $0x308] sm:$0xff]  ;;  %v3939_v36 = vcombine.low %v212_v25, %v216_v26 }
  0x9a   :  { %2511 = vmatprep.subr.bf16.mxu0 %v3898_v52  ;;  %2640 = vmatprep.subr.bf16.mxu1 %v3900_v53  ;;  %v224_v34 = vld [vmem:[#allocation5 + $0x328] sm:$0xff]  ;;  %v3946_v37 = vcombine.high %v219_v31, %v223_v32  ;;  %v227_v39 = vld [vmem:[#allocation5 + $0x340] sm:$0xff]  ;;  %v3945_v43 = vcombine.low %v219_v31, %v223_v32 }
  0x9b   :  { %v3948_v38 = vcombine.high %v220_v33, %v224_v34  ;;  %v231_v40 = vld [vmem:[#allocation5 + $0x360] sm:$0xff]  ;;  %v228_v41 = vld [vmem:[#allocation5 + $0x348] sm:$0xff]  ;;  %v3947_v44 = vcombine.low %v220_v33, %v224_v34 }
  0x9c   :  { %v232_v42 = vld [vmem:[#allocation5 + $0x368] sm:$0xff]  ;;  %v3954_v45 = vcombine.high %v227_v39, %v231_v40  ;;  %v235_v47 = vld [vmem:[#allocation5 + $0x380] sm:$0xff]  ;;  %v3953_v51 = vcombine.low %v227_v39, %v231_v40 }
  0x9d   :  { %2512 = vmatpush1.bf16.msra.mxu0 %v3897_v59  ;;  %2641 = vmatpush1.bf16.msra.mxu1 %v3899_v60  ;;  %v3956_v46 = vcombine.high %v228_v41, %v232_v42  ;;  %v239_v48 = vld [vmem:[#allocation5 + $0x3a0] sm:$0xff]  ;;  %v236_v49 = vld [vmem:[#allocation5 + $0x388] sm:$0xff]  ;;  %v3955_v52 = vcombine.low %v228_v41, %v232_v42 }
  0x9e   :  { %2513 = vmatprep.subr.bf16.mxu0 %v3906_v61  ;;  %2642 = vmatprep.subr.bf16.mxu1 %v3908_v62  ;;  %v240_v50 = vld [vmem:[#allocation5 + $0x3a8] sm:$0xff]  ;;  %v3962_v53 = vcombine.high %v235_v47, %v239_v48  ;;  %v243_v55 = vld [vmem:[#allocation5 + $0x3c0] sm:$0xff]  ;;  %v3961_v59 = vcombine.low %v235_v47, %v239_v48 }
  0x9f   :  { %v3964_v54 = vcombine.high %v236_v49, %v240_v50  ;;  %v247_v56 = vld [vmem:[#allocation5 + $0x3e0] sm:$0xff]  ;;  %v244_v57 = vld [vmem:[#allocation5 + $0x3c8] sm:$0xff]  ;;  %v3963_v60 = vcombine.low %v236_v49, %v240_v50 }
  0xa0   :  { %v248_v58 = vld [vmem:[#allocation5 + $0x3e8] sm:$0xff]  ;;  %v3970_v61 = vcombine.high %v243_v55, %v247_v56  ;;  %v251_v63 = vld [vmem:[#allocation5 + $0x400] sm:$0xff] }
  0xa1   :  { %2514 = vmatpush1.bf16.msra.mxu0 %v3905_v3  ;;  %2643 = vmatpush1.bf16.msra.mxu1 %v3907_v4  ;;  %v3972_v62 = vcombine.high %v244_v57, %v248_v58  ;;  %v255_v0 = vld [vmem:[#allocation5 + $0x420] sm:$0xff]  ;;  %v252_v1 = vld [vmem:[#allocation5 + $0x408] sm:$0xff]  ;;  %v3969_v3 = vcombine.low %v243_v55, %v247_v56  ;;  %v3971_v4 = vcombine.low %v244_v57, %v248_v58 }
  0xa2   :  { %2515 = vmatprep.subr.bf16.mxu0 %v3914_v5  ;;  %2644 = vmatprep.subr.bf16.mxu1 %v3916_v6  ;;  %v256_v2 = vld [vmem:[#allocation5 + $0x428] sm:$0xff]  ;;  %v3978_v5 = vcombine.high %v251_v63, %v255_v0  ;;  %v259_v7 = vld [vmem:[#allocation5 + $0x440] sm:$0xff] }
  0xa3   :  { %v3980_v6 = vcombine.high %v252_v1, %v256_v2  ;;  %v263_v8 = vld [vmem:[#allocation5 + $0x460] sm:$0xff]  ;;  %v4492_v9 = vld [vmem:[#allocation2] ss:$24 sps:$4 sm:$0xff]  }
  0xa4   :  { %v260_v10 = vld [vmem:[#allocation5 + $0x448] sm:$0xff]  ;;  %v267_v15 = vld [vmem:[#allocation5 + $0x480] sm:$0xff] }
  0xa5   :  { %2516 = vmatpush1.bf16.msra.mxu0 %v3913_v11  ;;  %2645 = vmatpush1.bf16.msra.mxu1 %v3915_v12  ;;  %v264_v11 = vld [vmem:[#allocation5 + $0x468] sm:$0xff]  ;;  %v3977_v12 = vcombine.low %v251_v63, %v255_v0  ;;  %v271_v17 = vld [vmem:[#allocation5 + $0x4a0] sm:$0xff] }
  0xa6   :  { %2517 = vmatprep.subr.bf16.mxu0 %v3922_v13  ;;  %2646 = vmatprep.subr.bf16.mxu1 %v3924_v14  ;;  %v3979_v13 = vcombine.low %v252_v1, %v256_v2  ;;  %v3986_v14 = vcombine.high %v259_v7, %v263_v8  ;;  %v3988_v16 = vcombine.high %v260_v10, %v264_v11  ;;  %v275_v24 = vld [vmem:[#allocation5 + $0x4c0] sm:$0xff]  ;;  %v284_v34 = vld [vmem:[#allocation5 + $0x508] sm:$0xff] }
  0xa7   :  { %v3994_v23 = vcombine.high %v267_v15, %v271_v17  ;;  %v279_v25 = vld [vmem:[#allocation5 + $0x4e0] sm:$0xff]  ;;  %v292_v42 = vld [vmem:[#allocation5 + $0x548] sm:$0xff] }
  0xa8   :  { %v4002_v31 = vcombine.high %v275_v24, %v279_v25  ;;  %v283_v32 = vld [vmem:[#allocation5 + $0x500] sm:$0xff]  ;;  %v300_v50 = vld [vmem:[#allocation5 + $0x588] sm:$0xff] }
  0xa9   :  { %2518 = vmatpush1.bf16.msra.mxu0 %v3921_v19  ;;  %2647 = vmatpush1.bf16.msra.mxu1 %v3923_v20  ;;  %v268_v19 = vld [vmem:[#allocation5 + $0x488] sm:$0xff]  ;;  %v287_v33 = vld [vmem:[#allocation5 + $0x520] sm:$0xff] }
  0xaa   :  { %2519 = vmatprep.subr.bf16.mxu0 %v3930_v21  ;;  %2648 = vmatprep.subr.bf16.mxu1 %v3932_v22  ;;  %v272_v20 = vld [vmem:[#allocation5 + $0x4a8] sm:$0xff]  ;;  %v3985_v21 = vcombine.low %v259_v7, %v263_v8  ;;  %v3987_v22 = vcombine.low %v260_v10, %v264_v11  ;;  %v4010_v39 = vcombine.high %v283_v32, %v287_v33  ;;  %v291_v40 = vld [vmem:[#allocation5 + $0x540] sm:$0xff] }
  0xab   :  { %v3996_v26 = vcombine.high %v268_v19, %v272_v20  ;;  %v295_v41 = vld [vmem:[#allocation5 + $0x560] sm:$0xff]  ;;  %v308_v58 = vld [vmem:[#allocation5 + $0x5c8] sm:$0xff] }
  0xac   :  { %v4018_v47 = vcombine.high %v291_v40, %v295_v41  ;;  %v299_v48 = vld [vmem:[#allocation5 + $0x580] sm:$0xff]  ;;  %v316_v2 = vld [vmem:[#allocation5 + $0x608] sm:$0xff] }
  0xad   :  { %2520 = vmatpush1.bf16.msra.mxu0 %v3929_v27  ;;  %2649 = vmatpush1.bf16.msra.mxu1 %v3931_v28  ;;  %v276_v27 = vld [vmem:[#allocation5 + $0x4c8] sm:$0xff]  ;;  %v303_v49 = vld [vmem:[#allocation5 + $0x5a0] sm:$0xff] }
  0xae   :  { %2521 = vmatprep.subr.bf16.mxu0 %v3938_v29  ;;  %2650 = vmatprep.subr.bf16.mxu1 %v3940_v30  ;;  %v280_v28 = vld [vmem:[#allocation5 + $0x4e8] sm:$0xff]  ;;  %v3993_v29 = vcombine.low %v267_v15, %v271_v17  ;;  %v3995_v30 = vcombine.low %v268_v19, %v272_v20  ;;  %v4026_v55 = vcombine.high %v299_v48, %v303_v49  ;;  %v307_v56 = vld [vmem:[#allocation5 + $0x5c0] sm:$0xff] }
  0xaf   :  { %v311_v57 = vld [vmem:[#allocation5 + $0x5e0] sm:$0xff]  ;;  %v324_v10 = vld [vmem:[#allocation5 + $0x648] sm:$0xff] }
  0xb0   :  { %v4034_v63 = vcombine.high %v307_v56, %v311_v57  ;;  %v315_v0 = vld [vmem:[#allocation5 + $0x600] sm:$0xff]  ;;  %v336_v20 = vld [vmem:[#allocation5 + $0x6a8] sm:$0xff] }
  0xb1   :  { %2522 = vmatpush1.bf16.msra.mxu0 %v3937_v35  ;;  %2651 = vmatpush1.bf16.msra.mxu1 %v3939_v36  ;;  %v4004_v35 = vcombine.high %v276_v27, %v280_v28  ;;  %v288_v36 = vld [vmem:[#allocation5 + $0x528] sm:$0xff]  ;;  %v319_v1 = vld [vmem:[#allocation5 + $0x620] sm:$0xff] }
  0xb2   :  { %2523 = vmatprep.subr.bf16.mxu0 %v3946_v37  ;;  %2652 = vmatprep.subr.bf16.mxu1 %v3948_v38  ;;  %v4001_v37 = vcombine.low %v275_v24, %v279_v25  ;;  %v4003_v38 = vcombine.low %v276_v27, %v280_v28  ;;  %v4042_v7 = vcombine.high %v315_v0, %v319_v1  ;;  %v323_v8 = vld [vmem:[#allocation5 + $0x640] sm:$0xff]  ;;  %v344_v28 = vld [vmem:[#allocation5 + $0x6e8] sm:$0xff] }
  0xb3   :  { %v335_v17 = vld [vmem:[#allocation5 + $0x6a0] sm:$0xff] }
  0xb4   :  { %v339_v24 = vld [vmem:[#allocation5 + $0x6c0] sm:$0xff] }
  0xb5   :  { %2524 = vmatpush1.bf16.msra.mxu0 %v3945_v43  ;;  %2653 = vmatpush1.bf16.msra.mxu1 %v3947_v44  ;;  %v4012_v43 = vcombine.high %v284_v34, %v288_v36  ;;  %v296_v44 = vld [vmem:[#allocation5 + $0x568] sm:$0xff]  ;;  %v343_v25 = vld [vmem:[#allocation5 + $0x6e0] sm:$0xff] }
  0xb6   :  { %2525 = vmatprep.subr.bf16.mxu0 %v3954_v45  ;;  %2654 = vmatprep.subr.bf16.mxu1 %v3956_v46  ;;  %v4009_v45 = vcombine.low %v283_v32, %v287_v33  ;;  %v4011_v46 = vcombine.low %v284_v34, %v288_v36  ;;  %v347_v32 = vld [vmem:[#allocation5 + $0x700] sm:$0xff]  ;;  %v348_v34 = vld [vmem:[#allocation5 + $0x708] sm:$0xff] }
  0xb7   :  { %v351_v33 = vld [vmem:[#allocation5 + $0x720] sm:$0xff]  ;;  %v352_v36 = vld [vmem:[#allocation5 + $0x728] sm:$0xff] }
  0xb9   :  { %2526 = vmatpush1.bf16.msra.mxu0 %v3953_v51  ;;  %2655 = vmatpush1.bf16.msra.mxu1 %v3955_v52  ;;  %v4020_v51 = vcombine.high %v292_v42, %v296_v44  ;;  %v304_v52 = vld [vmem:[#allocation5 + $0x5a8] sm:$0xff] }
  0xba   :  { %2527 = vmatprep.subr.bf16.mxu0 %v3962_v53  ;;  %2656 = vmatprep.subr.bf16.mxu1 %v3964_v54  ;;  %v4017_v53 = vcombine.low %v291_v40, %v295_v41  ;;  %v4019_v54 = vcombine.low %v292_v42, %v296_v44  ;;  %v355_v40 = vld [vmem:[#allocation5 + $0x740] sm:$0xff]  ;;  %v356_v42 = vld [vmem:[#allocation5 + $0x748] sm:$0xff] }
  0xbb   :  { %v359_v41 = vld [vmem:[#allocation5 + $0x760] sm:$0xff]  ;;  %v360_v44 = vld [vmem:[#allocation5 + $0x768] sm:$0xff] }
  0xbd   :  { %2528 = vmatpush1.bf16.msra.mxu0 %v3961_v59  ;;  %2657 = vmatpush1.bf16.msra.mxu1 %v3963_v60  ;;  %v4028_v59 = vcombine.high %v300_v50, %v304_v52  ;;  %v312_v60 = vld [vmem:[#allocation5 + $0x5e8] sm:$0xff] }
  0xbe   :  { %2529 = vmatprep.subr.bf16.mxu0 %v3970_v61  ;;  %2658 = vmatprep.subr.bf16.mxu1 %v3972_v62  ;;  %v4025_v61 = vcombine.low %v299_v48, %v303_v49  ;;  %v4027_v62 = vcombine.low %v300_v50, %v304_v52  ;;  %v363_v48 = vld [vmem:[#allocation5 + $0x780] sm:$0xff]  ;;  %v364_v50 = vld [vmem:[#allocation5 + $0x788] sm:$0xff] }
  0xbf   :  { %v367_v49 = vld [vmem:[#allocation5 + $0x7a0] sm:$0xff]  ;;  %v368_v52 = vld [vmem:[#allocation5 + $0x7a8] sm:$0xff] }
  0xc1   :  { %2530 = vmatpush1.bf16.msra.mxu0 %v3969_v3  ;;  %2659 = vmatpush1.bf16.msra.mxu1 %v3971_v4  ;;  %v4036_v3 = vcombine.high %v308_v58, %v312_v60  ;;  %v320_v4 = vld [vmem:[#allocation5 + $0x628] sm:$0xff] }
  0xc2   :  { %2542 = vmatprep.subr.bf16.mxu0 %v3978_v5  ;;  %2671 = vmatprep.subr.bf16.mxu1 %v3980_v6  ;;  %v4033_v5 = vcombine.low %v307_v56, %v311_v57  ;;  %v4035_v6 = vcombine.low %v308_v58, %v312_v60  ;;  %v4044_v11 = vcombine.high %v316_v2, %v320_v4  ;;  %v371_v56 = vld [vmem:[#allocation5 + $0x7c0] sm:$0xff]  ;;  %v372_v58 = vld [vmem:[#allocation5 + $0x7c8] sm:$0xff] }
  0xc3   :  { %v375_v57 = vld [vmem:[#allocation5 + $0x7e0] sm:$0xff]  ;;  %v376_v60 = vld [vmem:[#allocation5 + $0x7e8] sm:$0xff] }
  0xc4   :  { %2532 = vmatmul.mubr.bf16.vlgmr.msra.gmra.mrb[0].mxu0 %v4492_v9  ;;  %2661 = vmatmul.mubr.bf16.vlgmr.msra.gmra.mrb[0].mxu1 %v4492_v9  ;;  %v327_v9 = vld [vmem:[#allocation5 + $0x660] sm:$0xff] }
  0xc5   :  { %2543 = vmatpush1.bf16.msra.mxu0 %v3977_v12  ;;  %2672 = vmatpush1.bf16.msra.mxu1 %v3979_v13  ;;  %v328_v12 = vld [vmem:[#allocation5 + $0x668] sm:$0xff]  ;;  %v4041_v13 = vcombine.low %v315_v0, %v319_v1  ;;  %v4050_v15 = vcombine.high %v323_v8, %v327_v9  ;;  %v379_v0 = vld [vmem:[#allocation5 + $0x800] sm:$0xff] }
  0xc6   :  { %2544 = vmatprep.subr.bf16.mxu0 %v3986_v14  ;;  %2673 = vmatprep.subr.bf16.mxu1 %v3988_v16  ;;  %v4043_v14 = vcombine.low %v316_v2, %v320_v4  ;;  %v331_v16 = vld [vmem:[#allocation5 + $0x680] sm:$0xff]  ;;  %v4052_v19 = vcombine.high %v324_v10, %v328_v12  ;;  %v380_v2 = vld [vmem:[#allocation5 + $0x808] sm:$0xff] }
  0xc7   :  { %2574 = vmatprep.mubr.bf16.mxu0 %v4493_v18  ;;  %2703 = vmatprep.mubr.bf16.mxu1 %v4493_v18  ;;  %v332_v18 = vld [vmem:[#allocation5 + $0x688] sm:$0xff]  ;;  %v383_v1 = vld [vmem:[#allocation5 + $0x820] sm:$0xff] }
  0xc8   :  { %v4060_v27 = vcombine.high %v332_v18, %v336_v20  ;;  %v384_v4 = vld [vmem:[#allocation5 + $0x828] sm:$0xff] }
  0xc9   :  { %2545 = vmatpush1.bf16.msra.mxu0 %v3985_v21  ;;  %2674 = vmatpush1.bf16.msra.mxu1 %v3987_v22  ;;  %v4049_v21 = vcombine.low %v323_v8, %v327_v9  ;;  %v4051_v22 = vcombine.low %v324_v10, %v328_v12  ;;  %v4495_v8 = vld [vmem:[#allocation2 + $0x8] ss:$24 sps:$4 sm:$0xff]   ;;  %v387_v9 = vld [vmem:[#allocation5 + $0x840] sm:$0xff]  ;;  %v4108_v12 = vcombine.high %v380_v2, %v384_v4 }
  0xca   :  { %2546 = vmatprep.subr.bf16.mxu0 %v3994_v23  ;;  %2675 = vmatprep.subr.bf16.mxu1 %v3996_v26  ;;  %v4058_v23 = vcombine.high %v331_v16, %v335_v17  ;;  %v340_v26 = vld [vmem:[#allocation5 + $0x6c8] sm:$0xff]  ;;  %v391_v10 = vld [vmem:[#allocation5 + $0x860] sm:$0xff] }
  0xcd   :  { %2547 = vmatpush1.bf16.msra.mxu0 %v3993_v29  ;;  %2676 = vmatpush1.bf16.msra.mxu1 %v3995_v30  ;;  %v4057_v29 = vcombine.low %v331_v16, %v335_v17  ;;  %v4059_v30 = vcombine.low %v332_v18, %v336_v20  ;;  %v4107_v16 = vcombine.low %v380_v2, %v384_v4  ;;  %v399_v18 = vld [vmem:[#allocation5 + $0x8a0] sm:$0xff]  ;;  %v400_v20 = vld [vmem:[#allocation5 + $0x8a8] sm:$0xff] }
  0xce   :  { %2548 = vmatprep.subr.bf16.mxu0 %v4002_v31  ;;  %2677 = vmatprep.subr.bf16.mxu1 %v4004_v35  ;;  %v4066_v31 = vcombine.high %v339_v24, %v343_v25  ;;  %v4068_v35 = vcombine.high %v340_v26, %v344_v28  ;;  %v4114_v17 = vcombine.high %v387_v9, %v391_v10  ;;  %v447_v4 = vld [vmem:[#allocation5 + $0xa20] sm:$0xff] }
  0xd1   :  { %2549 = vmatpush1.bf16.msra.mxu0 %v4001_v37  ;;  %2678 = vmatpush1.bf16.msra.mxu1 %v4003_v38  ;;  %v4065_v37 = vcombine.low %v339_v24, %v343_v25  ;;  %v4067_v38 = vcombine.low %v340_v26, %v344_v28  ;;  %v403_v26 = vld [vmem:[#allocation5 + $0x8c0] sm:$0xff]  ;;  %v404_v28 = vld [vmem:[#allocation5 + $0x8c8] sm:$0xff] }
  0xd2   :  { %2550 = vmatprep.subr.bf16.mxu0 %v4010_v39  ;;  %2679 = vmatprep.subr.bf16.mxu1 %v4012_v43  ;;  %v4074_v39 = vcombine.high %v347_v32, %v351_v33  ;;  %v4076_v43 = vcombine.high %v348_v34, %v352_v36 }
  0xd5   :  { %2551 = vmatpush1.bf16.msra.mxu0 %v4009_v45  ;;  %2680 = vmatpush1.bf16.msra.mxu1 %v4011_v46  ;;  %v4073_v45 = vcombine.low %v347_v32, %v351_v33  ;;  %v4075_v46 = vcombine.low %v348_v34, %v352_v36  ;;  %v411_v34 = vld [vmem:[#allocation5 + $0x900] sm:$0xff]  ;;  %v412_v36 = vld [vmem:[#allocation5 + $0x908] sm:$0xff] }
  0xd6   :  { %2552 = vmatprep.subr.bf16.mxu0 %v4018_v47  ;;  %2681 = vmatprep.subr.bf16.mxu1 %v4020_v51  ;;  %v4082_v47 = vcombine.high %v355_v40, %v359_v41  ;;  %v4084_v51 = vcombine.high %v356_v42, %v360_v44 }
  0xd9   :  { %2553 = vmatpush1.bf16.msra.mxu0 %v4017_v53  ;;  %2682 = vmatpush1.bf16.msra.mxu1 %v4019_v54  ;;  %v4081_v53 = vcombine.low %v355_v40, %v359_v41  ;;  %v4083_v54 = vcombine.low %v356_v42, %v360_v44  ;;  %v423_v44 = vld [vmem:[#allocation5 + $0x960] sm:$0xff] }
  0xda   :  { %2554 = vmatprep.subr.bf16.mxu0 %v4026_v55  ;;  %2683 = vmatprep.subr.bf16.mxu1 %v4028_v59  ;;  %v4090_v55 = vcombine.high %v363_v48, %v367_v49  ;;  %v4092_v59 = vcombine.high %v364_v50, %v368_v52 }
  0xdd   :  { %2555 = vmatpush1.bf16.msra.mxu0 %v4025_v61  ;;  %2684 = vmatpush1.bf16.msra.mxu1 %v4027_v62  ;;  %v4089_v61 = vcombine.low %v363_v48, %v367_v49  ;;  %v4091_v62 = vcombine.low %v364_v50, %v368_v52  ;;  %v431_v52 = vld [vmem:[#allocation5 + $0x9a0] sm:$0xff] }
  0xde   :  { %2556 = vmatprep.subr.bf16.mxu0 %v4034_v63  ;;  %2685 = vmatprep.subr.bf16.mxu1 %v4036_v3  ;;  %v4098_v63 = vcombine.high %v371_v56, %v375_v57  ;;  %v4100_v3 = vcombine.high %v372_v58, %v376_v60 }
  0xe1   :  { %2557 = vmatpush1.bf16.msra.mxu0 %v4033_v5  ;;  %2686 = vmatpush1.bf16.msra.mxu1 %v4035_v6  ;;  %v4097_v5 = vcombine.low %v371_v56, %v375_v57  ;;  %v4099_v6 = vcombine.low %v372_v58, %v376_v60  ;;  %v439_v60 = vld [vmem:[#allocation5 + $0x9e0] sm:$0xff] }
  0xe2   :  { %2558 = vmatprep.subr.bf16.mxu0 %v4042_v7  ;;  %2687 = vmatprep.subr.bf16.mxu1 %v4044_v11  ;;  %v4106_v7 = vcombine.high %v379_v0, %v383_v1  ;;  %v388_v11 = vld [vmem:[#allocation5 + $0x848] sm:$0xff] }
  0xe5   :  { %2559 = vmatpush1.bf16.msra.mxu0 %v4041_v13  ;;  %2688 = vmatpush1.bf16.msra.mxu1 %v4043_v14  ;;  %v392_v13 = vld [vmem:[#allocation5 + $0x868] sm:$0xff]  ;;  %v4105_v14 = vcombine.low %v379_v0, %v383_v1 }
  0xe6   :  { %2560 = vmatprep.subr.bf16.mxu0 %v4050_v15  ;;  %2689 = vmatprep.subr.bf16.mxu1 %v4052_v19  ;;  %v395_v15 = vld [vmem:[#allocation5 + $0x880] sm:$0xff]  ;;  %v396_v19 = vld [vmem:[#allocation5 + $0x888] sm:$0xff]  ;;  %v4115_v24 = vcombine.low %v388_v11, %v392_v13 }
  0xe7   :  { %v4122_v25 = vcombine.high %v395_v15, %v399_v18  ;;  %v4123_v32 = vcombine.low %v396_v19, %v400_v20 }
  0xe9   :  { %2561 = vmatpush1.bf16.msra.mxu0 %v4049_v21  ;;  %2690 = vmatpush1.bf16.msra.mxu1 %v4051_v22  ;;  %v4116_v21 = vcombine.high %v388_v11, %v392_v13  ;;  %v4496_v22 = vld [vmem:[#allocation2 + $0x14] ss:$24 sps:$4 sm:$0xff]   ;;  %v452_v13 = vld [vmem:[#allocation5 + $0xa48] sm:$0xff] }
  0xea   :  { %2562 = vmatprep.subr.bf16.mxu0 %v4058_v23  ;;  %2691 = vmatprep.subr.bf16.mxu1 %v4060_v27  ;;  %v4113_v23 = vcombine.low %v387_v9, %v391_v10  ;;  %v407_v27 = vld [vmem:[#allocation5 + $0x8e0] sm:$0xff] }
  0xeb   :  { %v4130_v33 = vcombine.high %v403_v26, %v407_v27  ;;  %v451_v11 = vld [vmem:[#allocation5 + $0xa40] sm:$0xff] }
  0xed   :  { %2563 = vmatpush1.bf16.msra.mxu0 %v4057_v29  ;;  %2692 = vmatpush1.bf16.msra.mxu1 %v4059_v30  ;;  %v4124_v29 = vcombine.high %v396_v19, %v400_v20  ;;  %v408_v30 = vld [vmem:[#allocation5 + $0x8e8] sm:$0xff]  ;;  %v459_v19 = vld [vmem:[#allocation5 + $0xa80] sm:$0xff] }
  0xee   :  { %2564 = vmatprep.subr.bf16.mxu0 %v4066_v31  ;;  %2693 = vmatprep.subr.bf16.mxu1 %v4068_v35  ;;  %v4121_v31 = vcombine.low %v395_v15, %v399_v18  ;;  %v415_v35 = vld [vmem:[#allocation5 + $0x920] sm:$0xff]  ;;  %v4131_v40 = vcombine.low %v404_v28, %v408_v30 }
  0xef   :  { %v4138_v41 = vcombine.high %v411_v34, %v415_v35  ;;  %v463_v20 = vld [vmem:[#allocation5 + $0xaa0] sm:$0xff] }
  0xf1   :  { %2565 = vmatpush1.bf16.msra.mxu0 %v4065_v37  ;;  %2694 = vmatpush1.bf16.msra.mxu1 %v4067_v38  ;;  %v4132_v37 = vcombine.high %v404_v28, %v408_v30  ;;  %v416_v38 = vld [vmem:[#allocation5 + $0x928] sm:$0xff]  ;;  %v471_v28 = vld [vmem:[#allocation5 + $0xae0] sm:$0xff] }
  0xf2   :  { %2566 = vmatprep.subr.bf16.mxu0 %v4074_v39  ;;  %2695 = vmatprep.subr.bf16.mxu1 %v4076_v43  ;;  %v4129_v39 = vcombine.low %v403_v26, %v407_v27  ;;  %v4140_v42 = vcombine.high %v412_v36, %v416_v38  ;;  %v419_v43 = vld [vmem:[#allocation5 + $0x940] sm:$0xff]  ;;  %v4139_v48 = vcombine.low %v412_v36, %v416_v38  ;;  %v472_v30 = vld [vmem:[#allocation5 + $0xae8] sm:$0xff] }
  0xf3   :  { %v4146_v49 = vcombine.high %v419_v43, %v423_v44  ;;  %v467_v27 = vld [vmem:[#allocation5 + $0xac0] sm:$0xff]  ;;  %v480_v38 = vld [vmem:[#allocation5 + $0xb28] sm:$0xff] }
  0xf4   :  { %v479_v36 = vld [vmem:[#allocation5 + $0xb20] sm:$0xff] }
  0xf5   :  { %2567 = vmatpush1.bf16.msra.mxu0 %v4073_v45  ;;  %2696 = vmatpush1.bf16.msra.mxu1 %v4075_v46  ;;  %v420_v45 = vld [vmem:[#allocation5 + $0x948] sm:$0xff] }
  0xf6   :  { %2568 = vmatprep.subr.bf16.mxu0 %v4082_v47  ;;  %2697 = vmatprep.subr.bf16.mxu1 %v4084_v51  ;;  %v424_v46 = vld [vmem:[#allocation5 + $0x968] sm:$0xff]  ;;  %v4137_v47 = vcombine.low %v411_v34, %v415_v35  ;;  %v427_v51 = vld [vmem:[#allocation5 + $0x980] sm:$0xff] }
  0xf7   :  { %v4148_v50 = vcombine.high %v420_v45, %v424_v46  ;;  %v4147_v56 = vcombine.low %v420_v45, %v424_v46  ;;  %v4154_v57 = vcombine.high %v427_v51, %v431_v52  ;;  %v475_v35 = vld [vmem:[#allocation5 + $0xb00] sm:$0xff]  ;;  %v484_v45 = vld [vmem:[#allocation5 + $0xb48] sm:$0xff] }
  0xf8   :  { %v488_v46 = vld [vmem:[#allocation5 + $0xb68] sm:$0xff] }
  0xf9   :  { %2569 = vmatpush1.bf16.msra.mxu0 %v4081_v53  ;;  %2698 = vmatpush1.bf16.msra.mxu1 %v4083_v54  ;;  %v428_v53 = vld [vmem:[#allocation5 + $0x988] sm:$0xff] }
  0xfa   :  { %2570 = vmatprep.subr.bf16.mxu0 %v4090_v55  ;;  %2699 = vmatprep.subr.bf16.mxu1 %v4092_v59  ;;  %v432_v54 = vld [vmem:[#allocation5 + $0x9a8] sm:$0xff]  ;;  %v4145_v55 = vcombine.low %v419_v43, %v423_v44  ;;  %v435_v59 = vld [vmem:[#allocation5 + $0x9c0] sm:$0xff] }
  0xfb   :  { %v4156_v58 = vcombine.high %v428_v53, %v432_v54  ;;  %v4155_v0 = vcombine.low %v428_v53, %v432_v54  ;;  %v4162_v1 = vcombine.high %v435_v59, %v439_v60  ;;  %v483_v43 = vld [vmem:[#allocation5 + $0xb40] sm:$0xff]  ;;  %v492_v53 = vld [vmem:[#allocation5 + $0xb88] sm:$0xff] }
  0xfc   :  { %v487_v44 = vld [vmem:[#allocation5 + $0xb60] sm:$0xff]  ;;  %v496_v54 = vld [vmem:[#allocation5 + $0xba8] sm:$0xff] }
  0xfd   :  { %2571 = vmatpush1.bf16.msra.mxu0 %v4089_v61  ;;  %2700 = vmatpush1.bf16.msra.mxu1 %v4091_v62  ;;  %v436_v61 = vld [vmem:[#allocation5 + $0x9c8] sm:$0xff] }
  0xfe   :  { %2572 = vmatprep.subr.bf16.mxu0 %v4098_v63  ;;  %2701 = vmatprep.subr.bf16.mxu1 %v4100_v3  ;;  %v440_v62 = vld [vmem:[#allocation5 + $0x9e8] sm:$0xff]  ;;  %v4153_v63 = vcombine.low %v427_v51, %v431_v52  ;;  %v443_v3 = vld [vmem:[#allocation5 + $0xa00] sm:$0xff] }
  0xff   :  { %v4164_v2 = vcombine.high %v436_v61, %v440_v62  ;;  %v4170_v9 = vcombine.high %v443_v3, %v447_v4  ;;  %v4169_v15 = vcombine.low %v443_v3, %v447_v4  ;;  %v491_v51 = vld [vmem:[#allocation5 + $0xb80] sm:$0xff]  ;;  %v125_v3 = vld [vmem:[#allocation5 + $0x10] sm:$0xff] }
 0x100   :  { %v495_v52 = vld [vmem:[#allocation5 + $0xba0] sm:$0xff]  ;;  %v129_v4 = vld [vmem:[#allocation5 + $0x30] sm:$0xff] }
 0x101   :  { %2573 = vmatpush1.bf16.msra.mxu0 %v4097_v5  ;;  %2702 = vmatpush1.bf16.msra.mxu1 %v4099_v6  ;;  %v444_v5 = vld [vmem:[#allocation5 + $0xa08] sm:$0xff] }
 0x102   :  { %2585 = vmatprep.subr.bf16.mxu0 %v4106_v7  ;;  %2714 = vmatprep.subr.bf16.mxu1 %v4108_v12  ;;  %v448_v6 = vld [vmem:[#allocation5 + $0xa28] sm:$0xff]  ;;  %v4161_v7 = vcombine.low %v435_v59, %v439_v60  ;;  %v455_v12 = vld [vmem:[#allocation5 + $0xa60] sm:$0xff] }
 0x103   :  { %v4172_v10 = vcombine.high %v444_v5, %v448_v6  ;;  %v499_v59 = vld [vmem:[#allocation5 + $0xbc0] sm:$0xff] }
 0x104   :  { %2575 = vmatmul.mubr.bf16.vlgmr.msra.gmra.mrb[0].mxu0 %v4495_v8  ;;  %2704 = vmatmul.mubr.bf16.vlgmr.msra.gmra.mrb[0].mxu1 %v4495_v8  ;;  %v4163_v8 = vcombine.low %v436_v61, %v440_v62  ;;  %v503_v60 = vld [vmem:[#allocation5 + $0xbe0] sm:$0xff]  ;;  %v500_v61 = vld [vmem:[#allocation5 + $0xbc8] sm:$0xff] }
 0x105   :  { %2586 = vmatpush1.bf16.msra.mxu0 %v4105_v14  ;;  %2715 = vmatpush1.bf16.msra.mxu1 %v4107_v16  ;;  %v456_v14 = vld [vmem:[#allocation5 + $0xa68] sm:$0xff]  ;;  %v4171_v16 = vcombine.low %v444_v5, %v448_v6  ;;  %v126_v5 = vld [vmem:[#allocation5 + $0x18] sm:$0xff] }
 0x106   :  { %2587 = vmatprep.subr.bf16.mxu0 %v4114_v17  ;;  %2716 = vmatprep.subr.bf16.mxu1 %v4116_v21  ;;  %v4178_v17 = vcombine.high %v451_v11, %v455_v12  ;;  %v4180_v18 = vcombine.high %v452_v13, %v456_v14  ;;  %v460_v21 = vld [vmem:[#allocation5 + $0xa88] sm:$0xff]  ;;  %v130_v6 = vld [vmem:[#allocation5 + $0x38] sm:$0xff] }
 0x107   :  { %2617 = vmatprep.mubr.bf16.mxu0 %v4496_v22  ;;  %2746 = vmatprep.mubr.bf16.mxu1 %v4496_v22  ;;  %v464_v22 = vld [vmem:[#allocation5 + $0xaa8] sm:$0xff] }
 0x108   :  { %v4188_v26 = vcombine.high %v460_v21, %v464_v22  ;;  %v504_v62 = vld [vmem:[#allocation5 + $0xbe8] sm:$0xff] }
 0x109   :  { %2588 = vmatpush1.bf16.msra.mxu0 %v4113_v23  ;;  %2717 = vmatpush1.bf16.msra.mxu1 %v4115_v24  ;;  %v4177_v23 = vcombine.low %v451_v11, %v455_v12  ;;  %v4179_v24 = vcombine.low %v452_v13, %v456_v14  ;;  %v133_v11 = vld [vmem:[#allocation5 + $0x50] sm:$0xff]  ;;  %v4498_v13 = vld [vmem:[#allocation2 + $0x10] ss:$24 sps:$4 sm:$0xff]  }
 0x10a   :  { %2589 = vmatprep.subr.bf16.mxu0 %v4122_v25  ;;  %2718 = vmatprep.subr.bf16.mxu1 %v4124_v29  ;;  %v4186_v25 = vcombine.high %v459_v19, %v463_v20  ;;  %v468_v29 = vld [vmem:[#allocation5 + $0xac8] sm:$0xff]  ;;  %v137_v12 = vld [vmem:[#allocation5 + $0x70] sm:$0xff]  ;;  %v134_v14 = vld [vmem:[#allocation5 + $0x58] sm:$0xff] }
 0x10b   :  { %v4196_v34 = vcombine.high %v468_v29, %v472_v30 }
 0x10d   :  { %2590 = vmatpush1.bf16.msra.mxu0 %v4121_v31  ;;  %2719 = vmatpush1.bf16.msra.mxu1 %v4123_v32  ;;  %v4185_v31 = vcombine.low %v459_v19, %v463_v20  ;;  %v4187_v32 = vcombine.low %v460_v21, %v464_v22  ;;  %v141_v20 = vld [vmem:[#allocation5 + $0x90] sm:$0xff]  ;;  %v142_v22 = vld [vmem:[#allocation5 + $0x98] sm:$0xff] }
 0x10e   :  { %2591 = vmatprep.subr.bf16.mxu0 %v4130_v33  ;;  %2720 = vmatprep.subr.bf16.mxu1 %v4132_v37  ;;  %v4194_v33 = vcombine.high %v467_v27, %v471_v28  ;;  %v476_v37 = vld [vmem:[#allocation5 + $0xb08] sm:$0xff]  ;;  %v145_v21 = vld [vmem:[#allocation5 + $0xb0] sm:$0xff] }
 0x111   :  { %2592 = vmatpush1.bf16.msra.mxu0 %v4129_v39  ;;  %2721 = vmatpush1.bf16.msra.mxu1 %v4131_v40  ;;  %v4193_v39 = vcombine.low %v467_v27, %v471_v28  ;;  %v4195_v40 = vcombine.low %v468_v29, %v472_v30  ;;  %v149_v28 = vld [vmem:[#allocation5 + $0xd0] sm:$0xff] }
 0x112   :  { %2593 = vmatprep.subr.bf16.mxu0 %v4138_v41  ;;  %2722 = vmatprep.subr.bf16.mxu1 %v4140_v42  ;;  %v4202_v41 = vcombine.high %v475_v35, %v479_v36  ;;  %v4204_v42 = vcombine.high %v476_v37, %v480_v38  ;;  %v153_v29 = vld [vmem:[#allocation5 + $0xf0] sm:$0xff] }
 0x113   :  { %v4571_v30 = vld [vmem:[#allocation2 + $0x4] ss:$24 sps:$4 sm:$0xff]  }
 0x115   :  { %2594 = vmatpush1.bf16.msra.mxu0 %v4137_v47  ;;  %2723 = vmatpush1.bf16.msra.mxu1 %v4139_v48  ;;  %v4201_v47 = vcombine.low %v475_v35, %v479_v36  ;;  %v4203_v48 = vcombine.low %v476_v37, %v480_v38  ;;  %v3878_v35 = vcombine.high %v149_v28, %v153_v29  ;;  %v157_v37 = vld [vmem:[#allocation5 + $0x110] sm:$0xff] }
 0x116   :  { %2595 = vmatprep.subr.bf16.mxu0 %v4146_v49  ;;  %2724 = vmatprep.subr.bf16.mxu1 %v4148_v50  ;;  %v4210_v49 = vcombine.high %v483_v43, %v487_v44  ;;  %v4212_v50 = vcombine.high %v484_v45, %v488_v46  ;;  %v161_v38 = vld [vmem:[#allocation5 + $0x130] sm:$0xff] }
 0x119   :  { %2596 = vmatpush1.bf16.msra.mxu0 %v4145_v55  ;;  %2725 = vmatpush1.bf16.msra.mxu1 %v4147_v56  ;;  %v4209_v55 = vcombine.low %v483_v43, %v487_v44  ;;  %v4211_v56 = vcombine.low %v484_v45, %v488_v46  ;;  %v3886_v43 = vcombine.high %v157_v37, %v161_v38  ;;  %v165_v45 = vld [vmem:[#allocation5 + $0x150] sm:$0xff] }
 0x11a   :  { %2597 = vmatprep.subr.bf16.mxu0 %v4154_v57  ;;  %2726 = vmatprep.subr.bf16.mxu1 %v4156_v58  ;;  %v4218_v57 = vcombine.high %v491_v51, %v495_v52  ;;  %v4220_v58 = vcombine.high %v492_v53, %v496_v54  ;;  %v169_v46 = vld [vmem:[#allocation5 + $0x170] sm:$0xff] }
 0x11d   :  { %2598 = vmatpush1.bf16.msra.mxu0 %v4153_v63  ;;  %2727 = vmatpush1.bf16.msra.mxu1 %v4155_v0  ;;  %v4217_v63 = vcombine.low %v491_v51, %v495_v52  ;;  %v4219_v0 = vcombine.low %v492_v53, %v496_v54  ;;  %v3894_v51 = vcombine.high %v165_v45, %v169_v46  ;;  %v173_v53 = vld [vmem:[#allocation5 + $0x190] sm:$0xff] }
 0x11e   :  { %2599 = vmatprep.subr.bf16.mxu0 %v4162_v1  ;;  %2728 = vmatprep.subr.bf16.mxu1 %v4164_v2  ;;  %v4226_v1 = vcombine.high %v499_v59, %v503_v60  ;;  %v4228_v2 = vcombine.high %v500_v61, %v504_v62  ;;  %v177_v54 = vld [vmem:[#allocation5 + $0x1b0] sm:$0xff] }
 0x121   :  { %2600 = vmatpush1.bf16.msra.mxu0 %v4161_v7  ;;  %2729 = vmatpush1.bf16.msra.mxu1 %v4163_v8  ;;  %v4225_v7 = vcombine.low %v499_v59, %v503_v60  ;;  %v4227_v8 = vcombine.low %v500_v61, %v504_v62  ;;  %v3902_v59 = vcombine.high %v173_v53, %v177_v54  ;;  %v181_v61 = vld [vmem:[#allocation5 + $0x1d0] sm:$0xff] }
 0x122   :  { %2601 = vmatprep.subr.bf16.mxu0 %v4170_v9  ;;  %2730 = vmatprep.subr.bf16.mxu1 %v4172_v10  ;;  %v3854_v9 = vcombine.high %v125_v3, %v129_v4  ;;  %v3856_v10 = vcombine.high %v126_v5, %v130_v6  ;;  %v185_v62 = vld [vmem:[#allocation5 + $0x1f0] sm:$0xff] }
 0x125   :  { %2602 = vmatpush1.bf16.msra.mxu0 %v4169_v15  ;;  %2731 = vmatpush1.bf16.msra.mxu1 %v4171_v16  ;;  %v138_v15 = vld [vmem:[#allocation5 + $0x78] sm:$0xff]  ;;  %v3853_v16 = vcombine.low %v125_v3, %v129_v4  ;;  %v3910_v3 = vcombine.high %v181_v61, %v185_v62 }
 0x126   :  { %2603 = vmatprep.subr.bf16.mxu0 %v4178_v17  ;;  %2732 = vmatprep.subr.bf16.mxu1 %v4180_v18  ;;  %v3855_v17 = vcombine.low %v126_v5, %v130_v6  ;;  %v3862_v18 = vcombine.high %v133_v11, %v137_v12  ;;  %v3864_v19 = vcombine.high %v134_v14, %v138_v15  ;;  %v189_v5 = vld [vmem:[#allocation5 + $0x210] sm:$0xff] }
 0x127   :  { %v193_v6 = vld [vmem:[#allocation5 + $0x230] sm:$0xff] }
 0x129   :  { %2604 = vmatpush1.bf16.msra.mxu0 %v4177_v23  ;;  %2733 = vmatpush1.bf16.msra.mxu1 %v4179_v24  ;;  %v146_v23 = vld [vmem:[#allocation5 + $0xb8] sm:$0xff]  ;;  %v3861_v24 = vcombine.low %v133_v11, %v137_v12  ;;  %v3918_v11 = vcombine.high %v189_v5, %v193_v6 }
 0x12a   :  { %2605 = vmatprep.subr.bf16.mxu0 %v4186_v25  ;;  %2734 = vmatprep.subr.bf16.mxu1 %v4188_v26  ;;  %v3863_v25 = vcombine.low %v134_v14, %v138_v15  ;;  %v3870_v26 = vcombine.high %v141_v20, %v145_v21  ;;  %v3872_v27 = vcombine.high %v142_v22, %v146_v23  ;;  %v201_v14 = vld [vmem:[#allocation5 + $0x270] sm:$0xff]  ;;  %v198_v15 = vld [vmem:[#allocation5 + $0x258] sm:$0xff] }
 0x12d   :  { %2606 = vmatpush1.bf16.msra.mxu0 %v4185_v31  ;;  %2735 = vmatpush1.bf16.msra.mxu1 %v4187_v32  ;;  %v150_v31 = vld [vmem:[#allocation5 + $0xd8] sm:$0xff] }
 0x12e   :  { %2607 = vmatprep.subr.bf16.mxu0 %v4194_v33  ;;  %2736 = vmatprep.subr.bf16.mxu1 %v4196_v34  ;;  %v154_v32 = vld [vmem:[#allocation5 + $0xf8] sm:$0xff]  ;;  %v3869_v33 = vcombine.low %v141_v20, %v145_v21  ;;  %v3871_v34 = vcombine.low %v142_v22, %v146_v23  ;;  %v205_v21 = vld [vmem:[#allocation5 + $0x290] sm:$0xff] }
 0x12f   :  { %v3880_v36 = vcombine.high %v150_v31, %v154_v32  ;;  %v209_v22 = vld [vmem:[#allocation5 + $0x2b0] sm:$0xff]  ;;  %v206_v23 = vld [vmem:[#allocation5 + $0x298] sm:$0xff] }
 0x131   :  { %2608 = vmatpush1.bf16.msra.mxu0 %v4193_v39  ;;  %2737 = vmatpush1.bf16.msra.mxu1 %v4195_v40  ;;  %v158_v39 = vld [vmem:[#allocation5 + $0x118] sm:$0xff] }
 0x132   :  { %2609 = vmatprep.subr.bf16.mxu0 %v4202_v41  ;;  %2738 = vmatprep.subr.bf16.mxu1 %v4204_v42  ;;  %v162_v40 = vld [vmem:[#allocation5 + $0x138] sm:$0xff]  ;;  %v3877_v41 = vcombine.low %v149_v28, %v153_v29  ;;  %v3879_v42 = vcombine.low %v150_v31, %v154_v32  ;;  %v213_v29 = vld [vmem:[#allocation5 + $0x2d0] sm:$0xff] }
 0x133   :  { %v3888_v44 = vcombine.high %v158_v39, %v162_v40  ;;  %v214_v31 = vld [vmem:[#allocation5 + $0x2d8] sm:$0xff] }
 0x134   :  { %v218_v32 = vld [vmem:[#allocation5 + $0x2f8] sm:$0xff] }
 0x135   :  { %2610 = vmatpush1.bf16.msra.mxu0 %v4201_v47  ;;  %2739 = vmatpush1.bf16.msra.mxu1 %v4203_v48  ;;  %v166_v47 = vld [vmem:[#allocation5 + $0x158] sm:$0xff] }
 0x136   :  { %2611 = vmatprep.subr.bf16.mxu0 %v4210_v49  ;;  %2740 = vmatprep.subr.bf16.mxu1 %v4212_v50  ;;  %v170_v48 = vld [vmem:[#allocation5 + $0x178] sm:$0xff]  ;;  %v3885_v49 = vcombine.low %v157_v37, %v161_v38  ;;  %v3887_v50 = vcombine.low %v158_v39, %v162_v40  ;;  %v221_v37 = vld [vmem:[#allocation5 + $0x310] sm:$0xff] }
 0x137   :  { %v3896_v52 = vcombine.high %v166_v47, %v170_v48  ;;  %v225_v38 = vld [vmem:[#allocation5 + $0x330] sm:$0xff]  ;;  %v222_v39 = vld [vmem:[#allocation5 + $0x318] sm:$0xff] }
 0x138   :  { %v226_v40 = vld [vmem:[#allocation5 + $0x338] sm:$0xff] }
 0x139   :  { %2612 = vmatpush1.bf16.msra.mxu0 %v4209_v55  ;;  %2741 = vmatpush1.bf16.msra.mxu1 %v4211_v56  ;;  %v174_v55 = vld [vmem:[#allocation5 + $0x198] sm:$0xff] }
 0x13a   :  { %2613 = vmatprep.subr.bf16.mxu0 %v4218_v57  ;;  %2742 = vmatprep.subr.bf16.mxu1 %v4220_v58  ;;  %v178_v56 = vld [vmem:[#allocation5 + $0x1b8] sm:$0xff]  ;;  %v3893_v57 = vcombine.low %v165_v45, %v169_v46  ;;  %v3895_v58 = vcombine.low %v166_v47, %v170_v48  ;;  %v229_v45 = vld [vmem:[#allocation5 + $0x350] sm:$0xff] }
 0x13b   :  { %v3904_v60 = vcombine.high %v174_v55, %v178_v56  ;;  %v233_v46 = vld [vmem:[#allocation5 + $0x370] sm:$0xff]  ;;  %v230_v47 = vld [vmem:[#allocation5 + $0x358] sm:$0xff] }
 0x13c   :  { %v234_v48 = vld [vmem:[#allocation5 + $0x378] sm:$0xff] }
 0x13d   :  { %2614 = vmatpush1.bf16.msra.mxu0 %v4217_v63  ;;  %2743 = vmatpush1.bf16.msra.mxu1 %v4219_v0  ;;  %v182_v63 = vld [vmem:[#allocation5 + $0x1d8] sm:$0xff] }
 0x13e   :  { %2615 = vmatprep.subr.bf16.mxu0 %v4226_v1  ;;  %2744 = vmatprep.subr.bf16.mxu1 %v4228_v2  ;;  %v186_v0 = vld [vmem:[#allocation5 + $0x1f8] sm:$0xff]  ;;  %v3901_v1 = vcombine.low %v173_v53, %v177_v54  ;;  %v3903_v2 = vcombine.low %v174_v55, %v178_v56  ;;  %v237_v53 = vld [vmem:[#allocation5 + $0x390] sm:$0xff] }
 0x13f   :  { %v3912_v4 = vcombine.high %v182_v63, %v186_v0  ;;  %v241_v54 = vld [vmem:[#allocation5 + $0x3b0] sm:$0xff]  ;;  %v238_v55 = vld [vmem:[#allocation5 + $0x398] sm:$0xff] }
 0x140   :  { %v242_v56 = vld [vmem:[#allocation5 + $0x3b8] sm:$0xff] }
 0x141   :  { %2616 = vmatpush1.bf16.msra.mxu0 %v4225_v7  ;;  %2745 = vmatpush1.bf16.msra.mxu1 %v4227_v8  ;;  %v190_v7 = vld [vmem:[#allocation5 + $0x218] sm:$0xff] }
 0x142   :  { %2757 = vmatprep.subr.bf16.mxu0 %v3854_v9  ;;  %2886 = vmatprep.subr.bf16.mxu1 %v3856_v10  ;;  %v194_v8 = vld [vmem:[#allocation5 + $0x238] sm:$0xff]  ;;  %v3909_v9 = vcombine.low %v181_v61, %v185_v62  ;;  %v3911_v10 = vcombine.low %v182_v63, %v186_v0  ;;  %v245_v61 = vld [vmem:[#allocation5 + $0x3d0] sm:$0xff] }
 0x143   :  { %v3920_v12 = vcombine.high %v190_v7, %v194_v8  ;;  %v249_v62 = vld [vmem:[#allocation5 + $0x3f0] sm:$0xff]  ;;  %v246_v63 = vld [vmem:[#allocation5 + $0x3d8] sm:$0xff] }
 0x144   :  { %2618 = vmatmul.mubr.bf16.vlgmr.msra.gmra.mrb[0].mxu0 %v4498_v13  ;;  %2747 = vmatmul.mubr.bf16.vlgmr.msra.gmra.mrb[0].mxu1 %v4498_v13  ;;  %v197_v13 = vld [vmem:[#allocation5 + $0x250] sm:$0xff]  ;;  %v250_v0 = vld [vmem:[#allocation5 + $0x3f8] sm:$0xff] }
 0x145   :  { %2758 = vmatpush1.bf16.msra.mxu0 %v3853_v16  ;;  %2887 = vmatpush1.bf16.msra.mxu1 %v3855_v17  ;;  %v202_v16 = vld [vmem:[#allocation5 + $0x278] sm:$0xff]  ;;  %v3917_v17 = vcombine.low %v189_v5, %v193_v6  ;;  %v253_v5 = vld [vmem:[#allocation5 + $0x410] sm:$0xff] }
 0x146   :  { %2759 = vmatprep.subr.bf16.mxu0 %v3862_v18  ;;  %2888 = vmatprep.subr.bf16.mxu1 %v3864_v19  ;;  %v3919_v18 = vcombine.low %v190_v7, %v194_v8  ;;  %v3926_v19 = vcombine.high %v197_v13, %v201_v14  ;;  %v3928_v20 = vcombine.high %v198_v15, %v202_v16  ;;  %v257_v6 = vld [vmem:[#allocation5 + $0x430] sm:$0xff]  ;;  %v254_v7 = vld [vmem:[#allocation5 + $0x418] sm:$0xff] }
 0x147   :  { %2789 = vmatprep.mubr.bf16.mxu0 %v4571_v30  ;;  %2918 = vmatprep.mubr.bf16.mxu1 %v4571_v30  ;;  %v217_v30 = vld [vmem:[#allocation5 + $0x2f0] sm:$0xff]  ;;  %v258_v8 = vld [vmem:[#allocation5 + $0x438] sm:$0xff] }
 0x149   :  { %2760 = vmatpush1.bf16.msra.mxu0 %v3861_v24  ;;  %2889 = vmatpush1.bf16.msra.mxu1 %v3863_v25  ;;  %v210_v24 = vld [vmem:[#allocation5 + $0x2b8] sm:$0xff]  ;;  %v3925_v25 = vcombine.low %v197_v13, %v201_v14  ;;  %v261_v13 = vld [vmem:[#allocation5 + $0x450] sm:$0xff] }
 0x14a   :  { %2761 = vmatprep.subr.bf16.mxu0 %v3870_v26  ;;  %2890 = vmatprep.subr.bf16.mxu1 %v3872_v27  ;;  %v3927_v26 = vcombine.low %v198_v15, %v202_v16  ;;  %v3934_v27 = vcombine.high %v205_v21, %v209_v22  ;;  %v3936_v28 = vcombine.high %v206_v23, %v210_v24  ;;  %v265_v14 = vld [vmem:[#allocation5 + $0x470] sm:$0xff]  ;;  %v262_v15 = vld [vmem:[#allocation5 + $0x458] sm:$0xff] }
 0x14b   :  { %v266_v16 = vld [vmem:[#allocation5 + $0x478] sm:$0xff] }
 0x14d   :  { %2762 = vmatpush1.bf16.msra.mxu0 %v3869_v33  ;;  %2891 = vmatpush1.bf16.msra.mxu1 %v3871_v34  ;;  %v3933_v33 = vcombine.low %v205_v21, %v209_v22  ;;  %v3935_v34 = vcombine.low %v206_v23, %v210_v24  ;;  %v269_v21 = vld [vmem:[#allocation5 + $0x490] sm:$0xff]  ;;  %v270_v24 = vld [vmem:[#allocation5 + $0x498] sm:$0xff] }
 0x14e   :  { %2763 = vmatprep.subr.bf16.mxu0 %v3878_v35  ;;  %2892 = vmatprep.subr.bf16.mxu1 %v3880_v36  ;;  %v3942_v35 = vcombine.high %v213_v29, %v217_v30  ;;  %v3944_v36 = vcombine.high %v214_v31, %v218_v32  ;;  %v273_v22 = vld [vmem:[#allocation5 + $0x4b0] sm:$0xff] }
 0x14f   :  { %v4572_v23 = vld [vmem:[#allocation2] ss:$24 sps:$4 sm:$0xff]  }
 0x151   :  { %2764 = vmatpush1.bf16.msra.mxu0 %v3877_v41  ;;  %2893 = vmatpush1.bf16.msra.mxu1 %v3879_v42  ;;  %v3941_v41 = vcombine.low %v213_v29, %v217_v30  ;;  %v3943_v42 = vcombine.low %v214_v31, %v218_v32  ;;  %v277_v30 = vld [vmem:[#allocation5 + $0x4d0] sm:$0xff] }
 0x152   :  { %2765 = vmatprep.subr.bf16.mxu0 %v3886_v43  ;;  %2894 = vmatprep.subr.bf16.mxu1 %v3888_v44  ;;  %v3950_v43 = vcombine.high %v221_v37, %v225_v38  ;;  %v3952_v44 = vcombine.high %v222_v39, %v226_v40  ;;  %v281_v31 = vld [vmem:[#allocation5 + $0x4f0] sm:$0xff] }
 0x153   :  { %v4573_v32 = vld [vmem:[#allocation2 + $0xc] ss:$24 sps:$4 sm:$0xff]  }
 0x155   :  { %2766 = vmatpush1.bf16.msra.mxu0 %v3885_v49  ;;  %2895 = vmatpush1.bf16.msra.mxu1 %v3887_v50  ;;  %v3949_v49 = vcombine.low %v221_v37, %v225_v38  ;;  %v3951_v50 = vcombine.low %v222_v39, %v226_v40  ;;  %v4006_v37 = vcombine.high %v277_v30, %v281_v31  ;;  %v285_v39 = vld [vmem:[#allocation5 + $0x510] sm:$0xff] }
 0x156   :  { %2767 = vmatprep.subr.bf16.mxu0 %v3894_v51  ;;  %2896 = vmatprep.subr.bf16.mxu1 %v3896_v52  ;;  %v3958_v51 = vcombine.high %v229_v45, %v233_v46  ;;  %v3960_v52 = vcombine.high %v230_v47, %v234_v48  ;;  %v289_v40 = vld [vmem:[#allocation5 + $0x530] sm:$0xff] }
 0x159   :  { %2768 = vmatpush1.bf16.msra.mxu0 %v3893_v57  ;;  %2897 = vmatpush1.bf16.msra.mxu1 %v3895_v58  ;;  %v3957_v57 = vcombine.low %v229_v45, %v233_v46  ;;  %v3959_v58 = vcombine.low %v230_v47, %v234_v48  ;;  %v4014_v45 = vcombine.high %v285_v39, %v289_v40  ;;  %v293_v47 = vld [vmem:[#allocation5 + $0x550] sm:$0xff] }
 0x15a   :  { %2769 = vmatprep.subr.bf16.mxu0 %v3902_v59  ;;  %2898 = vmatprep.subr.bf16.mxu1 %v3904_v60  ;;  %v3966_v59 = vcombine.high %v237_v53, %v241_v54  ;;  %v3968_v60 = vcombine.high %v238_v55, %v242_v56  ;;  %v297_v48 = vld [vmem:[#allocation5 + $0x570] sm:$0xff] }
 0x15d   :  { %2770 = vmatpush1.bf16.msra.mxu0 %v3901_v1  ;;  %2899 = vmatpush1.bf16.msra.mxu1 %v3903_v2  ;;  %v3965_v1 = vcombine.low %v237_v53, %v241_v54  ;;  %v3967_v2 = vcombine.low %v238_v55, %v242_v56  ;;  %v4022_v53 = vcombine.high %v293_v47, %v297_v48  ;;  %v301_v55 = vld [vmem:[#allocation5 + $0x590] sm:$0xff] }
 0x15e   :  { %2771 = vmatprep.subr.bf16.mxu0 %v3910_v3  ;;  %2900 = vmatprep.subr.bf16.mxu1 %v3912_v4  ;;  %v3974_v3 = vcombine.high %v245_v61, %v249_v62  ;;  %v3976_v4 = vcombine.high %v246_v63, %v250_v0  ;;  %v305_v56 = vld [vmem:[#allocation5 + $0x5b0] sm:$0xff] }
 0x161   :  { %2772 = vmatpush1.bf16.msra.mxu0 %v3909_v9  ;;  %2901 = vmatpush1.bf16.msra.mxu1 %v3911_v10  ;;  %v3973_v9 = vcombine.low %v245_v61, %v249_v62  ;;  %v3975_v10 = vcombine.low %v246_v63, %v250_v0  ;;  %v4030_v61 = vcombine.high %v301_v55, %v305_v56  ;;  %v309_v63 = vld [vmem:[#allocation5 + $0x5d0] sm:$0xff] }
 0x162   :  { %2773 = vmatprep.subr.bf16.mxu0 %v3918_v11  ;;  %2902 = vmatprep.subr.bf16.mxu1 %v3920_v12  ;;  %v3982_v11 = vcombine.high %v253_v5, %v257_v6  ;;  %v3984_v12 = vcombine.high %v254_v7, %v258_v8  ;;  %v313_v0 = vld [vmem:[#allocation5 + $0x5f0] sm:$0xff] }
 0x165   :  { %2774 = vmatpush1.bf16.msra.mxu0 %v3917_v17  ;;  %2903 = vmatpush1.bf16.msra.mxu1 %v3919_v18  ;;  %v3981_v17 = vcombine.low %v253_v5, %v257_v6  ;;  %v3983_v18 = vcombine.low %v254_v7, %v258_v8  ;;  %v4038_v5 = vcombine.high %v309_v63, %v313_v0  ;;  %v317_v7 = vld [vmem:[#allocation5 + $0x610] sm:$0xff] }
 0x166   :  { %2775 = vmatprep.subr.bf16.mxu0 %v3926_v19  ;;  %2904 = vmatprep.subr.bf16.mxu1 %v3928_v20  ;;  %v3990_v19 = vcombine.high %v261_v13, %v265_v14  ;;  %v3992_v20 = vcombine.high %v262_v15, %v266_v16  ;;  %v321_v8 = vld [vmem:[#allocation5 + $0x630] sm:$0xff] }
 0x169   :  { %2776 = vmatpush1.bf16.msra.mxu0 %v3925_v25  ;;  %2905 = vmatpush1.bf16.msra.mxu1 %v3927_v26  ;;  %v274_v25 = vld [vmem:[#allocation5 + $0x4b8] sm:$0xff]  ;;  %v3989_v26 = vcombine.low %v261_v13, %v265_v14  ;;  %v4046_v13 = vcombine.high %v317_v7, %v321_v8 }
 0x16a   :  { %2777 = vmatprep.subr.bf16.mxu0 %v3934_v27  ;;  %2906 = vmatprep.subr.bf16.mxu1 %v3936_v28  ;;  %v3991_v27 = vcombine.low %v262_v15, %v266_v16  ;;  %v3998_v28 = vcombine.high %v269_v21, %v273_v22  ;;  %v4000_v29 = vcombine.high %v270_v24, %v274_v25  ;;  %v325_v15 = vld [vmem:[#allocation5 + $0x650] sm:$0xff] }
 0x16b   :  { %v329_v16 = vld [vmem:[#allocation5 + $0x670] sm:$0xff] }
 0x16d   :  { %2778 = vmatpush1.bf16.msra.mxu0 %v3933_v33  ;;  %2907 = vmatpush1.bf16.msra.mxu1 %v3935_v34  ;;  %v278_v33 = vld [vmem:[#allocation5 + $0x4d8] sm:$0xff] }
 0x16e   :  { %2779 = vmatprep.subr.bf16.mxu0 %v3942_v35  ;;  %2908 = vmatprep.subr.bf16.mxu1 %v3944_v36  ;;  %v282_v34 = vld [vmem:[#allocation5 + $0x4f8] sm:$0xff]  ;;  %v3997_v35 = vcombine.low %v269_v21, %v273_v22  ;;  %v3999_v36 = vcombine.low %v270_v24, %v274_v25  ;;  %v4054_v21 = vcombine.high %v325_v15, %v329_v16  ;;  %v337_v24 = vld [vmem:[#allocation5 + $0x6b0] sm:$0xff] }
 0x16f   :  { %v4008_v38 = vcombine.high %v278_v33, %v282_v34  ;;  %v334_v25 = vld [vmem:[#allocation5 + $0x698] sm:$0xff] }
 0x171   :  { %2780 = vmatpush1.bf16.msra.mxu0 %v3941_v41  ;;  %2909 = vmatpush1.bf16.msra.mxu1 %v3943_v42  ;;  %v286_v41 = vld [vmem:[#allocation5 + $0x518] sm:$0xff] }
 0x172   :  { %2781 = vmatprep.subr.bf16.mxu0 %v3950_v43  ;;  %2910 = vmatprep.subr.bf16.mxu1 %v3952_v44  ;;  %v290_v42 = vld [vmem:[#allocation5 + $0x538] sm:$0xff]  ;;  %v4005_v43 = vcombine.low %v277_v30, %v281_v31  ;;  %v4007_v44 = vcombine.low %v278_v33, %v282_v34  ;;  %v341_v31 = vld [vmem:[#allocation5 + $0x6d0] sm:$0xff] }
 0x173   :  { %v4016_v46 = vcombine.high %v286_v41, %v290_v42  ;;  %v342_v33 = vld [vmem:[#allocation5 + $0x6d8] sm:$0xff] }
 0x174   :  { %v346_v34 = vld [vmem:[#allocation5 + $0x6f8] sm:$0xff] }
 0x175   :  { %2782 = vmatpush1.bf16.msra.mxu0 %v3949_v49  ;;  %2911 = vmatpush1.bf16.msra.mxu1 %v3951_v50  ;;  %v294_v49 = vld [vmem:[#allocation5 + $0x558] sm:$0xff] }
 0x176   :  { %2783 = vmatprep.subr.bf16.mxu0 %v3958_v51  ;;  %2912 = vmatprep.subr.bf16.mxu1 %v3960_v52  ;;  %v298_v50 = vld [vmem:[#allocation5 + $0x578] sm:$0xff]  ;;  %v4013_v51 = vcombine.low %v285_v39, %v289_v40  ;;  %v4015_v52 = vcombine.low %v286_v41, %v290_v42  ;;  %v349_v39 = vld [vmem:[#allocation5 + $0x710] sm:$0xff] }
 0x177   :  { %v4024_v54 = vcombine.high %v294_v49, %v298_v50  ;;  %v353_v40 = vld [vmem:[#allocation5 + $0x730] sm:$0xff]  ;;  %v350_v41 = vld [vmem:[#allocation5 + $0x718] sm:$0xff] }
 0x178   :  { %v354_v42 = vld [vmem:[#allocation5 + $0x738] sm:$0xff] }
 0x179   :  { %2784 = vmatpush1.bf16.msra.mxu0 %v3957_v57  ;;  %2913 = vmatpush1.bf16.msra.mxu1 %v3959_v58  ;;  %v302_v57 = vld [vmem:[#allocation5 + $0x598] sm:$0xff] }
 0x17a   :  { %2785 = vmatprep.subr.bf16.mxu0 %v3966_v59  ;;  %2914 = vmatprep.subr.bf16.mxu1 %v3968_v60  ;;  %v306_v58 = vld [vmem:[#allocation5 + $0x5b8] sm:$0xff]  ;;  %v4021_v59 = vcombine.low %v293_v47, %v297_v48  ;;  %v4023_v60 = vcombine.low %v294_v49, %v298_v50  ;;  %v357_v47 = vld [vmem:[#allocation5 + $0x750] sm:$0xff] }
 0x17b   :  { %v4032_v62 = vcombine.high %v302_v57, %v306_v58  ;;  %v361_v48 = vld [vmem:[#allocation5 + $0x770] sm:$0xff]  ;;  %v358_v49 = vld [vmem:[#allocation5 + $0x758] sm:$0xff] }
 0x17c   :  { %v362_v50 = vld [vmem:[#allocation5 + $0x778] sm:$0xff] }
 0x17d   :  { %2786 = vmatpush1.bf16.msra.mxu0 %v3965_v1  ;;  %2915 = vmatpush1.bf16.msra.mxu1 %v3967_v2  ;;  %v310_v1 = vld [vmem:[#allocation5 + $0x5d8] sm:$0xff] }
 0x17e   :  { %2787 = vmatprep.subr.bf16.mxu0 %v3974_v3  ;;  %2916 = vmatprep.subr.bf16.mxu1 %v3976_v4  ;;  %v314_v2 = vld [vmem:[#allocation5 + $0x5f8] sm:$0xff]  ;;  %v4029_v3 = vcombine.low %v301_v55, %v305_v56  ;;  %v4031_v4 = vcombine.low %v302_v57, %v306_v58  ;;  %v365_v55 = vld [vmem:[#allocation5 + $0x790] sm:$0xff] }
 0x17f   :  { %v4040_v6 = vcombine.high %v310_v1, %v314_v2  ;;  %v369_v56 = vld [vmem:[#allocation5 + $0x7b0] sm:$0xff]  ;;  %v366_v57 = vld [vmem:[#allocation5 + $0x798] sm:$0xff] }
 0x180   :  { %v370_v58 = vld [vmem:[#allocation5 + $0x7b8] sm:$0xff] }
 0x181   :  { %2788 = vmatpush1.bf16.msra.mxu0 %v3973_v9  ;;  %2917 = vmatpush1.bf16.msra.mxu1 %v3975_v10  ;;  %v318_v9 = vld [vmem:[#allocation5 + $0x618] sm:$0xff] }
 0x182   :  { %2800 = vmatprep.subr.bf16.mxu0 %v3982_v11  ;;  %2929 = vmatprep.subr.bf16.mxu1 %v3984_v12  ;;  %v322_v10 = vld [vmem:[#allocation5 + $0x638] sm:$0xff]  ;;  %v4037_v11 = vcombine.low %v309_v63, %v313_v0  ;;  %v4039_v12 = vcombine.low %v310_v1, %v314_v2  ;;  %v373_v63 = vld [vmem:[#allocation5 + $0x7d0] sm:$0xff] }
 0x183   :  { %v4048_v14 = vcombine.high %v318_v9, %v322_v10  ;;  %v377_v0 = vld [vmem:[#allocation5 + $0x7f0] sm:$0xff]  ;;  %v374_v1 = vld [vmem:[#allocation5 + $0x7d8] sm:$0xff] }
 0x184   :  { %2790 = vmatmul.mubr.bf16.vlgmr.msra.gmra.mrb[4].mxu0 %v4572_v23  ;;  %2919 = vmatmul.mubr.bf16.vlgmr.msra.gmra.mrb[4].mxu1 %v4572_v23  ;;  %v333_v23 = vld [vmem:[#allocation5 + $0x690] sm:$0xff]  ;;  %v378_v2 = vld [vmem:[#allocation5 + $0x7f8] sm:$0xff] }
 0x185   :  { %2801 = vmatpush1.bf16.msra.mxu0 %v3981_v17  ;;  %2930 = vmatpush1.bf16.msra.mxu1 %v3983_v18  ;;  %v326_v17 = vld [vmem:[#allocation5 + $0x658] sm:$0xff] }
 0x186   :  { %2802 = vmatprep.subr.bf16.mxu0 %v3990_v19  ;;  %2931 = vmatprep.subr.bf16.mxu1 %v3992_v20  ;;  %v330_v18 = vld [vmem:[#allocation5 + $0x678] sm:$0xff]  ;;  %v4045_v19 = vcombine.low %v317_v7, %v321_v8  ;;  %v4047_v20 = vcombine.low %v318_v9, %v322_v10  ;;  %v381_v7 = vld [vmem:[#allocation5 + $0x810] sm:$0xff] }
 0x187   :  { %2832 = vmatprep.mubr.bf16.mxu0 %v4573_v32  ;;  %2961 = vmatprep.mubr.bf16.mxu1 %v4573_v32  ;;  %v4056_v22 = vcombine.high %v326_v17, %v330_v18  ;;  %v345_v32 = vld [vmem:[#allocation5 + $0x6f0] sm:$0xff]  ;;  %v382_v9 = vld [vmem:[#allocation5 + $0x818] sm:$0xff] }
 0x188   :  { %v385_v8 = vld [vmem:[#allocation5 + $0x830] sm:$0xff]  ;;  %v386_v10 = vld [vmem:[#allocation5 + $0x838] sm:$0xff] }
 0x189   :  { %2803 = vmatpush1.bf16.msra.mxu0 %v3989_v26  ;;  %2932 = vmatpush1.bf16.msra.mxu1 %v3991_v27  ;;  %v338_v26 = vld [vmem:[#allocation5 + $0x6b8] sm:$0xff]  ;;  %v4053_v27 = vcombine.low %v325_v15, %v329_v16  ;;  %v389_v15 = vld [vmem:[#allocation5 + $0x850] sm:$0xff] }
 0x18a   :  { %2804 = vmatprep.subr.bf16.mxu0 %v3998_v28  ;;  %2933 = vmatprep.subr.bf16.mxu1 %v4000_v29  ;;  %v4055_v28 = vcombine.low %v326_v17, %v330_v18  ;;  %v4062_v29 = vcombine.high %v333_v23, %v337_v24  ;;  %v4064_v30 = vcombine.high %v334_v25, %v338_v26  ;;  %v393_v16 = vld [vmem:[#allocation5 + $0x870] sm:$0xff]  ;;  %v390_v17 = vld [vmem:[#allocation5 + $0x858] sm:$0xff] }
 0x18b   :  { %v394_v18 = vld [vmem:[#allocation5 + $0x878] sm:$0xff] }
 0x18d   :  { %2805 = vmatpush1.bf16.msra.mxu0 %v3997_v35  ;;  %2934 = vmatpush1.bf16.msra.mxu1 %v3999_v36  ;;  %v4061_v35 = vcombine.low %v333_v23, %v337_v24  ;;  %v4063_v36 = vcombine.low %v334_v25, %v338_v26  ;;  %v397_v23 = vld [vmem:[#allocation5 + $0x890] sm:$0xff]  ;;  %v398_v26 = vld [vmem:[#allocation5 + $0x898] sm:$0xff] }
 0x18e   :  { %2806 = vmatprep.subr.bf16.mxu0 %v4006_v37  ;;  %2935 = vmatprep.subr.bf16.mxu1 %v4008_v38  ;;  %v4070_v37 = vcombine.high %v341_v31, %v345_v32  ;;  %v4072_v38 = vcombine.high %v342_v33, %v346_v34  ;;  %v401_v24 = vld [vmem:[#allocation5 + $0x8b0] sm:$0xff] }
 0x18f   :  { %v4574_v25 = vld [vmem:[#allocation2 + $0x8] ss:$24 sps:$4 sm:$0xff]  }
 0x191   :  { %2807 = vmatpush1.bf16.msra.mxu0 %v4005_v43  ;;  %2936 = vmatpush1.bf16.msra.mxu1 %v4007_v44  ;;  %v4069_v43 = vcombine.low %v341_v31, %v345_v32  ;;  %v4071_v44 = vcombine.low %v342_v33, %v346_v34  ;;  %v405_v32 = vld [vmem:[#allocation5 + $0x8d0] sm:$0xff]  ;;  %v4575_v34 = vld [vmem:[#allocation2 + $0x14] ss:$24 sps:$4 sm:$0xff]  }
 0x192   :  { %2808 = vmatprep.subr.bf16.mxu0 %v4014_v45  ;;  %2937 = vmatprep.subr.bf16.mxu1 %v4016_v46  ;;  %v4078_v45 = vcombine.high %v349_v39, %v353_v40  ;;  %v4080_v46 = vcombine.high %v350_v41, %v354_v42  ;;  %v409_v33 = vld [vmem:[#allocation5 + $0x8f0] sm:$0xff] }
 0x195   :  { %2809 = vmatpush1.bf16.msra.mxu0 %v4013_v51  ;;  %2938 = vmatpush1.bf16.msra.mxu1 %v4015_v52  ;;  %v4077_v51 = vcombine.low %v349_v39, %v353_v40  ;;  %v4079_v52 = vcombine.low %v350_v41, %v354_v42  ;;  %v4134_v39 = vcombine.high %v405_v32, %v409_v33  ;;  %v413_v41 = vld [vmem:[#allocation5 + $0x910] sm:$0xff] }
 0x196   :  { %2810 = vmatprep.subr.bf16.mxu0 %v4022_v53  ;;  %2939 = vmatprep.subr.bf16.mxu1 %v4024_v54  ;;  %v4086_v53 = vcombine.high %v357_v47, %v361_v48  ;;  %v4088_v54 = vcombine.high %v358_v49, %v362_v50  ;;  %v417_v42 = vld [vmem:[#allocation5 + $0x930] sm:$0xff] }
 0x199   :  { %2811 = vmatpush1.bf16.msra.mxu0 %v4021_v59  ;;  %2940 = vmatpush1.bf16.msra.mxu1 %v4023_v60  ;;  %v4085_v59 = vcombine.low %v357_v47, %v361_v48  ;;  %v4087_v60 = vcombine.low %v358_v49, %v362_v50  ;;  %v4142_v47 = vcombine.high %v413_v41, %v417_v42  ;;  %v421_v49 = vld [vmem:[#allocation5 + $0x950] sm:$0xff] }
 0x19a   :  { %2812 = vmatprep.subr.bf16.mxu0 %v4030_v61  ;;  %2941 = vmatprep.subr.bf16.mxu1 %v4032_v62  ;;  %v4094_v61 = vcombine.high %v365_v55, %v369_v56  ;;  %v4096_v62 = vcombine.high %v366_v57, %v370_v58  ;;  %v425_v50 = vld [vmem:[#allocation5 + $0x970] sm:$0xff] }
 0x19d   :  { %2813 = vmatpush1.bf16.msra.mxu0 %v4029_v3  ;;  %2942 = vmatpush1.bf16.msra.mxu1 %v4031_v4  ;;  %v4093_v3 = vcombine.low %v365_v55, %v369_v56  ;;  %v4095_v4 = vcombine.low %v366_v57, %v370_v58  ;;  %v4150_v55 = vcombine.high %v421_v49, %v425_v50  ;;  %v429_v57 = vld [vmem:[#allocation5 + $0x990] sm:$0xff] }
 0x19e   :  { %2814 = vmatprep.subr.bf16.mxu0 %v4038_v5  ;;  %2943 = vmatprep.subr.bf16.mxu1 %v4040_v6  ;;  %v4102_v5 = vcombine.high %v373_v63, %v377_v0  ;;  %v4104_v6 = vcombine.high %v374_v1, %v378_v2  ;;  %v433_v58 = vld [vmem:[#allocation5 + $0x9b0] sm:$0xff] }
 0x1a1   :  { %2815 = vmatpush1.bf16.msra.mxu0 %v4037_v11  ;;  %2944 = vmatpush1.bf16.msra.mxu1 %v4039_v12  ;;  %v4101_v11 = vcombine.low %v373_v63, %v377_v0  ;;  %v4103_v12 = vcombine.low %v374_v1, %v378_v2  ;;  %v4158_v63 = vcombine.high %v429_v57, %v433_v58  ;;  %v437_v1 = vld [vmem:[#allocation5 + $0x9d0] sm:$0xff] }
 0x1a2   :  { %2816 = vmatprep.subr.bf16.mxu0 %v4046_v13  ;;  %2945 = vmatprep.subr.bf16.mxu1 %v4048_v14  ;;  %v4110_v13 = vcombine.high %v381_v7, %v385_v8  ;;  %v4112_v14 = vcombine.high %v382_v9, %v386_v10  ;;  %v441_v2 = vld [vmem:[#allocation5 + $0x9f0] sm:$0xff] }
 0x1a5   :  { %2817 = vmatpush1.bf16.msra.mxu0 %v4045_v19  ;;  %2946 = vmatpush1.bf16.msra.mxu1 %v4047_v20  ;;  %v4109_v19 = vcombine.low %v381_v7, %v385_v8  ;;  %v4111_v20 = vcombine.low %v382_v9, %v386_v10  ;;  %v4166_v7 = vcombine.high %v437_v1, %v441_v2  ;;  %v445_v9 = vld [vmem:[#allocation5 + $0xa10] sm:$0xff] }
 0x1a6   :  { %2818 = vmatprep.subr.bf16.mxu0 %v4054_v21  ;;  %2947 = vmatprep.subr.bf16.mxu1 %v4056_v22  ;;  %v4118_v21 = vcombine.high %v389_v15, %v393_v16  ;;  %v4120_v22 = vcombine.high %v390_v17, %v394_v18  ;;  %v449_v10 = vld [vmem:[#allocation5 + $0xa30] sm:$0xff] }
 0x1a9   :  { %2819 = vmatpush1.bf16.msra.mxu0 %v4053_v27  ;;  %2948 = vmatpush1.bf16.msra.mxu1 %v4055_v28  ;;  %v402_v27 = vld [vmem:[#allocation5 + $0x8b8] sm:$0xff]  ;;  %v4117_v28 = vcombine.low %v389_v15, %v393_v16  ;;  %v4174_v15 = vcombine.high %v445_v9, %v449_v10 }
 0x1aa   :  { %2820 = vmatprep.subr.bf16.mxu0 %v4062_v29  ;;  %2949 = vmatprep.subr.bf16.mxu1 %v4064_v30  ;;  %v4119_v29 = vcombine.low %v390_v17, %v394_v18  ;;  %v4126_v30 = vcombine.high %v397_v23, %v401_v24  ;;  %v4128_v31 = vcombine.high %v398_v26, %v402_v27  ;;  %v453_v17 = vld [vmem:[#allocation5 + $0xa50] sm:$0xff] }
 0x1ab   :  { %v457_v18 = vld [vmem:[#allocation5 + $0xa70] sm:$0xff] }
 0x1ad   :  { %2821 = vmatpush1.bf16.msra.mxu0 %v4061_v35  ;;  %2950 = vmatpush1.bf16.msra.mxu1 %v4063_v36  ;;  %v406_v35 = vld [vmem:[#allocation5 + $0x8d8] sm:$0xff] }
 0x1ae   :  { %2822 = vmatprep.subr.bf16.mxu0 %v4070_v37  ;;  %2951 = vmatprep.subr.bf16.mxu1 %v4072_v38  ;;  %v410_v36 = vld [vmem:[#allocation5 + $0x8f8] sm:$0xff]  ;;  %v4125_v37 = vcombine.low %v397_v23, %v401_v24  ;;  %v4127_v38 = vcombine.low %v398_v26, %v402_v27  ;;  %v4182_v23 = vcombine.high %v453_v17, %v457_v18  ;;  %v465_v26 = vld [vmem:[#allocation5 + $0xab0] sm:$0xff] }
 0x1af   :  { %v4136_v40 = vcombine.high %v406_v35, %v410_v36  ;;  %v462_v27 = vld [vmem:[#allocation5 + $0xa98] sm:$0xff] }
 0x1b1   :  { %2823 = vmatpush1.bf16.msra.mxu0 %v4069_v43  ;;  %2952 = vmatpush1.bf16.msra.mxu1 %v4071_v44  ;;  %v414_v43 = vld [vmem:[#allocation5 + $0x918] sm:$0xff] }
 0x1b2   :  { %2824 = vmatprep.subr.bf16.mxu0 %v4078_v45  ;;  %2953 = vmatprep.subr.bf16.mxu1 %v4080_v46  ;;  %v418_v44 = vld [vmem:[#allocation5 + $0x938] sm:$0xff]  ;;  %v4133_v45 = vcombine.low %v405_v32, %v409_v33  ;;  %v4135_v46 = vcombine.low %v406_v35, %v410_v36  ;;  %v469_v33 = vld [vmem:[#allocation5 + $0xad0] sm:$0xff] }
 0x1b3   :  { %v4144_v48 = vcombine.high %v414_v43, %v418_v44  ;;  %v470_v35 = vld [vmem:[#allocation5 + $0xad8] sm:$0xff] }
 0x1b4   :  { %v474_v36 = vld [vmem:[#allocation5 + $0xaf8] sm:$0xff] }
 0x1b5   :  { %2825 = vmatpush1.bf16.msra.mxu0 %v4077_v51  ;;  %2954 = vmatpush1.bf16.msra.mxu1 %v4079_v52  ;;  %v422_v51 = vld [vmem:[#allocation5 + $0x958] sm:$0xff] }
 0x1b6   :  { %2826 = vmatprep.subr.bf16.mxu0 %v4086_v53  ;;  %2955 = vmatprep.subr.bf16.mxu1 %v4088_v54  ;;  %v426_v52 = vld [vmem:[#allocation5 + $0x978] sm:$0xff]  ;;  %v4141_v53 = vcombine.low %v413_v41, %v417_v42  ;;  %v4143_v54 = vcombine.low %v414_v43, %v418_v44  ;;  %v477_v41 = vld [vmem:[#allocation5 + $0xb10] sm:$0xff] }
 0x1b7   :  { %v4152_v56 = vcombine.high %v422_v51, %v426_v52  ;;  %v481_v42 = vld [vmem:[#allocation5 + $0xb30] sm:$0xff]  ;;  %v478_v43 = vld [vmem:[#allocation5 + $0xb18] sm:$0xff] }
 0x1b8   :  { %v482_v44 = vld [vmem:[#allocation5 + $0xb38] sm:$0xff] }
 0x1b9   :  { %2827 = vmatpush1.bf16.msra.mxu0 %v4085_v59  ;;  %2956 = vmatpush1.bf16.msra.mxu1 %v4087_v60  ;;  %v430_v59 = vld [vmem:[#allocation5 + $0x998] sm:$0xff] }
 0x1ba   :  { %2828 = vmatprep.subr.bf16.mxu0 %v4094_v61  ;;  %2957 = vmatprep.subr.bf16.mxu1 %v4096_v62  ;;  %v434_v60 = vld [vmem:[#allocation5 + $0x9b8] sm:$0xff]  ;;  %v4149_v61 = vcombine.low %v421_v49, %v425_v50  ;;  %v4151_v62 = vcombine.low %v422_v51, %v426_v52  ;;  %v485_v49 = vld [vmem:[#allocation5 + $0xb50] sm:$0xff] }
 0x1bb   :  { %v4160_v0 = vcombine.high %v430_v59, %v434_v60  ;;  %v489_v50 = vld [vmem:[#allocation5 + $0xb70] sm:$0xff]  ;;  %v486_v51 = vld [vmem:[#allocation5 + $0xb58] sm:$0xff] }
 0x1bc   :  { %v490_v52 = vld [vmem:[#allocation5 + $0xb78] sm:$0xff] }
 0x1bd   :  { %2829 = vmatpush1.bf16.msra.mxu0 %v4093_v3  ;;  %2958 = vmatpush1.bf16.msra.mxu1 %v4095_v4  ;;  %v438_v3 = vld [vmem:[#allocation5 + $0x9d8] sm:$0xff] }
 0x1be   :  { %2830 = vmatprep.subr.bf16.mxu0 %v4102_v5  ;;  %2959 = vmatprep.subr.bf16.mxu1 %v4104_v6  ;;  %v442_v4 = vld [vmem:[#allocation5 + $0x9f8] sm:$0xff]  ;;  %v4157_v5 = vcombine.low %v429_v57, %v433_v58  ;;  %v4159_v6 = vcombine.low %v430_v59, %v434_v60  ;;  %v493_v57 = vld [vmem:[#allocation5 + $0xb90] sm:$0xff] }
 0x1bf   :  { %v4168_v8 = vcombine.high %v438_v3, %v442_v4  ;;  %v497_v58 = vld [vmem:[#allocation5 + $0xbb0] sm:$0xff]  ;;  %v494_v59 = vld [vmem:[#allocation5 + $0xb98] sm:$0xff] }
 0x1c0   :  { %v498_v60 = vld [vmem:[#allocation5 + $0xbb8] sm:$0xff] }
 0x1c1   :  { %2831 = vmatpush1.bf16.msra.mxu0 %v4101_v11  ;;  %2960 = vmatpush1.bf16.msra.mxu1 %v4103_v12  ;;  %v446_v11 = vld [vmem:[#allocation5 + $0xa18] sm:$0xff] }
 0x1c2   :  { %2843 = vmatprep.subr.bf16.mxu0 %v4110_v13  ;;  %2972 = vmatprep.subr.bf16.mxu1 %v4112_v14  ;;  %v450_v12 = vld [vmem:[#allocation5 + $0xa38] sm:$0xff]  ;;  %v4165_v13 = vcombine.low %v437_v1, %v441_v2  ;;  %v4167_v14 = vcombine.low %v438_v3, %v442_v4  ;;  %v501_v1 = vld [vmem:[#allocation5 + $0xbd0] sm:$0xff] }
 0x1c3   :  { %v4176_v16 = vcombine.high %v446_v11, %v450_v12  ;;  %v505_v2 = vld [vmem:[#allocation5 + $0xbf0] sm:$0xff]  ;;  %v502_v3 = vld [vmem:[#allocation5 + $0xbd8] sm:$0xff] }
 0x1c4   :  { %2833 = vmatmul.mubr.bf16.vlgmr.msra.gmra.mrb[4].mxu0 %v4574_v25  ;;  %2962 = vmatmul.mubr.bf16.vlgmr.msra.gmra.mrb[4].mxu1 %v4574_v25  ;;  %v461_v25 = vld [vmem:[#allocation5 + $0xa90] sm:$0xff]  ;;  %v506_v4 = vld [vmem:[#allocation5 + $0xbf8] sm:$0xff] }
 0x1c5   :  { %2844 = vmatpush1.bf16.msra.mxu0 %v4109_v19  ;;  %2973 = vmatpush1.bf16.msra.mxu1 %v4111_v20  ;;  %v454_v19 = vld [vmem:[#allocation5 + $0xa58] sm:$0xff] }
 0x1c6   :  { %2845 = vmatprep.subr.bf16.mxu0 %v4118_v21  ;;  %2974 = vmatprep.subr.bf16.mxu1 %v4120_v22  ;;  %v458_v20 = vld [vmem:[#allocation5 + $0xa78] sm:$0xff]  ;;  %v4173_v21 = vcombine.low %v445_v9, %v449_v10  ;;  %v4175_v22 = vcombine.low %v446_v11, %v450_v12  ;;  %v4229_v9 = vcombine.low %v501_v1, %v505_v2  ;;  %v4499_v11 = vld [vmem:[#allocation8 + $0x40] sm:$0xff]  }
 0x1c7   :  { %2875 = vmatprep.mubr.bf16.mxu0 %v4575_v34  ;;  %3004 = vmatprep.mubr.bf16.mxu1 %v4575_v34  ;;  %v4184_v24 = vcombine.high %v454_v19, %v458_v20  ;;  %v473_v34 = vld [vmem:[#allocation5 + $0xaf0] sm:$0xff]  ;;  %v4231_v10 = vcombine.low %v502_v3, %v506_v4  ;;  %v4500_v12 = vld [vmem:[#allocation8 + $0xc0] sm:$0xff]  }
 0x1c9   :  { %2846 = vmatpush1.bf16.msra.mxu0 %v4117_v28  ;;  %2975 = vmatpush1.bf16.msra.mxu1 %v4119_v29  ;;  %v466_v28 = vld [vmem:[#allocation5 + $0xab8] sm:$0xff]  ;;  %v4181_v29 = vcombine.low %v453_v17, %v457_v18  ;;  %v4505_v18 = vld [vmem:[#allocation8 + $0x8] sm:$0xff]  }
 0x1ca   :  { %2847 = vmatprep.subr.bf16.mxu0 %v4126_v30  ;;  %2976 = vmatprep.subr.bf16.mxu1 %v4128_v31  ;;  %v4183_v30 = vcombine.low %v454_v19, %v458_v20  ;;  %v4190_v31 = vcombine.high %v461_v25, %v465_v26  ;;  %v4192_v32 = vcombine.high %v462_v27, %v466_v28  ;;  %v4576_v17 = vld [vmem:[#allocation2 + $0x10] ss:$24 sps:$4 sm:$0xff]   ;;  %v4506_v19 = vld [vmem:[#allocation8 + $0x88] sm:$0xff]  }
 0x1cb   :  { %v4507_v20 = vld [vmem:[#allocation8 + $0x50] sm:$0xff]  }
 0x1cd   :  { %2848 = vmatpush1.bf16.msra.mxu0 %v4125_v37  ;;  %2977 = vmatpush1.bf16.msra.mxu1 %v4127_v38  ;;  %v4189_v37 = vcombine.low %v461_v25, %v465_v26  ;;  %v4191_v38 = vcombine.low %v462_v27, %v466_v28  ;;  %v509_v25 = vlaneseq  ;;  %v4512_v26 = vld [vmem:[#allocation8 + $0xd8] sm:$0xff]  }
 0x1ce   :  { %2849 = vmatprep.subr.bf16.mxu0 %v4134_v39  ;;  %2978 = vmatprep.subr.bf16.mxu1 %v4136_v40  ;;  %v4198_v39 = vcombine.high %v469_v33, %v473_v34  ;;  %v4200_v40 = vcombine.high %v470_v35, %v474_v36  ;;  %v4513_v27 = vld [vmem:[#allocation8 + $0x18] sm:$0xff]  }
 0x1cf   :  { %v4514_v28 = vld [vmem:[#allocation8 + $0x98] sm:$0xff]  }
 0x1d1   :  { %2850 = vmatpush1.bf16.msra.mxu0 %v4133_v45  ;;  %2979 = vmatpush1.bf16.msra.mxu1 %v4135_v46  ;;  %v4197_v45 = vcombine.low %v469_v33, %v473_v34  ;;  %v4199_v46 = vcombine.low %v470_v35, %v474_v36  ;;  %v4518_v33 = vld [vmem:[#allocation8 + $0xa0] sm:$0xff]   ;;  %v4519_v35 = vld [vmem:[#allocation8 + $0x68] sm:$0xff]   ;;  %v4915_v36 = vld [vmem:[#allocation7] sm:$0xff] }
 0x1d2   :  { %2851 = vmatprep.subr.bf16.mxu0 %v4142_v47  ;;  %2980 = vmatprep.subr.bf16.mxu1 %v4144_v48  ;;  %v4206_v47 = vcombine.high %v477_v41, %v481_v42  ;;  %v4208_v48 = vcombine.high %v478_v43, %v482_v44 }
 0x1d5   :  { %2852 = vmatpush1.bf16.msra.mxu0 %v4141_v53  ;;  %2981 = vmatpush1.bf16.msra.mxu1 %v4143_v54  ;;  %v4205_v53 = vcombine.low %v477_v41, %v481_v42  ;;  %v4207_v54 = vcombine.low %v478_v43, %v482_v44  ;;  %v4521_v41 = vld [vmem:[#allocation8 + $0x28] sm:$0xff]   ;;  %v4523_v44 = vld [vmem:[#allocation8 + $0x70] sm:$0xff]  }
 0x1d6   :  { %2853 = vmatprep.subr.bf16.mxu0 %v4150_v55  ;;  %2982 = vmatprep.subr.bf16.mxu1 %v4152_v56  ;;  %v4214_v55 = vcombine.high %v485_v49, %v489_v50  ;;  %v4216_v56 = vcombine.high %v486_v51, %v490_v52  ;;  %v4522_v43 = vld [vmem:[#allocation8 + $0xa8] sm:$0xff]  }
 0x1d9   :  { %2854 = vmatpush1.bf16.msra.mxu0 %v4149_v61  ;;  %2983 = vmatpush1.bf16.msra.mxu1 %v4151_v62  ;;  %v4213_v61 = vcombine.low %v485_v49, %v489_v50  ;;  %v4215_v62 = vcombine.low %v486_v51, %v490_v52 }
 0x1da   :  { %2855 = vmatprep.subr.bf16.mxu0 %v4158_v63  ;;  %2984 = vmatprep.subr.bf16.mxu1 %v4160_v0  ;;  %v4222_v63 = vcombine.high %v493_v57, %v497_v58  ;;  %v4224_v0 = vcombine.high %v494_v59, %v498_v60 }
 0x1dd   :  { %2856 = vmatpush1.bf16.msra.mxu0 %v4157_v5  ;;  %2985 = vmatpush1.bf16.msra.mxu1 %v4159_v6  ;;  %v4221_v5 = vcombine.low %v493_v57, %v497_v58  ;;  %v4223_v6 = vcombine.low %v494_v59, %v498_v60  ;;  %v4526_v59 = vld [vmem:[#allocation8 + $0xb0] sm:$0xff]   ;;  %v4527_v60 = vld [vmem:[#allocation8 + $0x78] sm:$0xff]  }
 0x1de   :  { %2857 = vmatprep.subr.bf16.mxu0 %v4166_v7  ;;  %2986 = vmatprep.subr.bf16.mxu1 %v4168_v8  ;;  %v4230_v7 = vcombine.high %v501_v1, %v505_v2  ;;  %v4232_v8 = vcombine.high %v502_v3, %v506_v4  ;;  %v4528_v2 = vld [vmem:[#allocation8 + $0xf8] sm:$0xff]  }
 0x1e1   :  { %2858 = vmatpush1.bf16.msra.mxu0 %v4165_v13  ;;  %2987 = vmatpush1.bf16.msra.mxu1 %v4167_v14  ;;  %v4501_v13 = vld [vmem:[#allocation8] sm:$0xff]  }
 0x1e2   :  { %2859 = vmatprep.subr.bf16.mxu0 %v4174_v15  ;;  %2988 = vmatprep.subr.bf16.mxu1 %v4176_v16  ;;  %v4502_v14 = vld [vmem:[#allocation8 + $0x80] sm:$0xff]   ;;  %v4503_v15 = vld [vmem:[#allocation8 + $0x48] sm:$0xff]  }
 0x1e3   :  { %v4504_v16 = vld [vmem:[#allocation8 + $0xc8] sm:$0xff]  }
 0x1e5   :  { %2860 = vmatpush1.bf16.msra.mxu0 %v4173_v21  ;;  %2989 = vmatpush1.bf16.msra.mxu1 %v4175_v22  ;;  %v4508_v21 = vld [vmem:[#allocation8 + $0xd0] sm:$0xff]  }
 0x1e6   :  { %2861 = vmatprep.subr.bf16.mxu0 %v4182_v23  ;;  %2990 = vmatprep.subr.bf16.mxu1 %v4184_v24  ;;  %v4509_v22 = vld [vmem:[#allocation8 + $0x10] sm:$0xff]   ;;  %v4511_v24 = vld [vmem:[#allocation8 + $0x58] sm:$0xff]  }
 0x1e7   :  { %v4510_v23 = vld [vmem:[#allocation8 + $0x90] sm:$0xff]  }
 0x1e9   :  { %2862 = vmatpush1.bf16.msra.mxu0 %v4181_v29  ;;  %2991 = vmatpush1.bf16.msra.mxu1 %v4183_v30  ;;  %v4515_v29 = vld [vmem:[#allocation8 + $0x60] sm:$0xff]   ;;  %v4912_v30 = vshrl.u32 %v509_v25, 7  ;;  %v4545_v25 = vld [vmem:[#allocation8 + $0x118] sm:$0xff]  }
 0x1ea   :  { %2863 = vmatprep.subr.bf16.mxu0 %v4190_v31  ;;  %2992 = vmatprep.subr.bf16.mxu1 %v4192_v32  ;;  %v4516_v31 = vld [vmem:[#allocation8 + $0xe0] sm:$0xff]  }
 0x1eb   :  { %v4517_v32 = vld [vmem:[#allocation8 + $0x20] sm:$0xff]   ;;  %v511_v34 = vsub.s32 0, %v4912_v30 }
 0x1ed   :  { %2864 = vmatpush1.bf16.msra.mxu0 %v4189_v37  ;;  %2993 = vmatpush1.bf16.msra.mxu1 %v4191_v38  ;;  %v519_v37 = vsub.s32 2, %v4912_v30  ;;  %v515_v38 = vsub.s32 1, %v4912_v30  ;;  %v512_v42 = vrot.slane %v4915_v36, %v511_v34  ;;  %v4553_v34 = vld [vmem:[#allocation8 + $0x128] sm:$0xff]  }
 0x1ee   :  { %2865 = vmatprep.subr.bf16.mxu0 %v4198_v39  ;;  %2994 = vmatprep.subr.bf16.mxu1 %v4200_v40  ;;  %v4520_v39 = vld [vmem:[#allocation8 + $0xe8] sm:$0xff]   ;;  %v523_v40 = vsub.s32 3, %v4912_v30 }
 0x1f0   :  { %v524_v51 = vrot.slane %v4915_v36, %v523_v40  ;;  %v4558_v40 = vld [vmem:[#allocation8 + $0x1b0] sm:$0xff]  }
 0x1f1   :  { %2866 = vmatpush1.bf16.msra.mxu0 %v4197_v45  ;;  %2995 = vmatpush1.bf16.msra.mxu1 %v4199_v46  ;;  %v520_v46 = vrot.slane %v4915_v36, %v519_v37  ;;  %v4555_v37 = vld [vmem:[#allocation8 + $0x170] sm:$0xff]  }
 0x1f2   :  { %2867 = vmatprep.subr.bf16.mxu0 %v4206_v47  ;;  %2996 = vmatprep.subr.bf16.mxu1 %v4208_v48  ;;  %v516_v47 = vrot.slane %v4915_v36, %v515_v38  ;;  %v4524_v48 = vld [vmem:[#allocation8 + $0xf0] sm:$0xff]  }
 0x1f3   :  { %v4556_v38 = vld [vmem:[#allocation8 + $0x1f0] sm:$0xff]  }
 0x1f5   :  { %2868 = vmatpush1.bf16.msra.mxu0 %v4205_v53  ;;  %2997 = vmatpush1.bf16.msra.mxu1 %v4207_v54  ;;  %v4525_v54 = vld [vmem:[#allocation8 + $0x30] sm:$0xff]  }
 0x1f6   :  { %2869 = vmatprep.subr.bf16.mxu0 %v4214_v55  ;;  %2998 = vmatprep.subr.bf16.mxu1 %v4216_v56 }
 0x1f9   :  { %2870 = vmatpush1.bf16.msra.mxu0 %v4213_v61  ;;  %2999 = vmatpush1.bf16.msra.mxu1 %v4215_v62 }
 0x1fa   :  { %2871 = vmatprep.subr.bf16.mxu0 %v4222_v63  ;;  %3000 = vmatprep.subr.bf16.mxu1 %v4224_v0 }
 0x1fd   :  { %2872 = vmatpush1.bf16.msra.mxu0 %v4221_v5  ;;  %3001 = vmatpush1.bf16.msra.mxu1 %v4223_v6 }
 0x1fe   :  { %2873 = vmatprep.subr.bf16.mxu0 %v4230_v7  ;;  %3002 = vmatprep.subr.bf16.mxu1 %v4232_v8  ;;  %v4529_v8 = vld [vmem:[#allocation8 + $0x38] sm:$0xff]  }
 0x201   :  { %2874 = vmatpush1.bf16.msra.mxu0 %v4229_v9  ;;  %3003 = vmatpush1.bf16.msra.mxu1 %v4231_v10  ;;  %v4530_v10 = vld [vmem:[#allocation8 + $0xb8] sm:$0xff]  }
 0x202   :  { %4307 = vmatprep.subr.bf16.mxu0 %v4499_v11  ;;  %4329 = vmatprep.subr.bf16.mxu1 %v4500_v12  ;;  %v4531_v11 = vld [vmem:[#allocation8 + $0x140] sm:$0xff]  }
 0x203   :  { %v4532_v12 = vld [vmem:[#allocation8 + $0x1c0] sm:$0xff]  }
 0x204   :  { %2876 = vmatmul.mubr.bf16.vlgmr.msra.gmra.mrb[4].mxu0 %v4576_v17  ;;  %3005 = vmatmul.mubr.bf16.vlgmr.msra.gmra.mrb[4].mxu1 %v4576_v17  ;;  %v4537_v17 = vld [vmem:[#allocation8 + $0x108] sm:$0xff]  }
 0x205   :  { %4308 = vmatpush3.bf16.msra.mxu0 %v4501_v13  ;;  %4330 = vmatpush3.bf16.msra.mxu1 %v4502_v14  ;;  %v4533_v13 = vld [vmem:[#allocation8 + $0x100] sm:$0xff]  }
 0x206   :  { %4309 = vmatprep.subr.bf16.mxu0 %v4503_v15  ;;  %4331 = vmatprep.subr.bf16.mxu1 %v4504_v16  ;;  %v4534_v14 = vld [vmem:[#allocation8 + $0x180] sm:$0xff]   ;;  %v4535_v15 = vld [vmem:[#allocation8 + $0x148] sm:$0xff]  }
 0x207   :  { %v4536_v16 = vld [vmem:[#allocation8 + $0x1c8] sm:$0xff]  }
 0x209   :  { %4310 = vmatpush3.bf16.msra.mxu0 %v4505_v18  ;;  %4332 = vmatpush3.bf16.msra.mxu1 %v4506_v19  ;;  %v4538_v18 = vld [vmem:[#allocation8 + $0x188] sm:$0xff]   ;;  %v4539_v19 = vld [vmem:[#allocation8 + $0x150] sm:$0xff]  }
 0x20a   :  { %4311 = vmatprep.subr.bf16.mxu0 %v4507_v20  ;;  %4333 = vmatprep.subr.bf16.mxu1 %v4508_v21  ;;  %v4540_v20 = vld [vmem:[#allocation8 + $0x1d0] sm:$0xff]  }
 0x20b   :  { %v4541_v21 = vld [vmem:[#allocation8 + $0x110] sm:$0xff]  }
 0x20d   :  { %4312 = vmatpush3.bf16.msra.mxu0 %v4509_v22  ;;  %4334 = vmatpush3.bf16.msra.mxu1 %v4510_v23  ;;  %v4542_v22 = vld [vmem:[#allocation8 + $0x190] sm:$0xff]   ;;  %v4543_v23 = vld [vmem:[#allocation8 + $0x158] sm:$0xff]  }
 0x20e   :  { %4313 = vmatprep.subr.bf16.mxu0 %v4511_v24  ;;  %4335 = vmatprep.subr.bf16.mxu1 %v4512_v26  ;;  %v4544_v24 = vld [vmem:[#allocation8 + $0x1d8] sm:$0xff]  }
 0x20f   :  { %v4546_v26 = vld [vmem:[#allocation8 + $0x198] sm:$0xff]  }
 0x211   :  { %4314 = vmatpush3.bf16.msra.mxu0 %v4513_v27  ;;  %4336 = vmatpush3.bf16.msra.mxu1 %v4514_v28  ;;  %v4547_v27 = vld [vmem:[#allocation8 + $0x160] sm:$0xff]  }
 0x212   :  { %4315 = vmatprep.subr.bf16.mxu0 %v4515_v29  ;;  %4337 = vmatprep.subr.bf16.mxu1 %v4516_v31  ;;  %v4548_v28 = vld [vmem:[#allocation8 + $0x1e0] sm:$0xff]  }
 0x213   :  { %v4549_v29 = vld [vmem:[#allocation8 + $0x120] sm:$0xff]  }
 0x214   :  { %v4550_v31 = vld [vmem:[#allocation8 + $0x1a0] sm:$0xff]  }
 0x215   :  { %4316 = vmatpush3.bf16.msra.mxu0 %v4517_v32  ;;  %4338 = vmatpush3.bf16.msra.mxu1 %v4518_v33  ;;  %v4551_v32 = vld [vmem:[#allocation8 + $0x168] sm:$0xff]  }
 0x216   :  { %4317 = vmatprep.subr.bf16.mxu0 %v4519_v35  ;;  %4339 = vmatprep.subr.bf16.mxu1 %v4520_v39  ;;  %v4552_v33 = vld [vmem:[#allocation8 + $0x1e8] sm:$0xff]   ;;  %v4557_v39 = vld [vmem:[#allocation8 + $0x130] sm:$0xff]  }
 0x217   :  { %v2619_v45 = vpop.f32.mrb[0].mxu0  ;;  %v2748_v49 = vpop.f32.mrb[0].mxu1  ;;  %v4554_v35 = vld [vmem:[#allocation8 + $0x1a8] sm:$0xff]  }
 0x218   :  { %v2621_v50 = vpop.f32.mrb[1].mxu0  ;;  %v2750_v52 = vpop.f32.mrb[1].mxu1  ;;  %v4424_v55 = vadd.f32 %v2619_v45, %v512_v42  ;;  %v4428_v61 = vadd.f32 %v2748_v49, %v520_v46  ;;  %v4776_v45 = vmov 0.0   ;;  %v539_v49 = vsub.s32 7, %v4912_v30 }
 0x219   :  { %v2623_v53 = vpop.f32.mrb[2].mxu0  ;;  %4318 = vmatpush3.bf16.msra.mxu0 %v4521_v41  ;;  %v2752_v57 = vpop.f32.mrb[2].mxu1  ;;  %4340 = vmatpush3.bf16.msra.mxu1 %v4522_v43  ;;  %v4425_v62 = vadd.f32 %v2621_v50, %v516_v47  ;;  %v4429_v3 = vadd.f32 %v2750_v52, %v524_v51  ;;  %v4559_v41 = vld [vmem:[#allocation8 + $0x178] sm:$0xff]  }
 0x21a   :  { %v4426_v56 = vadd.f32 %v2623_v53, %v512_v42  ;;  %v2625_v58 = vpop.f32.mrb[3].mxu0  ;;  %4319 = vmatprep.subr.bf16.mxu0 %v4523_v44  ;;  %v4430_v63 = vadd.f32 %v2752_v57, %v520_v46  ;;  %v2754_v1 = vpop.f32.mrb[3].mxu1  ;;  %4341 = vmatprep.subr.bf16.mxu1 %v4524_v48  ;;  %v4560_v42 = vld [vmem:[#allocation8 + $0x1f8] sm:$0xff]   ;;  %v527_v46 = vsub.s32 4, %v4912_v30  ;;  %v531_v48 = vsub.s32 5, %v4912_v30 }
 0x21b   :  { %v4427_v0 = vadd.f32 %v2625_v58, %v516_v47  ;;  %v4431_v5 = vadd.f32 %v2754_v1, %v524_v51  ;;  %v4561_v43 = vld [vmem:[#allocation8 + $0x138] sm:$0xff]   ;;  %v535_v47 = vsub.s32 6, %v4912_v30 }
 0x21c   :  { %v3015_v4 = vpack.c.bf16 %v4426_v56, %v4424_v55  ;;  %v3017_v6 = vpack.c.bf16 %v4430_v63, %v4428_v61  ;;  %v4562_v44 = vld [vmem:[#allocation8 + $0x1b8] sm:$0xff]   ;;  %v528_v50 = vrot.slane %v4915_v36, %v527_v46  ;;  %v532_v53 = vrot.slane %v4915_v36, %v531_v48 }
 0x21d   :  { %v3016_v7 = vpack.c.bf16 %v4427_v0, %v4425_v62  ;;  %4320 = vmatpush3.bf16.msra.mxu0 %v4525_v54  ;;  %v3018_v9 = vpack.c.bf16 %v4431_v5, %v4429_v3  ;;  %4342 = vmatpush3.bf16.msra.mxu1 %v4526_v59  ;;  %v536_v52 = vrot.slane %v4915_v36, %v535_v47 }
 0x21e   :  { %4321 = vmatprep.subr.bf16.mxu0 %v4527_v60  ;;  %4343 = vmatprep.subr.bf16.mxu1 %v4528_v2  ;;  %v540_v56 = vrot.slane %v4915_v36, %v539_v49  ;;  %v4564_v36 = vld [vmem:[#allocation11 + $0x8] sm:$0xff]  }
 0x21f   :  { %3574 = vmatprep.mubr.bf16.mxu0 %v3016_v7  ;;  %3615 = vmatprep.mubr.bf16.mxu1 %v3018_v9 }
 0x221   :  { %4322 = vmatpush3.bf16.msra.mxu0 %v4529_v8  ;;  %4344 = vmatpush3.bf16.msra.mxu1 %v4530_v10  ;;  %v4563_v8 = vld [vmem:[#allocation11] sm:$0xff]   ;;  %v4565_v10 = vld [vmem:[#allocation11 + $0x10] sm:$0xff]  }
 0x222   :  { %4351 = vmatprep.subr.bf16.mxu0 %v4531_v11  ;;  %4373 = vmatprep.subr.bf16.mxu1 %v4532_v12  ;;  %v4566_v11 = vld [vmem:[#allocation11 + $0x18] sm:$0xff]   ;;  %v4567_v12 = vld [vmem:[#allocation11 + $0x20] sm:$0xff]  }
 0x224   :  { %3575 = vmatmul.mubr.bf16.vlgmr.msra.gmra.mrb[8].mxu0 %v3015_v4  ;;  %3616 = vmatmul.mubr.bf16.vlgmr.msra.gmra.mrb[8].mxu1 %v3017_v6 }
 0x225   :  { %4352 = vmatpush3.bf16.msra.mxu0 %v4533_v13  ;;  %4374 = vmatpush3.bf16.msra.mxu1 %v4534_v14 }
 0x226   :  { %4353 = vmatprep.subr.bf16.mxu0 %v4535_v15  ;;  %4375 = vmatprep.subr.bf16.mxu1 %v4536_v16  ;;  %v4233_v15 = vld [vmem:[#allocation10] ss:$0 sm:$0xff] }
 0x229   :  { %4354 = vmatpush3.bf16.msra.mxu0 %v4537_v17  ;;  %4376 = vmatpush3.bf16.msra.mxu1 %v4538_v18 }
 0x22a   :  { %4355 = vmatprep.subr.bf16.mxu0 %v4539_v19  ;;  %4377 = vmatprep.subr.bf16.mxu1 %v4540_v20 }
 0x22d   :  { %4356 = vmatpush3.bf16.msra.mxu0 %v4541_v21  ;;  %4378 = vmatpush3.bf16.msra.mxu1 %v4542_v22 }
 0x22e   :  { %4357 = vmatprep.subr.bf16.mxu0 %v4543_v23  ;;  %4379 = vmatprep.subr.bf16.mxu1 %v4544_v24 }
 0x231   :  { %4358 = vmatpush3.bf16.msra.mxu0 %v4545_v25  ;;  %4380 = vmatpush3.bf16.msra.mxu1 %v4546_v26 }
 0x232   :  { %4359 = vmatprep.subr.bf16.mxu0 %v4547_v27  ;;  %4381 = vmatprep.subr.bf16.mxu1 %v4548_v28 }
 0x235   :  { %4360 = vmatpush3.bf16.msra.mxu0 %v4549_v29  ;;  %4382 = vmatpush3.bf16.msra.mxu1 %v4550_v31  ;;  %v4568_v31 = vld [vmem:[#allocation11 + $0x28] sm:$0xff]  }
 0x236   :  { %4361 = vmatprep.subr.bf16.mxu0 %v4551_v32  ;;  %4383 = vmatprep.subr.bf16.mxu1 %v4552_v33  ;;  %v4569_v32 = vld [vmem:[#allocation11 + $0x30] sm:$0xff]   ;;  %v4570_v33 = vld [vmem:[#allocation11 + $0x38] sm:$0xff]  }
 0x239   :  { %4362 = vmatpush3.bf16.msra.mxu0 %v4553_v34  ;;  %4384 = vmatpush3.bf16.msra.mxu1 %v4554_v35 }
 0x23a   :  { %4363 = vmatprep.subr.bf16.mxu0 %v4555_v37  ;;  %4385 = vmatprep.subr.bf16.mxu1 %v4556_v38 }
 0x23d   :  { %4364 = vmatpush3.bf16.msra.mxu0 %v4557_v39  ;;  %4386 = vmatpush3.bf16.msra.mxu1 %v4558_v40 }
 0x23e   :  { %4365 = vmatprep.subr.bf16.mxu0 %v4559_v41  ;;  %4387 = vmatprep.subr.bf16.mxu1 %v4560_v42 }
 0x241   :  { %4366 = vmatpush3.bf16.msra.mxu0 %v4561_v43  ;;  %4388 = vmatpush3.bf16.msra.mxu1 %v4562_v44 }
 0x242   :  { %4404 = vmatprep.subr.bf16.mxu0 %v4776_v45 }
 0x2d7   :  { %v2877_v51 = vpop.f32.mrb[4].mxu0  ;;  %v3006_v54 = vpop.f32.mrb[4].mxu1 }
 0x2d8   :  { %v2879_v55 = vpop.f32.mrb[5].mxu0  ;;  %v3008_v57 = vpop.f32.mrb[5].mxu1  ;;  %v4432_v59 = vadd.f32 %v2877_v51, %v528_v50  ;;  %v4436_v63 = vadd.f32 %v3006_v54, %v536_v52 }
 0x2d9   :  { %v2881_v58 = vpop.f32.mrb[6].mxu0  ;;  %v3010_v61 = vpop.f32.mrb[6].mxu1  ;;  %v4433_v0 = vadd.f32 %v2879_v55, %v532_v53  ;;  %v4437_v3 = vadd.f32 %v3008_v57, %v540_v56 }
 0x2da   :  { %v4434_v60 = vadd.f32 %v2881_v58, %v528_v50  ;;  %v2883_v62 = vpop.f32.mrb[7].mxu0  ;;  %v4438_v30 = vadd.f32 %v3010_v61, %v536_v52  ;;  %v3012_v2 = vpop.f32.mrb[7].mxu1 }
 0x2db   :  { %v4435_v1 = vadd.f32 %v2883_v62, %v532_v53  ;;  %v4439_v5 = vadd.f32 %v3012_v2, %v540_v56 }
 0x2dc   :  { %v3019_v4 = vpack.c.bf16 %v4434_v60, %v4432_v59  ;;  %v3021_v6 = vpack.c.bf16 %v4438_v30, %v4436_v63 }
 0x2dd   :  { %v3020_v7 = vpack.c.bf16 %v4435_v1, %v4433_v0  ;;  %v3022_v9 = vpack.c.bf16 %v4439_v5, %v4437_v3 }
 0x2df   :  { %3656 = vmatprep.mubr.bf16.mxu0 %v3020_v7  ;;  %3697 = vmatprep.mubr.bf16.mxu1 %v3022_v9 }
 0x2e0   :  { %3657 = vmatmul.mubr.bf16.vlgmr.msra.gmra.mrb[12].mxu0 %v3019_v4  ;;  %3698 = vmatmul.mubr.bf16.vlgmr.msra.gmra.mrb[12].mxu1 %v3021_v6 }
 0x2e1   :  { %4405 = vmatpush3.bf16.msra.mxu0 %v4563_v8  ;;  %4420 = vmatprep.mubr.msk.bf16.mxu0 %vm4777_vm0, %v4776_v45 }
 0x2e2   :  { %4406 = vmatprep.subr.bf16.mxu0 %v4776_v45 }
 0x2e5   :  { %4407 = vmatpush3.bf16.msra.mxu0 %v4564_v36 }
 0x2e6   :  { %4408 = vmatprep.subr.bf16.mxu0 %v4776_v45 }
 0x2e9   :  { %4409 = vmatpush3.bf16.msra.mxu0 %v4565_v10 }
 0x2ea   :  { %4410 = vmatprep.subr.bf16.mxu0 %v4776_v45 }
 0x2ed   :  { %4411 = vmatpush3.bf16.msra.mxu0 %v4566_v11 }
 0x2ee   :  { %4412 = vmatprep.subr.bf16.mxu0 %v4776_v45 }
 0x2f1   :  { %4413 = vmatpush3.bf16.msra.mxu0 %v4567_v12 }
 0x2f2   :  { %4414 = vmatprep.subr.bf16.mxu0 %v4776_v45 }
 0x2f5   :  { %4415 = vmatpush3.bf16.msra.mxu0 %v4568_v31 }
 0x2f6   :  { %4416 = vmatprep.subr.bf16.mxu0 %v4776_v45 }
 0x2f7   :  { %v4323_v13 = vpop.f32.mrb[8].mxu0  ;;  %v4345_v14 = vpop.f32.mrb[8].mxu1 }
 0x2f8   :  { %v4324_v16 = vpop.f32.mrb[9].mxu0  ;;  %v4346_v18 = vpop.f32.mrb[9].mxu1 }
 0x2f9   :  { %v4325_v17 = vadd.f32 %v4324_v16, %v4323_v13  ;;  %v4326_v19 = vpop.f32.mrb[10].mxu0  ;;  %v4347_v20 = vadd.f32 %v4346_v18, %v4345_v14  ;;  %v4348_v21 = vpop.f32.mrb[10].mxu1  ;;  %4417 = vmatpush3.bf16.msra.mxu0 %v4569_v32 }
 0x2fa   :  { %v4327_v22 = vpop.f32.mrb[11].mxu0  ;;  %v4349_v25 = vpop.f32.mrb[11].mxu1  ;;  %4418 = vmatprep.subr.bf16.mxu0 %v4776_v45  ;;  %v4298_v45 = vld [vmem:[#allocation13] ss:$0 sm:$0xff] }
 0x2fb   :  { %v3577_v23 = vadd.f32 %v4325_v17, %v4233_v15  ;;  %v4328_v24 = vadd.f32 %v4327_v22, %v4326_v19  ;;  %v4350_v26 = vadd.f32 %v4349_v25, %v4348_v21 }
 0x2fd   :  { %v3618_v27 = vadd.f32 %v4347_v20, %v3577_v23  ;;  %v3580_v28 = vadd.f32 %v4328_v24, %v4233_v15  ;;  %4419 = vmatpush3.bf16.msra.mxu0 %v4570_v33 }
 0x2ff   :  { %v3621_v29 = vadd.f32 %v4350_v26, %v3580_v28 }
 0x3b3   :  { %v4367_v34 = vpop.f32.mrb[12].mxu0  ;;  %v4389_v35 = vpop.f32.mrb[12].mxu1 }
 0x3b4   :  { %v4368_v37 = vpop.f32.mrb[13].mxu0  ;;  %v4390_v39 = vpop.f32.mrb[13].mxu1 }
 0x3b5   :  { %v4369_v38 = vadd.f32 %v4368_v37, %v4367_v34  ;;  %v4370_v40 = vpop.f32.mrb[14].mxu0  ;;  %v4391_v41 = vadd.f32 %v4390_v39, %v4389_v35  ;;  %v4392_v42 = vpop.f32.mrb[14].mxu1 }
 0x3b6   :  { %v4371_v43 = vpop.f32.mrb[15].mxu0  ;;  %v4393_v47 = vpop.f32.mrb[15].mxu1 }
 0x3b7   :  { %v3659_v44 = vadd.f32 %v4369_v38, %v3618_v27  ;;  %v4372_v46 = vadd.f32 %v4371_v43, %v4370_v40  ;;  %v4394_v48 = vadd.f32 %v4393_v47, %v4392_v42 }
 0x3b9   :  { %v3700_v49 = vadd.f32 %v4391_v41, %v3659_v44  ;;  %v3662_v50 = vadd.f32 %v4372_v46, %v3621_v29 }
 0x3bb   :  { %v3703_v51 = vadd.f32 %v4394_v48, %v3662_v50  ;;  %v3706_v52 = vmax.f32 %v3700_v49, 0.0 }
 0x3bd   :  { %v3707_v53 = vmax.f32 %v3703_v51, 0.0 }
 0x3bf   :  { %v3708_v54 = vpack.c.bf16 %v3707_v53, %v3706_v52 }
 0x3c1   :  { %4421 = vmatmul.mubr.bf16.vlgmr.msra.gmra.mrb[16].mxu0 %v3708_v54 }
 0x494   :  { %v3814_v55 = vpop.f32.mrb[16].mxu0 }
 0x495   :  { %v3815_v56 = vadd.f32 %v4298_v45, %v3814_v55  ;;  %v4422_v57 = vpop.f32.mrb[17].mxu0 }
 0x496   :  { %v3817_v58 = vpop.f32.mrb[18].mxu0 }
 0x497   :  { %3821 = vst [vmem:[#allocation14] sm:$0xff] %v3815_v56  ;;  %v3818_v59 = vadd.f32 %v4298_v45, %v3817_v58  ;;  %v4423_v60 = vpop.f32.mrb[19].mxu0 }
 0x499   :  { %3822 = vst [vmem:[#allocation14 + $0x8] sm:$0xff] %v3818_v59 }
 0x49a   :  { %4742 = shalt.err (!%p4739_p4)
}
 0x49b   :  { %s4743_s16 = scalar_lea.hbm %s4960_s7, 256 }
 0x49c   :  { %p4744_p5 = scmp.ne.s32.totalorder %s4960_s7, %s4743_s16  ;;  %p4747_p6 = scmp.lt.u32.totalorder %s4743_s16, %s4960_s7 }
 0x49e   :  { %p4749_p7 = pnand %p4747_p6, %p4744_p5 }
 0x4a0   :  { %4752 = shalt.err (!%p4749_p7)
}
 0x4a1   :  { %s4779_s21 = smov 128   ;;  %s4780_s22 = smov 8  }
 0x4a2   :  { %3834 = dma.vmem_to_hbm [thread:$0]  %s3829_s15, 256, %s4960_s7, [#allocation4], %s4779_s21, %s4779_s21, %s4780_s22  }
 0x4a3   :  { %4761 = dma.done.wait [#allocation4], 256  }
 0x4a4   :  { %4762 = vsyncadd [#allocation4], 4294967040 }
 0x4a5   :  { %3838 = vsyncpa [#allocation3], 1 }
 0x4a6   :  { %3839 = vsyncpa [#allocation6], 1 }
 0x4a7   :  { %3840 = vsyncpa [#allocation9], 1 }
 0x4a8   :  { %3841 = vsyncpa [#allocation12], 1 }
 0x4a9   :  { %3842 = vsyncpa [#allocation4], 1 }

</bundles_post_ra>
